<compile_context>
chip_gen: v7x
topology: tpu7x:2x2x1
jax: 0.10.0
libtpu: 0.0.40
codegen_flags: <defaults>
</compile_context>

<pallas_src>
import functools

import jax
import jax.numpy as jnp
from jax.experimental import pallas as pl
from jax.experimental.pallas import tpu as pltpu


# ---------------------------------------------------------------------------
# Kernel 1: one siamese branch end-to-end (bi-LSTM last output + CNN features).
# Grid = (2,) over branches, "parallel".
# ---------------------------------------------------------------------------
def branch_kernel(e_ref, h0_ref, c0_ref,
                  wih_f_ref, whh_f_ref, bf_ref,
                  wih_r_ref, whh_r_ref, br_ref,
                  wcat_ref, convb_ref,
                  hf_out, hr_out, cnn_out, *, T, K):
    e = e_ref[0]                                    # (B, T, E)
    C = convb_ref.shape[-1]

    # -------- forward LSTM direction --------------------------------------
    # Hoist the input projection out of the recurrence: one MXU matmul per gate
    # over the whole sequence, so the serial loop only does h @ W_hh_g.
    def proj(w):                                    # (E, H) -> (B, T, H)
        return jax.lax.dot_general(
            e, w, dimension_numbers=(((2,), (0,)), ((), ())),
            preferred_element_type=jnp.float32)

    xp = [proj(wih_f_ref[g]) for g in range(4)]     # PyTorch gate order [i,f,g,o]
    whh = [whh_f_ref[g] for g in range(4)]          # each (H, H)
    bf = [bf_ref[g] for g in range(4)]              # each (1, H)

    hc0 = h0_ref[0]                                 # (2, B, H): dir 0 = fwd, 1 = rev
    cc0 = c0_ref[0]
    h = hc0[0]
    c = cc0[0]
    for t in range(T):                              # statically unrolled recurrence
        def pre(g):
            return (xp[g][:, t, :]
                    + jnp.dot(h, whh[g], preferred_element_type=jnp.float32)
                    + bf[g])
        i = jax.nn.sigmoid(pre(0))
        f = jax.nn.sigmoid(pre(1))
        g_ = jnp.tanh(pre(2))
        o = jax.nn.sigmoid(pre(3))
        c = f * c + i * g_
        h = o * jnp.tanh(c)
    hf_out[0] = h

    # -------- reverse direction: outputs[:, -1] == one step on x[:, T-1] ----
    x_last = e[:, T - 1, :]                         # (B, E)
    h0r = hc0[1]
    c0r = cc0[1]

    def rev_pre(g):
        return (jnp.dot(x_last, wih_r_ref[g], preferred_element_type=jnp.float32)
                + jnp.dot(h0r, whh_r_ref[g], preferred_element_type=jnp.float32)
                + br_ref[g])
    ir = jax.nn.sigmoid(rev_pre(0))
    fr = jax.nn.sigmoid(rev_pre(1))
    gr = jnp.tanh(rev_pre(2))
    orr = jax.nn.sigmoid(rev_pre(3))
    cr = fr * c0r + ir * gr
    hr_out[0] = orr * jnp.tanh(cr)

    # -------- CNN: single matmul, 128-aligned lane slices, shifted adds -----
    P = jax.lax.dot_general(
        e, wcat_ref[...], dimension_numbers=(((2,), (0,)), ((), ())),
        preferred_element_type=jnp.float32)          # (B, T, K*C)
    T_out = T - K + 1
    acc = P[:, 0:T_out, 0:C]
    for k in range(1, K):
        acc = acc + P[:, k:k + T_out, k * C:(k + 1) * C]
    y = jnp.maximum(acc + convb_ref[...], 0.0)       # ReLU(conv + bias)
    cnn_out[0] = jnp.max(y, axis=1)                  # max-pool over time -> (B, C)


# ---------------------------------------------------------------------------
# Kernel 2: cosine similarity (dim=1, eps=1e-6) from the three feature parts.
# No concat needed: dot / norms decompose over concatenated parts.
# ---------------------------------------------------------------------------
def cosine_kernel(hf_ref, hr_ref, cnn_ref, o_ref):
    hf = hf_ref[...]                                 # (2, B, H)
    hr = hr_ref[...]                                 # (2, B, H)
    cnn = cnn_ref[...]                               # (2, B, C)

    def red(a, b):
        return (jnp.sum(hf[a] * hf[b], axis=1, keepdims=True)
                + jnp.sum(hr[a] * hr[b], axis=1, keepdims=True)
                + jnp.sum(cnn[a] * cnn[b], axis=1, keepdims=True))

    dot = red(0, 1)
    na = jnp.sqrt(red(0, 0))
    nb = jnp.sqrt(red(1, 1))
    o_ref[...] = dot / jnp.maximum(na * nb, 1e-6)


# ---------------------------------------------------------------------------
# Parameter init (mirrors the PyTorch module, num_layers=1, bidirectional).
# ---------------------------------------------------------------------------
def init_params(key, n_token, E, H, C_out=128, K=5, init_range=0.1):
    ks = jax.random.split(key, 11)
    emb = jax.random.uniform(ks[0], (n_token, E), jnp.float32, -init_range, init_range)
    emb = emb.at[0].set(0.0)                         # padding_idx = 0
    s = 1.0 / jnp.sqrt(jnp.float32(H))

    def u(k, shape, bound):
        return jax.random.uniform(k, shape, jnp.float32, -bound, bound)

    p = dict(embedding=emb)
    p["w_ih_f"] = u(ks[1], (4 * H, E), s)
    p["w_hh_f"] = u(ks[2], (4 * H, H), s)
    p["b_f"] = u(ks[3], (4 * H,), s) + u(ks[4], (4 * H,), s)   # b_ih + b_hh
    p["w_ih_r"] = u(ks[5], (4 * H, E), s)
    p["w_hh_r"] = u(ks[6], (4 * H, H), s)
    p["b_r"] = u(ks[7], (4 * H,), s) + u(ks[8], (4 * H,), s)
    bound = 1.0 / jnp.sqrt(jnp.float32(K * E))
    p["conv_w"] = u(ks[9], (C_out, 1, K, E), bound)            # OIHW
    p["conv_b"] = u(ks[10], (C_out,), bound)
    return p


# ---------------------------------------------------------------------------
# Forward pass: embedding lookup + weight re-layout in XLA, rest in 2 kernels.
# ---------------------------------------------------------------------------
def siamese_forward(p, tokens1, tokens2, h1, c1, h2, c2):
    emb = p["embedding"]
    e1 = jnp.take(emb, tokens1, axis=0)              # (B, T, E)
    e2 = jnp.take(emb, tokens2, axis=0)
    B, T, E = e1.shape
    H = h1.shape[-1]
    C, _, K, _ = p["conv_w"].shape

    def split_gates(w):                              # (4H, D) -> (4, D, H)
        return jnp.stack([w[g * H:(g + 1) * H, :].T for g in range(4)])

    wih_f = split_gates(p["w_ih_f"])                 # (4, E, H)
    whh_f = split_gates(p["w_hh_f"])                 # (4, H, H)
    bf = p["b_f"].reshape(4, 1, H)
    wih_r = split_gates(p["w_ih_r"])
    whh_r = split_gates(p["w_hh_r"])
    br = p["b_r"].reshape(4, 1, H)

    # conv weight (C,1,K,E) -> (E, K*C) so that [:, k*C:(k+1)*C] is tap k.
    wcat = jnp.transpose(p["conv_w"][:, 0], (2, 1, 0)).reshape(E, K * C)
    convb = p["conv_b"][None, :]                     # (1, C)

    e = jnp.stack([e1, e2])                          # (2, B, T, E)
    h0 = jnp.stack([h1, h2])                         # (2, 2, B, H)
    c0 = jnp.stack([c1, c2])

    hf, hr, cnn = pl.pallas_call(
        functools.partial(branch_kernel, T=T, K=K),
        out_shape=(jax.ShapeDtypeStruct((2, B, H), jnp.float32),
                   jax.ShapeDtypeStruct((2, B, H), jnp.float32),
                   jax.ShapeDtypeStruct((2, B, C), jnp.float32)),
        grid_spec=pltpu.PrefetchScalarGridSpec(
            num_scalar_prefetch=0,
            grid=(2,),                               # the two siamese branches
            in_specs=[
                pl.BlockSpec((1, B, T, E), lambda n: (n, 0, 0, 0)),
                pl.BlockSpec((1, 2, B, H), lambda n: (n, 0, 0, 0)),
                pl.BlockSpec((1, 2, B, H), lambda n: (n, 0, 0, 0)),
                pl.BlockSpec((4, E, H), lambda n: (0, 0, 0)),
                pl.BlockSpec((4, H, H), lambda n: (0, 0, 0)),
                pl.BlockSpec((4, 1, H), lambda n: (0, 0, 0)),
                pl.BlockSpec((4, E, H), lambda n: (0, 0, 0)),
                pl.BlockSpec((4, H, H), lambda n: (0, 0, 0)),
                pl.BlockSpec((4, 1, H), lambda n: (0, 0, 0)),
                pl.BlockSpec((E, K * C), lambda n: (0, 0)),
                pl.BlockSpec((1, C), lambda n: (0, 0)),
            ],
            out_specs=[
                pl.BlockSpec((1, B, H), lambda n: (n, 0, 0)),
                pl.BlockSpec((1, B, H), lambda n: (n, 0, 0)),
                pl.BlockSpec((1, B, C), lambda n: (n, 0, 0)),
            ],
        ),
        compiler_params=pltpu.CompilerParams(dimension_semantics=("parallel",)),
    )(e, h0, c0, wih_f, whh_f, bf, wih_r, whh_r, br, wcat, convb)

    sim = pl.pallas_call(
        cosine_kernel,
        out_shape=jax.ShapeDtypeStruct((B, 1), jnp.float32),
        grid_spec=pltpu.PrefetchScalarGridSpec(
            num_scalar_prefetch=0,
            grid=(1,),
            in_specs=[pl.BlockSpec((2, B, H), lambda i: (0, 0, 0)),
                      pl.BlockSpec((2, B, H), lambda i: (0, 0, 0)),
                      pl.BlockSpec((2, B, C), lambda i: (0, 0, 0))],
            out_specs=pl.BlockSpec((B, 1), lambda i: (0, 0)),
        ),
    )(hf, hr, cnn)
    return sim[:, 0]                                 # (B,)


# ---------------------------------------------------------------------------
# Pure-JAX reference (correctness check of the Pallas path).
# ---------------------------------------------------------------------------
def _lstm_ref_outputs(x_bte, w_ih, w_hh, b, h0, c0):
    H = h0.shape[-1]

    def step(carry, x_t):
        h, c = carry
        g = x_t @ w_ih.T + h @ w_hh.T + b
        i = jax.nn.sigmoid(g[:, :H]); f = jax.nn.sigmoid(g[:, H:2 * H])
        gg = jnp.tanh(g[:, 2 * H:3 * H]); o = jax.nn.sigmoid(g[:, 3 * H:])
        c = f * c + i * gg
        h = o * jnp.tanh(c)
        return (h, c), h

    (_, _), hs = jax.lax.scan(step, (h0, c0), jnp.transpose(x_bte, (1, 0, 2)))
    return hs  # (T, B, H)


def siamese_reference(p, tokens1, tokens2, h1, c1, h2, c2):
    emb = p["embedding"]

    def branch(tokens, h0, c0):
        e = jnp.take(emb, tokens, axis=0)
        hs_f = _lstm_ref_outputs(e, p["w_ih_f"], p["w_hh_f"], p["b_f"], h0[0], c0[0])
        hs_r = _lstm_ref_outputs(e[:, ::-1, :], p["w_ih_r"], p["w_hh_r"], p["b_r"],
                                 h0[1], c0[1])
        last = jnp.concatenate([hs_f[-1], hs_r[0]], axis=1)    # outputs[:, -1, :]
        x = e[:, None, :, :]                                   # NCHW
        y = jax.lax.conv_general_dilated(x, p["conv_w"], (1, 1), "VALID",
                                         dimension_numbers=("NCHW", "OIHW", "NCHW"))
        y = jnp.maximum(y + p["conv_b"][None, :, None, None], 0.0)[:, :, :, 0]
        cnn = jnp.max(y, axis=2)
        return jnp.concatenate([last, cnn], axis=1)

    a = branch(tokens1, h1, c1)
    b = branch(tokens2, h2, c2)
    dot = jnp.sum(a * b, axis=1)
    den = jnp.maximum(jnp.linalg.norm(a, axis=1) * jnp.linalg.norm(b, axis=1), 1e-6)
    return dot / den


if __name__ == "__main__":
    B, T, E, H = 2, 12, 16, 32
    n_token, K = 50, 5

    key = jax.random.PRNGKey(0)
    k_par, k_t1, k_t2, k_h1, k_c1, k_h2, k_c2 = jax.random.split(key, 7)

    params = init_params(k_par, n_token, E, H, C_out=128, K=K)
    tokens1 = jax.random.randint(k_t1, (B, T), 0, n_token, dtype=jnp.int32)
    tokens2 = jax.random.randint(k_t2, (B, T), 0, n_token, dtype=jnp.int32)
    # deterministic stand-ins for the module's initHiddenCell randn draws
    h1 = jax.random.normal(k_h1, (2, B, H), jnp.float32)
    c1 = jax.random.normal(k_c1, (2, B, H), jnp.float32)
    h2 = jax.random.normal(k_h2, (2, B, H), jnp.float32)
    c2 = jax.random.normal(k_c2, (2, B, H), jnp.float32)

    out = jax.jit(siamese_forward)(params, tokens1, tokens2, h1, c1, h2, c2)
    out = jax.block_until_ready(out)

    ref = jax.block_until_ready(
        siamese_reference(params, tokens1, tokens2, h1, c1, h2, c2))
    assert out.shape == (B,)
    assert jnp.allclose(out, ref, atol=1e-4, rtol=1e-4), (out, ref)

    print("KERNEL_OK")
</pallas_src>

<mosaic_0001>
module attributes {stable_mosaic.version = 11 : i64} {
  func.func @cosine_kernel(%arg0: i32, %arg1: memref<2x2x32xf32, #tpu.memory_space<vmem>>, %arg2: memref<2x2x32xf32, #tpu.memory_space<vmem>>, %arg3: memref<2x2x128xf32, #tpu.memory_space<vmem>>, %arg4: memref<2x1xf32, #tpu.memory_space<vmem>>) attributes {dimension_semantics = [#tpu.dimension_semantics<arbitrary>], iteration_bounds = array<i64: 1>, scalar_prefetch = 0 : i64, scratch_operands = 0 : i64, tpu.core_type = #tpu.core_type<tc>, window_params = [{pipeline_mode = #tpu.pipeline_mode<synchronous>, transform_indices = @transform_0, window_bounds = array<i64: 2, 2, 32>}, {pipeline_mode = #tpu.pipeline_mode<synchronous>, transform_indices = @transform_1, window_bounds = array<i64: 2, 2, 32>}, {pipeline_mode = #tpu.pipeline_mode<synchronous>, transform_indices = @transform_2, window_bounds = array<i64: 2, 2, 128>}, {pipeline_mode = #tpu.pipeline_mode<synchronous>, transform_indices = @transform_3, window_bounds = array<i64: 2, 1>}]} {
    %c0 = arith.constant 0 : index
    %c0_0 = arith.constant 0 : index
    %c0_1 = arith.constant 0 : index
    %0 = vector.load %arg1[%c0, %c0_0, %c0_1] : memref<2x2x32xf32, #tpu.memory_space<vmem>>, vector<2x2x32xf32>
    %c0_2 = arith.constant 0 : index
    %c0_3 = arith.constant 0 : index
    %c0_4 = arith.constant 0 : index
    %1 = vector.load %arg2[%c0_2, %c0_3, %c0_4] : memref<2x2x32xf32, #tpu.memory_space<vmem>>, vector<2x2x32xf32>
    %c0_5 = arith.constant 0 : index
    %c0_6 = arith.constant 0 : index
    %c0_7 = arith.constant 0 : index
    %2 = vector.load %arg3[%c0_5, %c0_6, %c0_7] : memref<2x2x128xf32, #tpu.memory_space<vmem>>, vector<2x2x128xf32>
    %3 = vector.extract_strided_slice %0 {offsets = [0, 0, 0], sizes = [1, 2, 32], strides = [1, 1, 1]} : vector<2x2x32xf32> to vector<1x2x32xf32>
    %4 = vector.shape_cast %3 : vector<1x2x32xf32> to vector<2x32xf32>
    %5 = vector.extract_strided_slice %0 {offsets = [1, 0, 0], sizes = [1, 2, 32], strides = [1, 1, 1]} : vector<2x2x32xf32> to vector<1x2x32xf32>
    %6 = vector.shape_cast %5 : vector<1x2x32xf32> to vector<2x32xf32>
    %7 = arith.mulf %4, %6 : vector<2x32xf32>
    %cst = arith.constant dense<0.000000e+00> : vector<2xf32>
    %8 = vector.multi_reduction <add>, %7, %cst [1] : vector<2x32xf32> to vector<2xf32>
    %9 = vector.shape_cast %8 : vector<2xf32> to vector<2x1xf32>
    %10 = vector.extract_strided_slice %1 {offsets = [0, 0, 0], sizes = [1, 2, 32], strides = [1, 1, 1]} : vector<2x2x32xf32> to vector<1x2x32xf32>
    %11 = vector.shape_cast %10 : vector<1x2x32xf32> to vector<2x32xf32>
    %12 = vector.extract_strided_slice %1 {offsets = [1, 0, 0], sizes = [1, 2, 32], strides = [1, 1, 1]} : vector<2x2x32xf32> to vector<1x2x32xf32>
    %13 = vector.shape_cast %12 : vector<1x2x32xf32> to vector<2x32xf32>
    %14 = arith.mulf %11, %13 : vector<2x32xf32>
    %cst_8 = arith.constant dense<0.000000e+00> : vector<2xf32>
    %15 = vector.multi_reduction <add>, %14, %cst_8 [1] : vector<2x32xf32> to vector<2xf32>
    %16 = vector.shape_cast %15 : vector<2xf32> to vector<2x1xf32>
    %17 = arith.addf %9, %16 : vector<2x1xf32>
    %18 = vector.extract_strided_slice %2 {offsets = [0, 0, 0], sizes = [1, 2, 128], strides = [1, 1, 1]} : vector<2x2x128xf32> to vector<1x2x128xf32>
    %19 = vector.shape_cast %18 : vector<1x2x128xf32> to vector<2x128xf32>
    %20 = vector.extract_strided_slice %2 {offsets = [1, 0, 0], sizes = [1, 2, 128], strides = [1, 1, 1]} : vector<2x2x128xf32> to vector<1x2x128xf32>
    %21 = vector.shape_cast %20 : vector<1x2x128xf32> to vector<2x128xf32>
    %22 = arith.mulf %19, %21 : vector<2x128xf32>
    %cst_9 = arith.constant dense<0.000000e+00> : vector<2xf32>
    %23 = vector.multi_reduction <add>, %22, %cst_9 [1] : vector<2x128xf32> to vector<2xf32>
    %24 = vector.shape_cast %23 : vector<2xf32> to vector<2x1xf32>
    %25 = arith.addf %17, %24 : vector<2x1xf32>
    %26 = vector.extract_strided_slice %0 {offsets = [0, 0, 0], sizes = [1, 2, 32], strides = [1, 1, 1]} : vector<2x2x32xf32> to vector<1x2x32xf32>
    %27 = vector.shape_cast %26 : vector<1x2x32xf32> to vector<2x32xf32>
    %28 = vector.extract_strided_slice %0 {offsets = [0, 0, 0], sizes = [1, 2, 32], strides = [1, 1, 1]} : vector<2x2x32xf32> to vector<1x2x32xf32>
    %29 = vector.shape_cast %28 : vector<1x2x32xf32> to vector<2x32xf32>
    %30 = arith.mulf %27, %29 : vector<2x32xf32>
    %cst_10 = arith.constant dense<0.000000e+00> : vector<2xf32>
    %31 = vector.multi_reduction <add>, %30, %cst_10 [1] : vector<2x32xf32> to vector<2xf32>
    %32 = vector.shape_cast %31 : vector<2xf32> to vector<2x1xf32>
    %33 = vector.extract_strided_slice %1 {offsets = [0, 0, 0], sizes = [1, 2, 32], strides = [1, 1, 1]} : vector<2x2x32xf32> to vector<1x2x32xf32>
    %34 = vector.shape_cast %33 : vector<1x2x32xf32> to vector<2x32xf32>
    %35 = vector.extract_strided_slice %1 {offsets = [0, 0, 0], sizes = [1, 2, 32], strides = [1, 1, 1]} : vector<2x2x32xf32> to vector<1x2x32xf32>
    %36 = vector.shape_cast %35 : vector<1x2x32xf32> to vector<2x32xf32>
    %37 = arith.mulf %34, %36 : vector<2x32xf32>
    %cst_11 = arith.constant dense<0.000000e+00> : vector<2xf32>
    %38 = vector.multi_reduction <add>, %37, %cst_11 [1] : vector<2x32xf32> to vector<2xf32>
    %39 = vector.shape_cast %38 : vector<2xf32> to vector<2x1xf32>
    %40 = arith.addf %32, %39 : vector<2x1xf32>
    %41 = vector.extract_strided_slice %2 {offsets = [0, 0, 0], sizes = [1, 2, 128], strides = [1, 1, 1]} : vector<2x2x128xf32> to vector<1x2x128xf32>
    %42 = vector.shape_cast %41 : vector<1x2x128xf32> to vector<2x128xf32>
    %43 = vector.extract_strided_slice %2 {offsets = [0, 0, 0], sizes = [1, 2, 128], strides = [1, 1, 1]} : vector<2x2x128xf32> to vector<1x2x128xf32>
    %44 = vector.shape_cast %43 : vector<1x2x128xf32> to vector<2x128xf32>
    %45 = arith.mulf %42, %44 : vector<2x128xf32>
    %cst_12 = arith.constant dense<0.000000e+00> : vector<2xf32>
    %46 = vector.multi_reduction <add>, %45, %cst_12 [1] : vector<2x128xf32> to vector<2xf32>
    %47 = vector.shape_cast %46 : vector<2xf32> to vector<2x1xf32>
    %48 = arith.addf %40, %47 : vector<2x1xf32>
    %49 = math.sqrt %48 : vector<2x1xf32>
    %50 = vector.extract_strided_slice %0 {offsets = [1, 0, 0], sizes = [1, 2, 32], strides = [1, 1, 1]} : vector<2x2x32xf32> to vector<1x2x32xf32>
    %51 = vector.shape_cast %50 : vector<1x2x32xf32> to vector<2x32xf32>
    %52 = vector.extract_strided_slice %0 {offsets = [1, 0, 0], sizes = [1, 2, 32], strides = [1, 1, 1]} : vector<2x2x32xf32> to vector<1x2x32xf32>
    %53 = vector.shape_cast %52 : vector<1x2x32xf32> to vector<2x32xf32>
    %54 = arith.mulf %51, %53 : vector<2x32xf32>
    %cst_13 = arith.constant dense<0.000000e+00> : vector<2xf32>
    %55 = vector.multi_reduction <add>, %54, %cst_13 [1] : vector<2x32xf32> to vector<2xf32>
    %56 = vector.shape_cast %55 : vector<2xf32> to vector<2x1xf32>
    %57 = vector.extract_strided_slice %1 {offsets = [1, 0, 0], sizes = [1, 2, 32], strides = [1, 1, 1]} : vector<2x2x32xf32> to vector<1x2x32xf32>
    %58 = vector.shape_cast %57 : vector<1x2x32xf32> to vector<2x32xf32>
    %59 = vector.extract_strided_slice %1 {offsets = [1, 0, 0], sizes = [1, 2, 32], strides = [1, 1, 1]} : vector<2x2x32xf32> to vector<1x2x32xf32>
    %60 = vector.shape_cast %59 : vector<1x2x32xf32> to vector<2x32xf32>
    %61 = arith.mulf %58, %60 : vector<2x32xf32>
    %cst_14 = arith.constant dense<0.000000e+00> : vector<2xf32>
    %62 = vector.multi_reduction <add>, %61, %cst_14 [1] : vector<2x32xf32> to vector<2xf32>
    %63 = vector.shape_cast %62 : vector<2xf32> to vector<2x1xf32>
    %64 = arith.addf %56, %63 : vector<2x1xf32>
    %65 = vector.extract_strided_slice %2 {offsets = [1, 0, 0], sizes = [1, 2, 128], strides = [1, 1, 1]} : vector<2x2x128xf32> to vector<1x2x128xf32>
    %66 = vector.shape_cast %65 : vector<1x2x128xf32> to vector<2x128xf32>
    %67 = vector.extract_strided_slice %2 {offsets = [1, 0, 0], sizes = [1, 2, 128], strides = [1, 1, 1]} : vector<2x2x128xf32> to vector<1x2x128xf32>
    %68 = vector.shape_cast %67 : vector<1x2x128xf32> to vector<2x128xf32>
    %69 = arith.mulf %66, %68 : vector<2x128xf32>
    %cst_15 = arith.constant dense<0.000000e+00> : vector<2xf32>
    %70 = vector.multi_reduction <add>, %69, %cst_15 [1] : vector<2x128xf32> to vector<2xf32>
    %71 = vector.shape_cast %70 : vector<2xf32> to vector<2x1xf32>
    %72 = arith.addf %64, %71 : vector<2x1xf32>
    %73 = math.sqrt %72 : vector<2x1xf32>
    %74 = arith.mulf %49, %73 : vector<2x1xf32>
    %cst_16 = arith.constant 9.99999997E-7 : f32
    %75 = vector.broadcast %cst_16 : f32 to vector<2x1xf32>
    %76 = arith.maximumf %74, %75 : vector<2x1xf32>
    %77 = arith.divf %25, %76 : vector<2x1xf32>
    %c0_17 = arith.constant 0 : index
    %c0_18 = arith.constant 0 : index
    %78 = vector.load %arg4[%c0_17, %c0_18] : memref<2x1xf32, #tpu.memory_space<vmem>>, vector<2x1xf32>
    tpu.vector_store %arg4[%c0_17, %c0_18], %77 {strides = array<i32>} : memref<2x1xf32, #tpu.memory_space<vmem>>, vector<2x1xf32>,
    return
  }
  func.func @transform_0(%arg0: i32) -> (i32, i32, i32) {
    %c0_i32 = arith.constant 0 : i32
    %c0_i32_0 = arith.constant 0 : i32
    %c0_i32_1 = arith.constant 0 : i32
    %c0_i32_2 = arith.constant 0 : i32
    return %c0_i32, %c0_i32_0, %c0_i32_1 : i32, i32, i32
  }
  func.func @transform_1(%arg0: i32) -> (i32, i32, i32) {
    %c0_i32 = arith.constant 0 : i32
    %c0_i32_0 = arith.constant 0 : i32
    %c0_i32_1 = arith.constant 0 : i32
    %c0_i32_2 = arith.constant 0 : i32
    return %c0_i32, %c0_i32_0, %c0_i32_1 : i32, i32, i32
  }
  func.func @transform_2(%arg0: i32) -> (i32, i32, i32) {
    %c0_i32 = arith.constant 0 : i32
    %c0_i32_0 = arith.constant 0 : i32
    %c0_i32_1 = arith.constant 0 : i32
    %c0_i32_2 = arith.constant 0 : i32
    return %c0_i32, %c0_i32_0, %c0_i32_1 : i32, i32, i32
  }
  func.func @transform_3(%arg0: i32) -> (i32, i32) {
    %c0_i32 = arith.constant 0 : i32
    %c0_i32_0 = arith.constant 0 : i32
    %c0_i32_1 = arith.constant 0 : i32
    return %c0_i32, %c0_i32_0 : i32, i32
  }
}

module attributes {stable_mosaic.version = 11 : i64} {
  func.func @branch_kernel(%arg0: i32, %arg1: memref<1x2x12x16xf32, #tpu.memory_space<vmem>>, %arg2: memref<1x2x2x32xf32, #tpu.memory_space<vmem>>, %arg3: memref<1x2x2x32xf32, #tpu.memory_space<vmem>>, %arg4: memref<4x16x32xf32, #tpu.memory_space<vmem>>, %arg5: memref<4x32x32xf32, #tpu.memory_space<vmem>>, %arg6: memref<4x1x32xf32, #tpu.memory_space<vmem>>, %arg7: memref<4x16x32xf32, #tpu.memory_space<vmem>>, %arg8: memref<4x32x32xf32, #tpu.memory_space<vmem>>, %arg9: memref<4x1x32xf32, #tpu.memory_space<vmem>>, %arg10: memref<16x640xf32, #tpu.memory_space<vmem>>, %arg11: memref<1x128xf32, #tpu.memory_space<vmem>>, %arg12: memref<1x2x32xf32, #tpu.memory_space<vmem>>, %arg13: memref<1x2x32xf32, #tpu.memory_space<vmem>>, %arg14: memref<1x2x128xf32, #tpu.memory_space<vmem>>) attributes {dimension_semantics = [#tpu.dimension_semantics<parallel>], iteration_bounds = array<i64: 2>, scalar_prefetch = 0 : i64, scratch_operands = 0 : i64, tpu.core_type = #tpu.core_type<tc>, window_params = [{transform_indices = @transform_0, window_bounds = array<i64: 1, 2, 12, 16>}, {transform_indices = @transform_1, window_bounds = array<i64: 1, 2, 2, 32>}, {transform_indices = @transform_2, window_bounds = array<i64: 1, 2, 2, 32>}, {pipeline_mode = #tpu.pipeline_mode<synchronous>, transform_indices = @transform_3, window_bounds = array<i64: 4, 16, 32>}, {pipeline_mode = #tpu.pipeline_mode<synchronous>, transform_indices = @transform_4, window_bounds = array<i64: 4, 32, 32>}, {pipeline_mode = #tpu.pipeline_mode<synchronous>, transform_indices = @transform_5, window_bounds = array<i64: 4, 1, 32>}, {pipeline_mode = #tpu.pipeline_mode<synchronous>, transform_indices = @transform_6, window_bounds = array<i64: 4, 16, 32>}, {pipeline_mode = #tpu.pipeline_mode<synchronous>, transform_indices = @transform_7, window_bounds = array<i64: 4, 32, 32>}, {pipeline_mode = #tpu.pipeline_mode<synchronous>, transform_indices = @transform_8, window_bounds = array<i64: 4, 1, 32>}, {pipeline_mode = #tpu.pipeline_mode<synchronous>, transform_indices = @transform_9, window_bounds = array<i64: 16, 640>}, {pipeline_mode = #tpu.pipeline_mode<synchronous>, transform_indices = @transform_10, window_bounds = array<i64: 1, 128>}, {transform_indices = @transform_11, window_bounds = array<i64: 1, 2, 32>}, {transform_indices = @transform_12, window_bounds = array<i64: 1, 2, 32>}, {transform_indices = @transform_13, window_bounds = array<i64: 1, 2, 128>}]} {
    %c0 = arith.constant 0 : index
    %c0_0 = arith.constant 0 : index
    %c0_1 = arith.constant 0 : index
    %c0_2 = arith.constant 0 : index
    %0 = vector.load %arg1[%c0, %c0_0, %c0_1, %c0_2] : memref<1x2x12x16xf32, #tpu.memory_space<vmem>>, vector<1x2x12x16xf32>
    %1 = vector.shape_cast %0 : vector<1x2x12x16xf32> to vector<2x12x16xf32>
    %c0_3 = arith.constant 0 : index
    %c0_4 = arith.constant 0 : index
    %c0_5 = arith.constant 0 : index
    %2 = vector.load %arg4[%c0_3, %c0_4, %c0_5] : memref<4x16x32xf32, #tpu.memory_space<vmem>>, vector<1x16x32xf32>
    %3 = vector.shape_cast %2 : vector<1x16x32xf32> to vector<16x32xf32>
    %cst = arith.constant dense<0.000000e+00> : vector<2x12x32xf32>
    %4 = tpu.matmul %1, %3, %cst {dimension_numbers = #tpu.dot_dimension_numbers<[2], [0], [0, 1], [1], [0, 0, 0, 1, 1, 1], [], []>} : vector<2x12x16xf32>, vector<16x32xf32>, vector<2x12x32xf32> -> vector<2x12x32xf32>
    %c1 = arith.constant 1 : index
    %c0_6 = arith.constant 0 : index
    %c0_7 = arith.constant 0 : index
    %5 = vector.load %arg4[%c1, %c0_6, %c0_7] : memref<4x16x32xf32, #tpu.memory_space<vmem>>, vector<1x16x32xf32>
    %6 = vector.shape_cast %5 : vector<1x16x32xf32> to vector<16x32xf32>
    %cst_8 = arith.constant dense<0.000000e+00> : vector<2x12x32xf32>
    %7 = tpu.matmul %1, %6, %cst_8 {dimension_numbers = #tpu.dot_dimension_numbers<[2], [0], [0, 1], [1], [0, 0, 0, 1, 1, 1], [], []>} : vector<2x12x16xf32>, vector<16x32xf32>, vector<2x12x32xf32> -> vector<2x12x32xf32>
    %c2 = arith.constant 2 : index
    %c0_9 = arith.constant 0 : index
    %c0_10 = arith.constant 0 : index
    %8 = vector.load %arg4[%c2, %c0_9, %c0_10] : memref<4x16x32xf32, #tpu.memory_space<vmem>>, vector<1x16x32xf32>
    %9 = vector.shape_cast %8 : vector<1x16x32xf32> to vector<16x32xf32>
    %cst_11 = arith.constant dense<0.000000e+00> : vector<2x12x32xf32>
    %10 = tpu.matmul %1, %9, %cst_11 {dimension_numbers = #tpu.dot_dimension_numbers<[2], [0], [0, 1], [1], [0, 0, 0, 1, 1, 1], [], []>} : vector<2x12x16xf32>, vector<16x32xf32>, vector<2x12x32xf32> -> vector<2x12x32xf32>
    %c3 = arith.constant 3 : index
    %c0_12 = arith.constant 0 : index
    %c0_13 = arith.constant 0 : index
    %11 = vector.load %arg4[%c3, %c0_12, %c0_13] : memref<4x16x32xf32, #tpu.memory_space<vmem>>, vector<1x16x32xf32>
    %12 = vector.shape_cast %11 : vector<1x16x32xf32> to vector<16x32xf32>
    %cst_14 = arith.constant dense<0.000000e+00> : vector<2x12x32xf32>
    %13 = tpu.matmul %1, %12, %cst_14 {dimension_numbers = #tpu.dot_dimension_numbers<[2], [0], [0, 1], [1], [0, 0, 0, 1, 1, 1], [], []>} : vector<2x12x16xf32>, vector<16x32xf32>, vector<2x12x32xf32> -> vector<2x12x32xf32>
    %c0_15 = arith.constant 0 : index
    %c0_16 = arith.constant 0 : index
    %c0_17 = arith.constant 0 : index
    %14 = vector.load %arg5[%c0_15, %c0_16, %c0_17] : memref<4x32x32xf32, #tpu.memory_space<vmem>>, vector<1x32x32xf32>
    %15 = vector.shape_cast %14 : vector<1x32x32xf32> to vector<32x32xf32>
    %c1_18 = arith.constant 1 : index
    %c0_19 = arith.constant 0 : index
    %c0_20 = arith.constant 0 : index
    %16 = vector.load %arg5[%c1_18, %c0_19, %c0_20] : memref<4x32x32xf32, #tpu.memory_space<vmem>>, vector<1x32x32xf32>
    %17 = vector.shape_cast %16 : vector<1x32x32xf32> to vector<32x32xf32>
    %c2_21 = arith.constant 2 : index
    %c0_22 = arith.constant 0 : index
    %c0_23 = arith.constant 0 : index
    %18 = vector.load %arg5[%c2_21, %c0_22, %c0_23] : memref<4x32x32xf32, #tpu.memory_space<vmem>>, vector<1x32x32xf32>
    %19 = vector.shape_cast %18 : vector<1x32x32xf32> to vector<32x32xf32>
    %c3_24 = arith.constant 3 : index
    %c0_25 = arith.constant 0 : index
    %c0_26 = arith.constant 0 : index
    %20 = vector.load %arg5[%c3_24, %c0_25, %c0_26] : memref<4x32x32xf32, #tpu.memory_space<vmem>>, vector<1x32x32xf32>
    %21 = vector.shape_cast %20 : vector<1x32x32xf32> to vector<32x32xf32>
    %c0_27 = arith.constant 0 : index
    %c0_28 = arith.constant 0 : index
    %c0_29 = arith.constant 0 : index
    %22 = vector.load %arg6[%c0_27, %c0_28, %c0_29] : memref<4x1x32xf32, #tpu.memory_space<vmem>>, vector<1x1x32xf32>
    %23 = vector.shape_cast %22 : vector<1x1x32xf32> to vector<1x32xf32>
    %c1_30 = arith.constant 1 : index
    %c0_31 = arith.constant 0 : index
    %c0_32 = arith.constant 0 : index
    %24 = vector.load %arg6[%c1_30, %c0_31, %c0_32] : memref<4x1x32xf32, #tpu.memory_space<vmem>>, vector<1x1x32xf32>
    %25 = vector.shape_cast %24 : vector<1x1x32xf32> to vector<1x32xf32>
    %c2_33 = arith.constant 2 : index
    %c0_34 = arith.constant 0 : index
    %c0_35 = arith.constant 0 : index
    %26 = vector.load %arg6[%c2_33, %c0_34, %c0_35] : memref<4x1x32xf32, #tpu.memory_space<vmem>>, vector<1x1x32xf32>
    %27 = vector.shape_cast %26 : vector<1x1x32xf32> to vector<1x32xf32>
    %c3_36 = arith.constant 3 : index
    %c0_37 = arith.constant 0 : index
    %c0_38 = arith.constant 0 : index
    %28 = vector.load %arg6[%c3_36, %c0_37, %c0_38] : memref<4x1x32xf32, #tpu.memory_space<vmem>>, vector<1x1x32xf32>
    %29 = vector.shape_cast %28 : vector<1x1x32xf32> to vector<1x32xf32>
    %c0_39 = arith.constant 0 : index
    %c0_40 = arith.constant 0 : index
    %c0_41 = arith.constant 0 : index
    %c0_42 = arith.constant 0 : index
    %30 = vector.load %arg2[%c0_39, %c0_40, %c0_41, %c0_42] : memref<1x2x2x32xf32, #tpu.memory_space<vmem>>, vector<1x2x2x32xf32>
    %31 = vector.shape_cast %30 : vector<1x2x2x32xf32> to vector<2x2x32xf32>
    %c0_43 = arith.constant 0 : index
    %c0_44 = arith.constant 0 : index
    %c0_45 = arith.constant 0 : index
    %c0_46 = arith.constant 0 : index
    %32 = vector.load %arg3[%c0_43, %c0_44, %c0_45, %c0_46] : memref<1x2x2x32xf32, #tpu.memory_space<vmem>>, vector<1x2x2x32xf32>
    %33 = vector.shape_cast %32 : vector<1x2x2x32xf32> to vector<2x2x32xf32>
    %34 = vector.extract_strided_slice %31 {offsets = [0, 0, 0], sizes = [1, 2, 32], strides = [1, 1, 1]} : vector<2x2x32xf32> to vector<1x2x32xf32>
    %35 = vector.shape_cast %34 : vector<1x2x32xf32> to vector<2x32xf32>
    %36 = vector.extract_strided_slice %33 {offsets = [0, 0, 0], sizes = [1, 2, 32], strides = [1, 1, 1]} : vector<2x2x32xf32> to vector<1x2x32xf32>
    %37 = vector.shape_cast %36 : vector<1x2x32xf32> to vector<2x32xf32>
    %38 = vector.extract_strided_slice %4 {offsets = [0, 0, 0], sizes = [2, 1, 32], strides = [1, 1, 1]} : vector<2x12x32xf32> to vector<2x1x32xf32>
    %39 = vector.shape_cast %38 : vector<2x1x32xf32> to vector<2x32xf32>
    %cst_47 = arith.constant dense<0.000000e+00> : vector<2x32xf32>
    %40 = tpu.matmul %35, %15, %cst_47 {dimension_numbers = #tpu.dot_dimension_numbers<[1], [0], [0], [1], [0, 0, 1, 1], [], []>} : vector<2x32xf32>, vector<32x32xf32>, vector<2x32xf32> -> vector<2x32xf32>
    %41 = arith.addf %39, %40 : vector<2x32xf32>
    %42 = vector.broadcast %23 : vector<1x32xf32> to vector<2x32xf32>
    %43 = arith.addf %41, %42 : vector<2x32xf32>
    %44 = arith.negf %43 : vector<2x32xf32>
    %45 = math.exp %44 : vector<2x32xf32>
    %cst_48 = arith.constant 1.000000e+00 : f32
    %46 = vector.broadcast %cst_48 : f32 to vector<2x32xf32>
    %47 = arith.addf %46, %45 : vector<2x32xf32>
    %48 = arith.divf %46, %47 : vector<2x32xf32>
    %49 = vector.extract_strided_slice %7 {offsets = [0, 0, 0], sizes = [2, 1, 32], strides = [1, 1, 1]} : vector<2x12x32xf32> to vector<2x1x32xf32>
    %50 = vector.shape_cast %49 : vector<2x1x32xf32> to vector<2x32xf32>
    %cst_49 = arith.constant dense<0.000000e+00> : vector<2x32xf32>
    %51 = tpu.matmul %35, %17, %cst_49 {dimension_numbers = #tpu.dot_dimension_numbers<[1], [0], [0], [1], [0, 0, 1, 1], [], []>} : vector<2x32xf32>, vector<32x32xf32>, vector<2x32xf32> -> vector<2x32xf32>
    %52 = arith.addf %50, %51 : vector<2x32xf32>
    %53 = vector.broadcast %25 : vector<1x32xf32> to vector<2x32xf32>
    %54 = arith.addf %52, %53 : vector<2x32xf32>
    %55 = arith.negf %54 : vector<2x32xf32>
    %56 = math.exp %55 : vector<2x32xf32>
    %cst_50 = arith.constant 1.000000e+00 : f32
    %57 = vector.broadcast %cst_50 : f32 to vector<2x32xf32>
    %58 = arith.addf %57, %56 : vector<2x32xf32>
    %59 = arith.divf %57, %58 : vector<2x32xf32>
    %60 = vector.extract_strided_slice %10 {offsets = [0, 0, 0], sizes = [2, 1, 32], strides = [1, 1, 1]} : vector<2x12x32xf32> to vector<2x1x32xf32>
    %61 = vector.shape_cast %60 : vector<2x1x32xf32> to vector<2x32xf32>
    %cst_51 = arith.constant dense<0.000000e+00> : vector<2x32xf32>
    %62 = tpu.matmul %35, %19, %cst_51 {dimension_numbers = #tpu.dot_dimension_numbers<[1], [0], [0], [1], [0, 0, 1, 1], [], []>} : vector<2x32xf32>, vector<32x32xf32>, vector<2x32xf32> -> vector<2x32xf32>
    %63 = arith.addf %61, %62 : vector<2x32xf32>
    %64 = vector.broadcast %27 : vector<1x32xf32> to vector<2x32xf32>
    %65 = arith.addf %63, %64 : vector<2x32xf32>
    %66 = math.tanh %65 : vector<2x32xf32>
    %67 = vector.extract_strided_slice %13 {offsets = [0, 0, 0], sizes = [2, 1, 32], strides = [1, 1, 1]} : vector<2x12x32xf32> to vector<2x1x32xf32>
    %68 = vector.shape_cast %67 : vector<2x1x32xf32> to vector<2x32xf32>
    %cst_52 = arith.constant dense<0.000000e+00> : vector<2x32xf32>
    %69 = tpu.matmul %35, %21, %cst_52 {dimension_numbers = #tpu.dot_dimension_numbers<[1], [0], [0], [1], [0, 0, 1, 1], [], []>} : vector<2x32xf32>, vector<32x32xf32>, vector<2x32xf32> -> vector<2x32xf32>
    %70 = arith.addf %68, %69 : vector<2x32xf32>
    %71 = vector.broadcast %29 : vector<1x32xf32> to vector<2x32xf32>
    %72 = arith.addf %70, %71 : vector<2x32xf32>
    %73 = arith.negf %72 : vector<2x32xf32>
    %74 = math.exp %73 : vector<2x32xf32>
    %cst_53 = arith.constant 1.000000e+00 : f32
    %75 = vector.broadcast %cst_53 : f32 to vector<2x32xf32>
    %76 = arith.addf %75, %74 : vector<2x32xf32>
    %77 = arith.divf %75, %76 : vector<2x32xf32>
    %78 = arith.mulf %59, %37 : vector<2x32xf32>
    %79 = arith.mulf %48, %66 : vector<2x32xf32>
    %80 = arith.addf %78, %79 : vector<2x32xf32>
    %81 = math.tanh %80 : vector<2x32xf32>
    %82 = arith.mulf %77, %81 : vector<2x32xf32>
    %83 = vector.extract_strided_slice %4 {offsets = [0, 1, 0], sizes = [2, 1, 32], strides = [1, 1, 1]} : vector<2x12x32xf32> to vector<2x1x32xf32>
    %84 = vector.shape_cast %83 : vector<2x1x32xf32> to vector<2x32xf32>
    %cst_54 = arith.constant dense<0.000000e+00> : vector<2x32xf32>
    %85 = tpu.matmul %82, %15, %cst_54 {dimension_numbers = #tpu.dot_dimension_numbers<[1], [0], [0], [1], [0, 0, 1, 1], [], []>} : vector<2x32xf32>, vector<32x32xf32>, vector<2x32xf32> -> vector<2x32xf32>
    %86 = arith.addf %84, %85 : vector<2x32xf32>
    %87 = vector.broadcast %23 : vector<1x32xf32> to vector<2x32xf32>
    %88 = arith.addf %86, %87 : vector<2x32xf32>
    %89 = arith.negf %88 : vector<2x32xf32>
    %90 = math.exp %89 : vector<2x32xf32>
    %cst_55 = arith.constant 1.000000e+00 : f32
    %91 = vector.broadcast %cst_55 : f32 to vector<2x32xf32>
    %92 = arith.addf %91, %90 : vector<2x32xf32>
    %93 = arith.divf %91, %92 : vector<2x32xf32>
    %94 = vector.extract_strided_slice %7 {offsets = [0, 1, 0], sizes = [2, 1, 32], strides = [1, 1, 1]} : vector<2x12x32xf32> to vector<2x1x32xf32>
    %95 = vector.shape_cast %94 : vector<2x1x32xf32> to vector<2x32xf32>
    %cst_56 = arith.constant dense<0.000000e+00> : vector<2x32xf32>
    %96 = tpu.matmul %82, %17, %cst_56 {dimension_numbers = #tpu.dot_dimension_numbers<[1], [0], [0], [1], [0, 0, 1, 1], [], []>} : vector<2x32xf32>, vector<32x32xf32>, vector<2x32xf32> -> vector<2x32xf32>
    %97 = arith.addf %95, %96 : vector<2x32xf32>
    %98 = vector.broadcast %25 : vector<1x32xf32> to vector<2x32xf32>
    %99 = arith.addf %97, %98 : vector<2x32xf32>
    %100 = arith.negf %99 : vector<2x32xf32>
    %101 = math.exp %100 : vector<2x32xf32>
    %cst_57 = arith.constant 1.000000e+00 : f32
    %102 = vector.broadcast %cst_57 : f32 to vector<2x32xf32>
    %103 = arith.addf %102, %101 : vector<2x32xf32>
    %104 = arith.divf %102, %103 : vector<2x32xf32>
    %105 = vector.extract_strided_slice %10 {offsets = [0, 1, 0], sizes = [2, 1, 32], strides = [1, 1, 1]} : vector<2x12x32xf32> to vector<2x1x32xf32>
    %106 = vector.shape_cast %105 : vector<2x1x32xf32> to vector<2x32xf32>
    %cst_58 = arith.constant dense<0.000000e+00> : vector<2x32xf32>
    %107 = tpu.matmul %82, %19, %cst_58 {dimension_numbers = #tpu.dot_dimension_numbers<[1], [0], [0], [1], [0, 0, 1, 1], [], []>} : vector<2x32xf32>, vector<32x32xf32>, vector<2x32xf32> -> vector<2x32xf32>
    %108 = arith.addf %106, %107 : vector<2x32xf32>
    %109 = vector.broadcast %27 : vector<1x32xf32> to vector<2x32xf32>
    %110 = arith.addf %108, %109 : vector<2x32xf32>
    %111 = math.tanh %110 : vector<2x32xf32>
    %112 = vector.extract_strided_slice %13 {offsets = [0, 1, 0], sizes = [2, 1, 32], strides = [1, 1, 1]} : vector<2x12x32xf32> to vector<2x1x32xf32>
    %113 = vector.shape_cast %112 : vector<2x1x32xf32> to vector<2x32xf32>
    %cst_59 = arith.constant dense<0.000000e+00> : vector<2x32xf32>
    %114 = tpu.matmul %82, %21, %cst_59 {dimension_numbers = #tpu.dot_dimension_numbers<[1], [0], [0], [1], [0, 0, 1, 1], [], []>} : vector<2x32xf32>, vector<32x32xf32>, vector<2x32xf32> -> vector<2x32xf32>
    %115 = arith.addf %113, %114 : vector<2x32xf32>
    %116 = vector.broadcast %29 : vector<1x32xf32> to vector<2x32xf32>
    %117 = arith.addf %115, %116 : vector<2x32xf32>
    %118 = arith.negf %117 : vector<2x32xf32>
    %119 = math.exp %118 : vector<2x32xf32>
    %cst_60 = arith.constant 1.000000e+00 : f32
    %120 = vector.broadcast %cst_60 : f32 to vector<2x32xf32>
    %121 = arith.addf %120, %119 : vector<2x32xf32>
    %122 = arith.divf %120, %121 : vector<2x32xf32>
    %123 = arith.mulf %104, %80 : vector<2x32xf32>
    %124 = arith.mulf %93, %111 : vector<2x32xf32>
    %125 = arith.addf %123, %124 : vector<2x32xf32>
    %126 = math.tanh %125 : vector<2x32xf32>
    %127 = arith.mulf %122, %126 : vector<2x32xf32>
    %128 = vector.extract_strided_slice %4 {offsets = [0, 2, 0], sizes = [2, 1, 32], strides = [1, 1, 1]} : vector<2x12x32xf32> to vector<2x1x32xf32>
    %129 = vector.shape_cast %128 : vector<2x1x32xf32> to vector<2x32xf32>
    %cst_61 = arith.constant dense<0.000000e+00> : vector<2x32xf32>
    %130 = tpu.matmul %127, %15, %cst_61 {dimension_numbers = #tpu.dot_dimension_numbers<[1], [0], [0], [1], [0, 0, 1, 1], [], []>} : vector<2x32xf32>, vector<32x32xf32>, vector<2x32xf32> -> vector<2x32xf32>
    %131 = arith.addf %129, %130 : vector<2x32xf32>
    %132 = vector.broadcast %23 : vector<1x32xf32> to vector<2x32xf32>
    %133 = arith.addf %131, %132 : vector<2x32xf32>
    %134 = arith.negf %133 : vector<2x32xf32>
    %135 = math.exp %134 : vector<2x32xf32>
    %cst_62 = arith.constant 1.000000e+00 : f32
    %136 = vector.broadcast %cst_62 : f32 to vector<2x32xf32>
    %137 = arith.addf %136, %135 : vector<2x32xf32>
    %138 = arith.divf %136, %137 : vector<2x32xf32>
    %139 = vector.extract_strided_slice %7 {offsets = [0, 2, 0], sizes = [2, 1, 32], strides = [1, 1, 1]} : vector<2x12x32xf32> to vector<2x1x32xf32>
    %140 = vector.shape_cast %139 : vector<2x1x32xf32> to vector<2x32xf32>
    %cst_63 = arith.constant dense<0.000000e+00> : vector<2x32xf32>
    %141 = tpu.matmul %127, %17, %cst_63 {dimension_numbers = #tpu.dot_dimension_numbers<[1], [0], [0], [1], [0, 0, 1, 1], [], []>} : vector<2x32xf32>, vector<32x32xf32>, vector<2x32xf32> -> vector<2x32xf32>
    %142 = arith.addf %140, %141 : vector<2x32xf32>
    %143 = vector.broadcast %25 : vector<1x32xf32> to vector<2x32xf32>
    %144 = arith.addf %142, %143 : vector<2x32xf32>
    %145 = arith.negf %144 : vector<2x32xf32>
    %146 = math.exp %145 : vector<2x32xf32>
    %cst_64 = arith.constant 1.000000e+00 : f32
    %147 = vector.broadcast %cst_64 : f32 to vector<2x32xf32>
    %148 = arith.addf %147, %146 : vector<2x32xf32>
    %149 = arith.divf %147, %148 : vector<2x32xf32>
    %150 = vector.extract_strided_slice %10 {offsets = [0, 2, 0], sizes = [2, 1, 32], strides = [1, 1, 1]} : vector<2x12x32xf32> to vector<2x1x32xf32>
    %151 = vector.shape_cast %150 : vector<2x1x32xf32> to vector<2x32xf32>
    %cst_65 = arith.constant dense<0.000000e+00> : vector<2x32xf32>
    %152 = tpu.matmul %127, %19, %cst_65 {dimension_numbers = #tpu.dot_dimension_numbers<[1], [0], [0], [1], [0, 0, 1, 1], [], []>} : vector<2x32xf32>, vector<32x32xf32>, vector<2x32xf32> -> vector<2x32xf32>
    %153 = arith.addf %151, %152 : vector<2x32xf32>
    %154 = vector.broadcast %27 : vector<1x32xf32> to vector<2x32xf32>
    %155 = arith.addf %153, %154 : vector<2x32xf32>
    %156 = math.tanh %155 : vector<2x32xf32>
    %157 = vector.extract_strided_slice %13 {offsets = [0, 2, 0], sizes = [2, 1, 32], strides = [1, 1, 1]} : vector<2x12x32xf32> to vector<2x1x32xf32>
    %158 = vector.shape_cast %157 : vector<2x1x32xf32> to vector<2x32xf32>
    %cst_66 = arith.constant dense<0.000000e+00> : vector<2x32xf32>
    %159 = tpu.matmul %127, %21, %cst_66 {dimension_numbers = #tpu.dot_dimension_numbers<[1], [0], [0], [1], [0, 0, 1, 1], [], []>} : vector<2x32xf32>, vector<32x32xf32>, vector<2x32xf32> -> vector<2x32xf32>
    %160 = arith.addf %158, %159 : vector<2x32xf32>
    %161 = vector.broadcast %29 : vector<1x32xf32> to vector<2x32xf32>
    %162 = arith.addf %160, %161 : vector<2x32xf32>
    %163 = arith.negf %162 : vector<2x32xf32>
    %164 = math.exp %163 : vector<2x32xf32>
    %cst_67 = arith.constant 1.000000e+00 : f32
    %165 = vector.broadcast %cst_67 : f32 to vector<2x32xf32>
    %166 = arith.addf %165, %164 : vector<2x32xf32>
    %167 = arith.divf %165, %166 : vector<2x32xf32>
    %168 = arith.mulf %149, %125 : vector<2x32xf32>
    %169 = arith.mulf %138, %156 : vector<2x32xf32>
    %170 = arith.addf %168, %169 : vector<2x32xf32>
    %171 = math.tanh %170 : vector<2x32xf32>
    %172 = arith.mulf %167, %171 : vector<2x32xf32>
    %173 = vector.extract_strided_slice %4 {offsets = [0, 3, 0], sizes = [2, 1, 32], strides = [1, 1, 1]} : vector<2x12x32xf32> to vector<2x1x32xf32>
    %174 = vector.shape_cast %173 : vector<2x1x32xf32> to vector<2x32xf32>
    %cst_68 = arith.constant dense<0.000000e+00> : vector<2x32xf32>
    %175 = tpu.matmul %172, %15, %cst_68 {dimension_numbers = #tpu.dot_dimension_numbers<[1], [0], [0], [1], [0, 0, 1, 1], [], []>} : vector<2x32xf32>, vector<32x32xf32>, vector<2x32xf32> -> vector<2x32xf32>
    %176 = arith.addf %174, %175 : vector<2x32xf32>
    %177 = vector.broadcast %23 : vector<1x32xf32> to vector<2x32xf32>
    %178 = arith.addf %176, %177 : vector<2x32xf32>
    %179 = arith.negf %178 : vector<2x32xf32>
    %180 = math.exp %179 : vector<2x32xf32>
    %cst_69 = arith.constant 1.000000e+00 : f32
    %181 = vector.broadcast %cst_69 : f32 to vector<2x32xf32>
    %182 = arith.addf %181, %180 : vector<2x32xf32>
    %183 = arith.divf %181, %182 : vector<2x32xf32>
    %184 = vector.extract_strided_slice %7 {offsets = [0, 3, 0], sizes = [2, 1, 32], strides = [1, 1, 1]} : vector<2x12x32xf32> to vector<2x1x32xf32>
    %185 = vector.shape_cast %184 : vector<2x1x32xf32> to vector<2x32xf32>
    %cst_70 = arith.constant dense<0.000000e+00> : vector<2x32xf32>
    %186 = tpu.matmul %172, %17, %cst_70 {dimension_numbers = #tpu.dot_dimension_numbers<[1], [0], [0], [1], [0, 0, 1, 1], [], []>} : vector<2x32xf32>, vector<32x32xf32>, vector<2x32xf32> -> vector<2x32xf32>
    %187 = arith.addf %185, %186 : vector<2x32xf32>
    %188 = vector.broadcast %25 : vector<1x32xf32> to vector<2x32xf32>
    %189 = arith.addf %187, %188 : vector<2x32xf32>
    %190 = arith.negf %189 : vector<2x32xf32>
    %191 = math.exp %190 : vector<2x32xf32>
    %cst_71 = arith.constant 1.000000e+00 : f32
    %192 = vector.broadcast %cst_71 : f32 to vector<2x32xf32>
    %193 = arith.addf %192, %191 : vector<2x32xf32>
    %194 = arith.divf %192, %193 : vector<2x32xf32>
    %195 = vector.extract_strided_slice %10 {offsets = [0, 3, 0], sizes = [2, 1, 32], strides = [1, 1, 1]} : vector<2x12x32xf32> to vector<2x1x32xf32>
    %196 = vector.shape_cast %195 : vector<2x1x32xf32> to vector<2x32xf32>
    %cst_72 = arith.constant dense<0.000000e+00> : vector<2x32xf32>
    %197 = tpu.matmul %172, %19, %cst_72 {dimension_numbers = #tpu.dot_dimension_numbers<[1], [0], [0], [1], [0, 0, 1, 1], [], []>} : vector<2x32xf32>, vector<32x32xf32>, vector<2x32xf32> -> vector<2x32xf32>
    %198 = arith.addf %196, %197 : vector<2x32xf32>
    %199 = vector.broadcast %27 : vector<1x32xf32> to vector<2x32xf32>
    %200 = arith.addf %198, %199 : vector<2x32xf32>
    %201 = math.tanh %200 : vector<2x32xf32>
    %202 = vector.extract_strided_slice %13 {offsets = [0, 3, 0], sizes = [2, 1, 32], strides = [1, 1, 1]} : vector<2x12x32xf32> to vector<2x1x32xf32>
    %203 = vector.shape_cast %202 : vector<2x1x32xf32> to vector<2x32xf32>
    %cst_73 = arith.constant dense<0.000000e+00> : vector<2x32xf32>
    %204 = tpu.matmul %172, %21, %cst_73 {dimension_numbers = #tpu.dot_dimension_numbers<[1], [0], [0], [1], [0, 0, 1, 1], [], []>} : vector<2x32xf32>, vector<32x32xf32>, vector<2x32xf32> -> vector<2x32xf32>
    %205 = arith.addf %203, %204 : vector<2x32xf32>
    %206 = vector.broadcast %29 : vector<1x32xf32> to vector<2x32xf32>
    %207 = arith.addf %205, %206 : vector<2x32xf32>
    %208 = arith.negf %207 : vector<2x32xf32>
    %209 = math.exp %208 : vector<2x32xf32>
    %cst_74 = arith.constant 1.000000e+00 : f32
    %210 = vector.broadcast %cst_74 : f32 to vector<2x32xf32>
    %211 = arith.addf %210, %209 : vector<2x32xf32>
    %212 = arith.divf %210, %211 : vector<2x32xf32>
    %213 = arith.mulf %194, %170 : vector<2x32xf32>
    %214 = arith.mulf %183, %201 : vector<2x32xf32>
    %215 = arith.addf %213, %214 : vector<2x32xf32>
    %216 = math.tanh %215 : vector<2x32xf32>
    %217 = arith.mulf %212, %216 : vector<2x32xf32>
    %218 = vector.extract_strided_slice %4 {offsets = [0, 4, 0], sizes = [2, 1, 32], strides = [1, 1, 1]} : vector<2x12x32xf32> to vector<2x1x32xf32>
    %219 = vector.shape_cast %218 : vector<2x1x32xf32> to vector<2x32xf32>
    %cst_75 = arith.constant dense<0.000000e+00> : vector<2x32xf32>
    %220 = tpu.matmul %217, %15, %cst_75 {dimension_numbers = #tpu.dot_dimension_numbers<[1], [0], [0], [1], [0, 0, 1, 1], [], []>} : vector<2x32xf32>, vector<32x32xf32>, vector<2x32xf32> -> vector<2x32xf32>
    %221 = arith.addf %219, %220 : vector<2x32xf32>
    %222 = vector.broadcast %23 : vector<1x32xf32> to vector<2x32xf32>
    %223 = arith.addf %221, %222 : vector<2x32xf32>
    %224 = arith.negf %223 : vector<2x32xf32>
    %225 = math.exp %224 : vector<2x32xf32>
    %cst_76 = arith.constant 1.000000e+00 : f32
    %226 = vector.broadcast %cst_76 : f32 to vector<2x32xf32>
    %227 = arith.addf %226, %225 : vector<2x32xf32>
    %228 = arith.divf %226, %227 : vector<2x32xf32>
    %229 = vector.extract_strided_slice %7 {offsets = [0, 4, 0], sizes = [2, 1, 32], strides = [1, 1, 1]} : vector<2x12x32xf32> to vector<2x1x32xf32>
    %230 = vector.shape_cast %229 : vector<2x1x32xf32> to vector<2x32xf32>
    %cst_77 = arith.constant dense<0.000000e+00> : vector<2x32xf32>
    %231 = tpu.matmul %217, %17, %cst_77 {dimension_numbers = #tpu.dot_dimension_numbers<[1], [0], [0], [1], [0, 0, 1, 1], [], []>} : vector<2x32xf32>, vector<32x32xf32>, vector<2x32xf32> -> vector<2x32xf32>
    %232 = arith.addf %230, %231 : vector<2x32xf32>
    %233 = vector.broadcast %25 : vector<1x32xf32> to vector<2x32xf32>
    %234 = arith.addf %232, %233 : vector<2x32xf32>
    %235 = arith.negf %234 : vector<2x32xf32>
    %236 = math.exp %235 : vector<2x32xf32>
    %cst_78 = arith.constant 1.000000e+00 : f32
    %237 = vector.broadcast %cst_78 : f32 to vector<2x32xf32>
    %238 = arith.addf %237, %236 : vector<2x32xf32>
    %239 = arith.divf %237, %238 : vector<2x32xf32>
    %240 = vector.extract_strided_slice %10 {offsets = [0, 4, 0], sizes = [2, 1, 32], strides = [1, 1, 1]} : vector<2x12x32xf32> to vector<2x1x32xf32>
    %241 = vector.shape_cast %240 : vector<2x1x32xf32> to vector<2x32xf32>
    %cst_79 = arith.constant dense<0.000000e+00> : vector<2x32xf32>
    %242 = tpu.matmul %217, %19, %cst_79 {dimension_numbers = #tpu.dot_dimension_numbers<[1], [0], [0], [1], [0, 0, 1, 1], [], []>} : vector<2x32xf32>, vector<32x32xf32>, vector<2x32xf32> -> vector<2x32xf32>
    %243 = arith.addf %241, %242 : vector<2x32xf32>
    %244 = vector.broadcast %27 : vector<1x32xf32> to vector<2x32xf32>
    %245 = arith.addf %243, %244 : vector<2x32xf32>
    %246 = math.tanh %245 : vector<2x32xf32>
    %247 = vector.extract_strided_slice %13 {offsets = [0, 4, 0], sizes = [2, 1, 32], strides = [1, 1, 1]} : vector<2x12x32xf32> to vector<2x1x32xf32>
    %248 = vector.shape_cast %247 : vector<2x1x32xf32> to vector<2x32xf32>
    %cst_80 = arith.constant dense<0.000000e+00> : vector<2x32xf32>
    %249 = tpu.matmul %217, %21, %cst_80 {dimension_numbers = #tpu.dot_dimension_numbers<[1], [0], [0], [1], [0, 0, 1, 1], [], []>} : vector<2x32xf32>, vector<32x32xf32>, vector<2x32xf32> -> vector<2x32xf32>
    %250 = arith.addf %248, %249 : vector<2x32xf32>
    %251 = vector.broadcast %29 : vector<1x32xf32> to vector<2x32xf32>
    %252 = arith.addf %250, %251 : vector<2x32xf32>
    %253 = arith.negf %252 : vector<2x32xf32>
    %254 = math.exp %253 : vector<2x32xf32>
    %cst_81 = arith.constant 1.000000e+00 : f32
    %255 = vector.broadcast %cst_81 : f32 to vector<2x32xf32>
    %256 = arith.addf %255, %254 : vector<2x32xf32>
    %257 = arith.divf %255, %256 : vector<2x32xf32>
    %258 = arith.mulf %239, %215 : vector<2x32xf32>
    %259 = arith.mulf %228, %246 : vector<2x32xf32>
    %260 = arith.addf %258, %259 : vector<2x32xf32>
    %261 = math.tanh %260 : vector<2x32xf32>
    %262 = arith.mulf %257, %261 : vector<2x32xf32>
    %263 = vector.extract_strided_slice %4 {offsets = [0, 5, 0], sizes = [2, 1, 32], strides = [1, 1, 1]} : vector<2x12x32xf32> to vector<2x1x32xf32>
    %264 = vector.shape_cast %263 : vector<2x1x32xf32> to vector<2x32xf32>
    %cst_82 = arith.constant dense<0.000000e+00> : vector<2x32xf32>
    %265 = tpu.matmul %262, %15, %cst_82 {dimension_numbers = #tpu.dot_dimension_numbers<[1], [0], [0], [1], [0, 0, 1, 1], [], []>} : vector<2x32xf32>, vector<32x32xf32>, vector<2x32xf32> -> vector<2x32xf32>
    %266 = arith.addf %264, %265 : vector<2x32xf32>
    %267 = vector.broadcast %23 : vector<1x32xf32> to vector<2x32xf32>
    %268 = arith.addf %266, %267 : vector<2x32xf32>
    %269 = arith.negf %268 : vector<2x32xf32>
    %270 = math.exp %269 : vector<2x32xf32>
    %cst_83 = arith.constant 1.000000e+00 : f32
    %271 = vector.broadcast %cst_83 : f32 to vector<2x32xf32>
    %272 = arith.addf %271, %270 : vector<2x32xf32>
    %273 = arith.divf %271, %272 : vector<2x32xf32>
    %274 = vector.extract_strided_slice %7 {offsets = [0, 5, 0], sizes = [2, 1, 32], strides = [1, 1, 1]} : vector<2x12x32xf32> to vector<2x1x32xf32>
    %275 = vector.shape_cast %274 : vector<2x1x32xf32> to vector<2x32xf32>
    %cst_84 = arith.constant dense<0.000000e+00> : vector<2x32xf32>
    %276 = tpu.matmul %262, %17, %cst_84 {dimension_numbers = #tpu.dot_dimension_numbers<[1], [0], [0], [1], [0, 0, 1, 1], [], []>} : vector<2x32xf32>, vector<32x32xf32>, vector<2x32xf32> -> vector<2x32xf32>
    %277 = arith.addf %275, %276 : vector<2x32xf32>
    %278 = vector.broadcast %25 : vector<1x32xf32> to vector<2x32xf32>
    %279 = arith.addf %277, %278 : vector<2x32xf32>
    %280 = arith.negf %279 : vector<2x32xf32>
    %281 = math.exp %280 : vector<2x32xf32>
    %cst_85 = arith.constant 1.000000e+00 : f32
    %282 = vector.broadcast %cst_85 : f32 to vector<2x32xf32>
    %283 = arith.addf %282, %281 : vector<2x32xf32>
    %284 = arith.divf %282, %283 : vector<2x32xf32>
    %285 = vector.extract_strided_slice %10 {offsets = [0, 5, 0], sizes = [2, 1, 32], strides = [1, 1, 1]} : vector<2x12x32xf32> to vector<2x1x32xf32>
    %286 = vector.shape_cast %285 : vector<2x1x32xf32> to vector<2x32xf32>
    %cst_86 = arith.constant dense<0.000000e+00> : vector<2x32xf32>
    %287 = tpu.matmul %262, %19, %cst_86 {dimension_numbers = #tpu.dot_dimension_numbers<[1], [0], [0], [1], [0, 0, 1, 1], [], []>} : vector<2x32xf32>, vector<32x32xf32>, vector<2x32xf32> -> vector<2x32xf32>
    %288 = arith.addf %286, %287 : vector<2x32xf32>
    %289 = vector.broadcast %27 : vector<1x32xf32> to vector<2x32xf32>
    %290 = arith.addf %288, %289 : vector<2x32xf32>
    %291 = math.tanh %290 : vector<2x32xf32>
    %292 = vector.extract_strided_slice %13 {offsets = [0, 5, 0], sizes = [2, 1, 32], strides = [1, 1, 1]} : vector<2x12x32xf32> to vector<2x1x32xf32>
    %293 = vector.shape_cast %292 : vector<2x1x32xf32> to vector<2x32xf32>
    %cst_87 = arith.constant dense<0.000000e+00> : vector<2x32xf32>
    %294 = tpu.matmul %262, %21, %cst_87 {dimension_numbers = #tpu.dot_dimension_numbers<[1], [0], [0], [1], [0, 0, 1, 1], [], []>} : vector<2x32xf32>, vector<32x32xf32>, vector<2x32xf32> -> vector<2x32xf32>
    %295 = arith.addf %293, %294 : vector<2x32xf32>
    %296 = vector.broadcast %29 : vector<1x32xf32> to vector<2x32xf32>
    %297 = arith.addf %295, %296 : vector<2x32xf32>
    %298 = arith.negf %297 : vector<2x32xf32>
    %299 = math.exp %298 : vector<2x32xf32>
    %cst_88 = arith.constant 1.000000e+00 : f32
    %300 = vector.broadcast %cst_88 : f32 to vector<2x32xf32>
    %301 = arith.addf %300, %299 : vector<2x32xf32>
    %302 = arith.divf %300, %301 : vector<2x32xf32>
    %303 = arith.mulf %284, %260 : vector<2x32xf32>
    %304 = arith.mulf %273, %291 : vector<2x32xf32>
    %305 = arith.addf %303, %304 : vector<2x32xf32>
    %306 = math.tanh %305 : vector<2x32xf32>
    %307 = arith.mulf %302, %306 : vector<2x32xf32>
    %308 = vector.extract_strided_slice %4 {offsets = [0, 6, 0], sizes = [2, 1, 32], strides = [1, 1, 1]} : vector<2x12x32xf32> to vector<2x1x32xf32>
    %309 = vector.shape_cast %308 : vector<2x1x32xf32> to vector<2x32xf32>
    %cst_89 = arith.constant dense<0.000000e+00> : vector<2x32xf32>
    %310 = tpu.matmul %307, %15, %cst_89 {dimension_numbers = #tpu.dot_dimension_numbers<[1], [0], [0], [1], [0, 0, 1, 1], [], []>} : vector<2x32xf32>, vector<32x32xf32>, vector<2x32xf32> -> vector<2x32xf32>
    %311 = arith.addf %309, %310 : vector<2x32xf32>
    %312 = vector.broadcast %23 : vector<1x32xf32> to vector<2x32xf32>
    %313 = arith.addf %311, %312 : vector<2x32xf32>
    %314 = arith.negf %313 : vector<2x32xf32>
    %315 = math.exp %314 : vector<2x32xf32>
    %cst_90 = arith.constant 1.000000e+00 : f32
    %316 = vector.broadcast %cst_90 : f32 to vector<2x32xf32>
    %317 = arith.addf %316, %315 : vector<2x32xf32>
    %318 = arith.divf %316, %317 : vector<2x32xf32>
    %319 = vector.extract_strided_slice %7 {offsets = [0, 6, 0], sizes = [2, 1, 32], strides = [1, 1, 1]} : vector<2x12x32xf32> to vector<2x1x32xf32>
    %320 = vector.shape_cast %319 : vector<2x1x32xf32> to vector<2x32xf32>
    %cst_91 = arith.constant dense<0.000000e+00> : vector<2x32xf32>
    %321 = tpu.matmul %307, %17, %cst_91 {dimension_numbers = #tpu.dot_dimension_numbers<[1], [0], [0], [1], [0, 0, 1, 1], [], []>} : vector<2x32xf32>, vector<32x32xf32>, vector<2x32xf32> -> vector<2x32xf32>
    %322 = arith.addf %320, %321 : vector<2x32xf32>
    %323 = vector.broadcast %25 : vector<1x32xf32> to vector<2x32xf32>
    %324 = arith.addf %322, %323 : vector<2x32xf32>
    %325 = arith.negf %324 : vector<2x32xf32>
    %326 = math.exp %325 : vector<2x32xf32>
    %cst_92 = arith.constant 1.000000e+00 : f32
    %327 = vector.broadcast %cst_92 : f32 to vector<2x32xf32>
    %328 = arith.addf %327, %326 : vector<2x32xf32>
    %329 = arith.divf %327, %328 : vector<2x32xf32>
    %330 = vector.extract_strided_slice %10 {offsets = [0, 6, 0], sizes = [2, 1, 32], strides = [1, 1, 1]} : vector<2x12x32xf32> to vector<2x1x32xf32>
    %331 = vector.shape_cast %330 : vector<2x1x32xf32> to vector<2x32xf32>
    %cst_93 = arith.constant dense<0.000000e+00> : vector<2x32xf32>
    %332 = tpu.matmul %307, %19, %cst_93 {dimension_numbers = #tpu.dot_dimension_numbers<[1], [0], [0], [1], [0, 0, 1, 1], [], []>} : vector<2x32xf32>, vector<32x32xf32>, vector<2x32xf32> -> vector<2x32xf32>
    %333 = arith.addf %331, %332 : vector<2x32xf32>
    %334 = vector.broadcast %27 : vector<1x32xf32> to vector<2x32xf32>
    %335 = arith.addf %333, %334 : vector<2x32xf32>
    %336 = math.tanh %335 : vector<2x32xf32>
    %337 = vector.extract_strided_slice %13 {offsets = [0, 6, 0], sizes = [2, 1, 32], strides = [1, 1, 1]} : vector<2x12x32xf32> to vector<2x1x32xf32>
    %338 = vector.shape_cast %337 : vector<2x1x32xf32> to vector<2x32xf32>
    %cst_94 = arith.constant dense<0.000000e+00> : vector<2x32xf32>
    %339 = tpu.matmul %307, %21, %cst_94 {dimension_numbers = #tpu.dot_dimension_numbers<[1], [0], [0], [1], [0, 0, 1, 1], [], []>} : vector<2x32xf32>, vector<32x32xf32>, vector<2x32xf32> -> vector<2x32xf32>
    %340 = arith.addf %338, %339 : vector<2x32xf32>
    %341 = vector.broadcast %29 : vector<1x32xf32> to vector<2x32xf32>
    %342 = arith.addf %340, %341 : vector<2x32xf32>
    %343 = arith.negf %342 : vector<2x32xf32>
    %344 = math.exp %343 : vector<2x32xf32>
    %cst_95 = arith.constant 1.000000e+00 : f32
    %345 = vector.broadcast %cst_95 : f32 to vector<2x32xf32>
    %346 = arith.addf %345, %344 : vector<2x32xf32>
    %347 = arith.divf %345, %346 : vector<2x32xf32>
    %348 = arith.mulf %329, %305 : vector<2x32xf32>
    %349 = arith.mulf %318, %336 : vector<2x32xf32>
    %350 = arith.addf %348, %349 : vector<2x32xf32>
    %351 = math.tanh %350 : vector<2x32xf32>
    %352 = arith.mulf %347, %351 : vector<2x32xf32>
    %353 = vector.extract_strided_slice %4 {offsets = [0, 7, 0], sizes = [2, 1, 32], strides = [1, 1, 1]} : vector<2x12x32xf32> to vector<2x1x32xf32>
    %354 = vector.shape_cast %353 : vector<2x1x32xf32> to vector<2x32xf32>
    %cst_96 = arith.constant dense<0.000000e+00> : vector<2x32xf32>
    %355 = tpu.matmul %352, %15, %cst_96 {dimension_numbers = #tpu.dot_dimension_numbers<[1], [0], [0], [1], [0, 0, 1, 1], [], []>} : vector<2x32xf32>, vector<32x32xf32>, vector<2x32xf32> -> vector<2x32xf32>
    %356 = arith.addf %354, %355 : vector<2x32xf32>
    %357 = vector.broadcast %23 : vector<1x32xf32> to vector<2x32xf32>
    %358 = arith.addf %356, %357 : vector<2x32xf32>
    %359 = arith.negf %358 : vector<2x32xf32>
    %360 = math.exp %359 : vector<2x32xf32>
    %cst_97 = arith.constant 1.000000e+00 : f32
    %361 = vector.broadcast %cst_97 : f32 to vector<2x32xf32>
    %362 = arith.addf %361, %360 : vector<2x32xf32>
    %363 = arith.divf %361, %362 : vector<2x32xf32>
    %364 = vector.extract_strided_slice %7 {offsets = [0, 7, 0], sizes = [2, 1, 32], strides = [1, 1, 1]} : vector<2x12x32xf32> to vector<2x1x32xf32>
    %365 = vector.shape_cast %364 : vector<2x1x32xf32> to vector<2x32xf32>
    %cst_98 = arith.constant dense<0.000000e+00> : vector<2x32xf32>
    %366 = tpu.matmul %352, %17, %cst_98 {dimension_numbers = #tpu.dot_dimension_numbers<[1], [0], [0], [1], [0, 0, 1, 1], [], []>} : vector<2x32xf32>, vector<32x32xf32>, vector<2x32xf32> -> vector<2x32xf32>
    %367 = arith.addf %365, %366 : vector<2x32xf32>
    %368 = vector.broadcast %25 : vector<1x32xf32> to vector<2x32xf32>
    %369 = arith.addf %367, %368 : vector<2x32xf32>
    %370 = arith.negf %369 : vector<2x32xf32>
    %371 = math.exp %370 : vector<2x32xf32>
    %cst_99 = arith.constant 1.000000e+00 : f32
    %372 = vector.broadcast %cst_99 : f32 to vector<2x32xf32>
    %373 = arith.addf %372, %371 : vector<2x32xf32>
    %374 = arith.divf %372, %373 : vector<2x32xf32>
    %375 = vector.extract_strided_slice %10 {offsets = [0, 7, 0], sizes = [2, 1, 32], strides = [1, 1, 1]} : vector<2x12x32xf32> to vector<2x1x32xf32>
    %376 = vector.shape_cast %375 : vector<2x1x32xf32> to vector<2x32xf32>
    %cst_100 = arith.constant dense<0.000000e+00> : vector<2x32xf32>
    %377 = tpu.matmul %352, %19, %cst_100 {dimension_numbers = #tpu.dot_dimension_numbers<[1], [0], [0], [1], [0, 0, 1, 1], [], []>} : vector<2x32xf32>, vector<32x32xf32>, vector<2x32xf32> -> vector<2x32xf32>
    %378 = arith.addf %376, %377 : vector<2x32xf32>
    %379 = vector.broadcast %27 : vector<1x32xf32> to vector<2x32xf32>
    %380 = arith.addf %378, %379 : vector<2x32xf32>
    %381 = math.tanh %380 : vector<2x32xf32>
    %382 = vector.extract_strided_slice %13 {offsets = [0, 7, 0], sizes = [2, 1, 32], strides = [1, 1, 1]} : vector<2x12x32xf32> to vector<2x1x32xf32>
    %383 = vector.shape_cast %382 : vector<2x1x32xf32> to vector<2x32xf32>
    %cst_101 = arith.constant dense<0.000000e+00> : vector<2x32xf32>
    %384 = tpu.matmul %352, %21, %cst_101 {dimension_numbers = #tpu.dot_dimension_numbers<[1], [0], [0], [1], [0, 0, 1, 1], [], []>} : vector<2x32xf32>, vector<32x32xf32>, vector<2x32xf32> -> vector<2x32xf32>
    %385 = arith.addf %383, %384 : vector<2x32xf32>
    %386 = vector.broadcast %29 : vector<1x32xf32> to vector<2x32xf32>
    %387 = arith.addf %385, %386 : vector<2x32xf32>
    %388 = arith.negf %387 : vector<2x32xf32>
    %389 = math.exp %388 : vector<2x32xf32>
    %cst_102 = arith.constant 1.000000e+00 : f32
    %390 = vector.broadcast %cst_102 : f32 to vector<2x32xf32>
    %391 = arith.addf %390, %389 : vector<2x32xf32>
    %392 = arith.divf %390, %391 : vector<2x32xf32>
    %393 = arith.mulf %374, %350 : vector<2x32xf32>
    %394 = arith.mulf %363, %381 : vector<2x32xf32>
    %395 = arith.addf %393, %394 : vector<2x32xf32>
    %396 = math.tanh %395 : vector<2x32xf32>
    %397 = arith.mulf %392, %396 : vector<2x32xf32>
    %398 = vector.extract_strided_slice %4 {offsets = [0, 8, 0], sizes = [2, 1, 32], strides = [1, 1, 1]} : vector<2x12x32xf32> to vector<2x1x32xf32>
    %399 = vector.shape_cast %398 : vector<2x1x32xf32> to vector<2x32xf32>
    %cst_103 = arith.constant dense<0.000000e+00> : vector<2x32xf32>
    %400 = tpu.matmul %397, %15, %cst_103 {dimension_numbers = #tpu.dot_dimension_numbers<[1], [0], [0], [1], [0, 0, 1, 1], [], []>} : vector<2x32xf32>, vector<32x32xf32>, vector<2x32xf32> -> vector<2x32xf32>
    %401 = arith.addf %399, %400 : vector<2x32xf32>
    %402 = vector.broadcast %23 : vector<1x32xf32> to vector<2x32xf32>
    %403 = arith.addf %401, %402 : vector<2x32xf32>
    %404 = arith.negf %403 : vector<2x32xf32>
    %405 = math.exp %404 : vector<2x32xf32>
    %cst_104 = arith.constant 1.000000e+00 : f32
    %406 = vector.broadcast %cst_104 : f32 to vector<2x32xf32>
    %407 = arith.addf %406, %405 : vector<2x32xf32>
    %408 = arith.divf %406, %407 : vector<2x32xf32>
    %409 = vector.extract_strided_slice %7 {offsets = [0, 8, 0], sizes = [2, 1, 32], strides = [1, 1, 1]} : vector<2x12x32xf32> to vector<2x1x32xf32>
    %410 = vector.shape_cast %409 : vector<2x1x32xf32> to vector<2x32xf32>
    %cst_105 = arith.constant dense<0.000000e+00> : vector<2x32xf32>
    %411 = tpu.matmul %397, %17, %cst_105 {dimension_numbers = #tpu.dot_dimension_numbers<[1], [0], [0], [1], [0, 0, 1, 1], [], []>} : vector<2x32xf32>, vector<32x32xf32>, vector<2x32xf32> -> vector<2x32xf32>
    %412 = arith.addf %410, %411 : vector<2x32xf32>
    %413 = vector.broadcast %25 : vector<1x32xf32> to vector<2x32xf32>
    %414 = arith.addf %412, %413 : vector<2x32xf32>
    %415 = arith.negf %414 : vector<2x32xf32>
    %416 = math.exp %415 : vector<2x32xf32>
    %cst_106 = arith.constant 1.000000e+00 : f32
    %417 = vector.broadcast %cst_106 : f32 to vector<2x32xf32>
    %418 = arith.addf %417, %416 : vector<2x32xf32>
    %419 = arith.divf %417, %418 : vector<2x32xf32>
    %420 = vector.extract_strided_slice %10 {offsets = [0, 8, 0], sizes = [2, 1, 32], strides = [1, 1, 1]} : vector<2x12x32xf32> to vector<2x1x32xf32>
    %421 = vector.shape_cast %420 : vector<2x1x32xf32> to vector<2x32xf32>
    %cst_107 = arith.constant dense<0.000000e+00> : vector<2x32xf32>
    %422 = tpu.matmul %397, %19, %cst_107 {dimension_numbers = #tpu.dot_dimension_numbers<[1], [0], [0], [1], [0, 0, 1, 1], [], []>} : vector<2x32xf32>, vector<32x32xf32>, vector<2x32xf32> -> vector<2x32xf32>
    %423 = arith.addf %421, %422 : vector<2x32xf32>
    %424 = vector.broadcast %27 : vector<1x32xf32> to vector<2x32xf32>
    %425 = arith.addf %423, %424 : vector<2x32xf32>
    %426 = math.tanh %425 : vector<2x32xf32>
    %427 = vector.extract_strided_slice %13 {offsets = [0, 8, 0], sizes = [2, 1, 32], strides = [1, 1, 1]} : vector<2x12x32xf32> to vector<2x1x32xf32>
    %428 = vector.shape_cast %427 : vector<2x1x32xf32> to vector<2x32xf32>
    %cst_108 = arith.constant dense<0.000000e+00> : vector<2x32xf32>
    %429 = tpu.matmul %397, %21, %cst_108 {dimension_numbers = #tpu.dot_dimension_numbers<[1], [0], [0], [1], [0, 0, 1, 1], [], []>} : vector<2x32xf32>, vector<32x32xf32>, vector<2x32xf32> -> vector<2x32xf32>
    %430 = arith.addf %428, %429 : vector<2x32xf32>
    %431 = vector.broadcast %29 : vector<1x32xf32> to vector<2x32xf32>
    %432 = arith.addf %430, %431 : vector<2x32xf32>
    %433 = arith.negf %432 : vector<2x32xf32>
    %434 = math.exp %433 : vector<2x32xf32>
    %cst_109 = arith.constant 1.000000e+00 : f32
    %435 = vector.broadcast %cst_109 : f32 to vector<2x32xf32>
    %436 = arith.addf %435, %434 : vector<2x32xf32>
    %437 = arith.divf %435, %436 : vector<2x32xf32>
    %438 = arith.mulf %419, %395 : vector<2x32xf32>
    %439 = arith.mulf %408, %426 : vector<2x32xf32>
    %440 = arith.addf %438, %439 : vector<2x32xf32>
    %441 = math.tanh %440 : vector<2x32xf32>
    %442 = arith.mulf %437, %441 : vector<2x32xf32>
    %443 = vector.extract_strided_slice %4 {offsets = [0, 9, 0], sizes = [2, 1, 32], strides = [1, 1, 1]} : vector<2x12x32xf32> to vector<2x1x32xf32>
    %444 = vector.shape_cast %443 : vector<2x1x32xf32> to vector<2x32xf32>
    %cst_110 = arith.constant dense<0.000000e+00> : vector<2x32xf32>
    %445 = tpu.matmul %442, %15, %cst_110 {dimension_numbers = #tpu.dot_dimension_numbers<[1], [0], [0], [1], [0, 0, 1, 1], [], []>} : vector<2x32xf32>, vector<32x32xf32>, vector<2x32xf32> -> vector<2x32xf32>
    %446 = arith.addf %444, %445 : vector<2x32xf32>
    %447 = vector.broadcast %23 : vector<1x32xf32> to vector<2x32xf32>
    %448 = arith.addf %446, %447 : vector<2x32xf32>
    %449 = arith.negf %448 : vector<2x32xf32>
    %450 = math.exp %449 : vector<2x32xf32>
    %cst_111 = arith.constant 1.000000e+00 : f32
    %451 = vector.broadcast %cst_111 : f32 to vector<2x32xf32>
    %452 = arith.addf %451, %450 : vector<2x32xf32>
    %453 = arith.divf %451, %452 : vector<2x32xf32>
    %454 = vector.extract_strided_slice %7 {offsets = [0, 9, 0], sizes = [2, 1, 32], strides = [1, 1, 1]} : vector<2x12x32xf32> to vector<2x1x32xf32>
    %455 = vector.shape_cast %454 : vector<2x1x32xf32> to vector<2x32xf32>
    %cst_112 = arith.constant dense<0.000000e+00> : vector<2x32xf32>
    %456 = tpu.matmul %442, %17, %cst_112 {dimension_numbers = #tpu.dot_dimension_numbers<[1], [0], [0], [1], [0, 0, 1, 1], [], []>} : vector<2x32xf32>, vector<32x32xf32>, vector<2x32xf32> -> vector<2x32xf32>
    %457 = arith.addf %455, %456 : vector<2x32xf32>
    %458 = vector.broadcast %25 : vector<1x32xf32> to vector<2x32xf32>
    %459 = arith.addf %457, %458 : vector<2x32xf32>
    %460 = arith.negf %459 : vector<2x32xf32>
    %461 = math.exp %460 : vector<2x32xf32>
    %cst_113 = arith.constant 1.000000e+00 : f32
    %462 = vector.broadcast %cst_113 : f32 to vector<2x32xf32>
    %463 = arith.addf %462, %461 : vector<2x32xf32>
    %464 = arith.divf %462, %463 : vector<2x32xf32>
    %465 = vector.extract_strided_slice %10 {offsets = [0, 9, 0], sizes = [2, 1, 32], strides = [1, 1, 1]} : vector<2x12x32xf32> to vector<2x1x32xf32>
    %466 = vector.shape_cast %465 : vector<2x1x32xf32> to vector<2x32xf32>
    %cst_114 = arith.constant dense<0.000000e+00> : vector<2x32xf32>
    %467 = tpu.matmul %442, %19, %cst_114 {dimension_numbers = #tpu.dot_dimension_numbers<[1], [0], [0], [1], [0, 0, 1, 1], [], []>} : vector<2x32xf32>, vector<32x32xf32>, vector<2x32xf32> -> vector<2x32xf32>
    %468 = arith.addf %466, %467 : vector<2x32xf32>
    %469 = vector.broadcast %27 : vector<1x32xf32> to vector<2x32xf32>
    %470 = arith.addf %468, %469 : vector<2x32xf32>
    %471 = math.tanh %470 : vector<2x32xf32>
    %472 = vector.extract_strided_slice %13 {offsets = [0, 9, 0], sizes = [2, 1, 32], strides = [1, 1, 1]} : vector<2x12x32xf32> to vector<2x1x32xf32>
    %473 = vector.shape_cast %472 : vector<2x1x32xf32> to vector<2x32xf32>
    %cst_115 = arith.constant dense<0.000000e+00> : vector<2x32xf32>
    %474 = tpu.matmul %442, %21, %cst_115 {dimension_numbers = #tpu.dot_dimension_numbers<[1], [0], [0], [1], [0, 0, 1, 1], [], []>} : vector<2x32xf32>, vector<32x32xf32>, vector<2x32xf32> -> vector<2x32xf32>
    %475 = arith.addf %473, %474 : vector<2x32xf32>
    %476 = vector.broadcast %29 : vector<1x32xf32> to vector<2x32xf32>
    %477 = arith.addf %475, %476 : vector<2x32xf32>
    %478 = arith.negf %477 : vector<2x32xf32>
    %479 = math.exp %478 : vector<2x32xf32>
    %cst_116 = arith.constant 1.000000e+00 : f32
    %480 = vector.broadcast %cst_116 : f32 to vector<2x32xf32>
    %481 = arith.addf %480, %479 : vector<2x32xf32>
    %482 = arith.divf %480, %481 : vector<2x32xf32>
    %483 = arith.mulf %464, %440 : vector<2x32xf32>
    %484 = arith.mulf %453, %471 : vector<2x32xf32>
    %485 = arith.addf %483, %484 : vector<2x32xf32>
    %486 = math.tanh %485 : vector<2x32xf32>
    %487 = arith.mulf %482, %486 : vector<2x32xf32>
    %488 = vector.extract_strided_slice %4 {offsets = [0, 10, 0], sizes = [2, 1, 32], strides = [1, 1, 1]} : vector<2x12x32xf32> to vector<2x1x32xf32>
    %489 = vector.shape_cast %488 : vector<2x1x32xf32> to vector<2x32xf32>
    %cst_117 = arith.constant dense<0.000000e+00> : vector<2x32xf32>
    %490 = tpu.matmul %487, %15, %cst_117 {dimension_numbers = #tpu.dot_dimension_numbers<[1], [0], [0], [1], [0, 0, 1, 1], [], []>} : vector<2x32xf32>, vector<32x32xf32>, vector<2x32xf32> -> vector<2x32xf32>
    %491 = arith.addf %489, %490 : vector<2x32xf32>
    %492 = vector.broadcast %23 : vector<1x32xf32> to vector<2x32xf32>
    %493 = arith.addf %491, %492 : vector<2x32xf32>
    %494 = arith.negf %493 : vector<2x32xf32>
    %495 = math.exp %494 : vector<2x32xf32>
    %cst_118 = arith.constant 1.000000e+00 : f32
    %496 = vector.broadcast %cst_118 : f32 to vector<2x32xf32>
    %497 = arith.addf %496, %495 : vector<2x32xf32>
    %498 = arith.divf %496, %497 : vector<2x32xf32>
    %499 = vector.extract_strided_slice %7 {offsets = [0, 10, 0], sizes = [2, 1, 32], strides = [1, 1, 1]} : vector<2x12x32xf32> to vector<2x1x32xf32>
    %500 = vector.shape_cast %499 : vector<2x1x32xf32> to vector<2x32xf32>
    %cst_119 = arith.constant dense<0.000000e+00> : vector<2x32xf32>
    %501 = tpu.matmul %487, %17, %cst_119 {dimension_numbers = #tpu.dot_dimension_numbers<[1], [0], [0], [1], [0, 0, 1, 1], [], []>} : vector<2x32xf32>, vector<32x32xf32>, vector<2x32xf32> -> vector<2x32xf32>
    %502 = arith.addf %500, %501 : vector<2x32xf32>
    %503 = vector.broadcast %25 : vector<1x32xf32> to vector<2x32xf32>
    %504 = arith.addf %502, %503 : vector<2x32xf32>
    %505 = arith.negf %504 : vector<2x32xf32>
    %506 = math.exp %505 : vector<2x32xf32>
    %cst_120 = arith.constant 1.000000e+00 : f32
    %507 = vector.broadcast %cst_120 : f32 to vector<2x32xf32>
    %508 = arith.addf %507, %506 : vector<2x32xf32>
    %509 = arith.divf %507, %508 : vector<2x32xf32>
    %510 = vector.extract_strided_slice %10 {offsets = [0, 10, 0], sizes = [2, 1, 32], strides = [1, 1, 1]} : vector<2x12x32xf32> to vector<2x1x32xf32>
    %511 = vector.shape_cast %510 : vector<2x1x32xf32> to vector<2x32xf32>
    %cst_121 = arith.constant dense<0.000000e+00> : vector<2x32xf32>
    %512 = tpu.matmul %487, %19, %cst_121 {dimension_numbers = #tpu.dot_dimension_numbers<[1], [0], [0], [1], [0, 0, 1, 1], [], []>} : vector<2x32xf32>, vector<32x32xf32>, vector<2x32xf32> -> vector<2x32xf32>
    %513 = arith.addf %511, %512 : vector<2x32xf32>
    %514 = vector.broadcast %27 : vector<1x32xf32> to vector<2x32xf32>
    %515 = arith.addf %513, %514 : vector<2x32xf32>
    %516 = math.tanh %515 : vector<2x32xf32>
    %517 = vector.extract_strided_slice %13 {offsets = [0, 10, 0], sizes = [2, 1, 32], strides = [1, 1, 1]} : vector<2x12x32xf32> to vector<2x1x32xf32>
    %518 = vector.shape_cast %517 : vector<2x1x32xf32> to vector<2x32xf32>
    %cst_122 = arith.constant dense<0.000000e+00> : vector<2x32xf32>
    %519 = tpu.matmul %487, %21, %cst_122 {dimension_numbers = #tpu.dot_dimension_numbers<[1], [0], [0], [1], [0, 0, 1, 1], [], []>} : vector<2x32xf32>, vector<32x32xf32>, vector<2x32xf32> -> vector<2x32xf32>
    %520 = arith.addf %518, %519 : vector<2x32xf32>
    %521 = vector.broadcast %29 : vector<1x32xf32> to vector<2x32xf32>
    %522 = arith.addf %520, %521 : vector<2x32xf32>
    %523 = arith.negf %522 : vector<2x32xf32>
    %524 = math.exp %523 : vector<2x32xf32>
    %cst_123 = arith.constant 1.000000e+00 : f32
    %525 = vector.broadcast %cst_123 : f32 to vector<2x32xf32>
    %526 = arith.addf %525, %524 : vector<2x32xf32>
    %527 = arith.divf %525, %526 : vector<2x32xf32>
    %528 = arith.mulf %509, %485 : vector<2x32xf32>
    %529 = arith.mulf %498, %516 : vector<2x32xf32>
    %530 = arith.addf %528, %529 : vector<2x32xf32>
    %531 = math.tanh %530 : vector<2x32xf32>
    %532 = arith.mulf %527, %531 : vector<2x32xf32>
    %533 = vector.extract_strided_slice %4 {offsets = [0, 11, 0], sizes = [2, 1, 32], strides = [1, 1, 1]} : vector<2x12x32xf32> to vector<2x1x32xf32>
    %534 = vector.shape_cast %533 : vector<2x1x32xf32> to vector<2x32xf32>
    %cst_124 = arith.constant dense<0.000000e+00> : vector<2x32xf32>
    %535 = tpu.matmul %532, %15, %cst_124 {dimension_numbers = #tpu.dot_dimension_numbers<[1], [0], [0], [1], [0, 0, 1, 1], [], []>} : vector<2x32xf32>, vector<32x32xf32>, vector<2x32xf32> -> vector<2x32xf32>
    %536 = arith.addf %534, %535 : vector<2x32xf32>
    %537 = vector.broadcast %23 : vector<1x32xf32> to vector<2x32xf32>
    %538 = arith.addf %536, %537 : vector<2x32xf32>
    %539 = arith.negf %538 : vector<2x32xf32>
    %540 = math.exp %539 : vector<2x32xf32>
    %cst_125 = arith.constant 1.000000e+00 : f32
    %541 = vector.broadcast %cst_125 : f32 to vector<2x32xf32>
    %542 = arith.addf %541, %540 : vector<2x32xf32>
    %543 = arith.divf %541, %542 : vector<2x32xf32>
    %544 = vector.extract_strided_slice %7 {offsets = [0, 11, 0], sizes = [2, 1, 32], strides = [1, 1, 1]} : vector<2x12x32xf32> to vector<2x1x32xf32>
    %545 = vector.shape_cast %544 : vector<2x1x32xf32> to vector<2x32xf32>
    %cst_126 = arith.constant dense<0.000000e+00> : vector<2x32xf32>
    %546 = tpu.matmul %532, %17, %cst_126 {dimension_numbers = #tpu.dot_dimension_numbers<[1], [0], [0], [1], [0, 0, 1, 1], [], []>} : vector<2x32xf32>, vector<32x32xf32>, vector<2x32xf32> -> vector<2x32xf32>
    %547 = arith.addf %545, %546 : vector<2x32xf32>
    %548 = vector.broadcast %25 : vector<1x32xf32> to vector<2x32xf32>
    %549 = arith.addf %547, %548 : vector<2x32xf32>
    %550 = arith.negf %549 : vector<2x32xf32>
    %551 = math.exp %550 : vector<2x32xf32>
    %cst_127 = arith.constant 1.000000e+00 : f32
    %552 = vector.broadcast %cst_127 : f32 to vector<2x32xf32>
    %553 = arith.addf %552, %551 : vector<2x32xf32>
    %554 = arith.divf %552, %553 : vector<2x32xf32>
    %555 = vector.extract_strided_slice %10 {offsets = [0, 11, 0], sizes = [2, 1, 32], strides = [1, 1, 1]} : vector<2x12x32xf32> to vector<2x1x32xf32>
    %556 = vector.shape_cast %555 : vector<2x1x32xf32> to vector<2x32xf32>
    %cst_128 = arith.constant dense<0.000000e+00> : vector<2x32xf32>
    %557 = tpu.matmul %532, %19, %cst_128 {dimension_numbers = #tpu.dot_dimension_numbers<[1], [0], [0], [1], [0, 0, 1, 1], [], []>} : vector<2x32xf32>, vector<32x32xf32>, vector<2x32xf32> -> vector<2x32xf32>
    %558 = arith.addf %556, %557 : vector<2x32xf32>
    %559 = vector.broadcast %27 : vector<1x32xf32> to vector<2x32xf32>
    %560 = arith.addf %558, %559 : vector<2x32xf32>
    %561 = math.tanh %560 : vector<2x32xf32>
    %562 = vector.extract_strided_slice %13 {offsets = [0, 11, 0], sizes = [2, 1, 32], strides = [1, 1, 1]} : vector<2x12x32xf32> to vector<2x1x32xf32>
    %563 = vector.shape_cast %562 : vector<2x1x32xf32> to vector<2x32xf32>
    %cst_129 = arith.constant dense<0.000000e+00> : vector<2x32xf32>
    %564 = tpu.matmul %532, %21, %cst_129 {dimension_numbers = #tpu.dot_dimension_numbers<[1], [0], [0], [1], [0, 0, 1, 1], [], []>} : vector<2x32xf32>, vector<32x32xf32>, vector<2x32xf32> -> vector<2x32xf32>
    %565 = arith.addf %563, %564 : vector<2x32xf32>
    %566 = vector.broadcast %29 : vector<1x32xf32> to vector<2x32xf32>
    %567 = arith.addf %565, %566 : vector<2x32xf32>
    %568 = arith.negf %567 : vector<2x32xf32>
    %569 = math.exp %568 : vector<2x32xf32>
    %cst_130 = arith.constant 1.000000e+00 : f32
    %570 = vector.broadcast %cst_130 : f32 to vector<2x32xf32>
    %571 = arith.addf %570, %569 : vector<2x32xf32>
    %572 = arith.divf %570, %571 : vector<2x32xf32>
    %573 = arith.mulf %554, %530 : vector<2x32xf32>
    %574 = arith.mulf %543, %561 : vector<2x32xf32>
    %575 = arith.addf %573, %574 : vector<2x32xf32>
    %576 = math.tanh %575 : vector<2x32xf32>
    %577 = arith.mulf %572, %576 : vector<2x32xf32>
    %c0_131 = arith.constant 0 : index
    %c0_132 = arith.constant 0 : index
    %c0_133 = arith.constant 0 : index
    %578 = vector.load %arg12[%c0_131, %c0_132, %c0_133] : memref<1x2x32xf32, #tpu.memory_space<vmem>>, vector<1x2x32xf32>
    %579 = vector.shape_cast %578 : vector<1x2x32xf32> to vector<2x32xf32>
    %580 = vector.shape_cast %577 : vector<2x32xf32> to vector<1x2x32xf32>
    tpu.vector_store %arg12[%c0_131, %c0_132, %c0_133], %580 {strides = array<i32>} : memref<1x2x32xf32, #tpu.memory_space<vmem>>, vector<1x2x32xf32>,
    %581 = vector.extract_strided_slice %1 {offsets = [0, 11, 0], sizes = [2, 1, 16], strides = [1, 1, 1]} : vector<2x12x16xf32> to vector<2x1x16xf32>
    %582 = vector.shape_cast %581 : vector<2x1x16xf32> to vector<2x16xf32>
    %583 = vector.extract_strided_slice %31 {offsets = [1, 0, 0], sizes = [1, 2, 32], strides = [1, 1, 1]} : vector<2x2x32xf32> to vector<1x2x32xf32>
    %584 = vector.shape_cast %583 : vector<1x2x32xf32> to vector<2x32xf32>
    %585 = vector.extract_strided_slice %33 {offsets = [1, 0, 0], sizes = [1, 2, 32], strides = [1, 1, 1]} : vector<2x2x32xf32> to vector<1x2x32xf32>
    %586 = vector.shape_cast %585 : vector<1x2x32xf32> to vector<2x32xf32>
    %c0_134 = arith.constant 0 : index
    %c0_135 = arith.constant 0 : index
    %c0_136 = arith.constant 0 : index
    %587 = vector.load %arg7[%c0_134, %c0_135, %c0_136] : memref<4x16x32xf32, #tpu.memory_space<vmem>>, vector<1x16x32xf32>
    %588 = vector.shape_cast %587 : vector<1x16x32xf32> to vector<16x32xf32>
    %cst_137 = arith.constant dense<0.000000e+00> : vector<2x32xf32>
    %589 = tpu.matmul %582, %588, %cst_137 {dimension_numbers = #tpu.dot_dimension_numbers<[1], [0], [0], [1], [0, 0, 1, 1], [], []>} : vector<2x16xf32>, vector<16x32xf32>, vector<2x32xf32> -> vector<2x32xf32>
    %c0_138 = arith.constant 0 : index
    %c0_139 = arith.constant 0 : index
    %c0_140 = arith.constant 0 : index
    %590 = vector.load %arg8[%c0_138, %c0_139, %c0_140] : memref<4x32x32xf32, #tpu.memory_space<vmem>>, vector<1x32x32xf32>
    %591 = vector.shape_cast %590 : vector<1x32x32xf32> to vector<32x32xf32>
    %cst_141 = arith.constant dense<0.000000e+00> : vector<2x32xf32>
    %592 = tpu.matmul %584, %591, %cst_141 {dimension_numbers = #tpu.dot_dimension_numbers<[1], [0], [0], [1], [0, 0, 1, 1], [], []>} : vector<2x32xf32>, vector<32x32xf32>, vector<2x32xf32> -> vector<2x32xf32>
    %593 = arith.addf %589, %592 : vector<2x32xf32>
    %c0_142 = arith.constant 0 : index
    %c0_143 = arith.constant 0 : index
    %c0_144 = arith.constant 0 : index
    %594 = vector.load %arg9[%c0_142, %c0_143, %c0_144] : memref<4x1x32xf32, #tpu.memory_space<vmem>>, vector<1x1x32xf32>
    %595 = vector.shape_cast %594 : vector<1x1x32xf32> to vector<1x32xf32>
    %596 = vector.broadcast %595 : vector<1x32xf32> to vector<2x32xf32>
    %597 = arith.addf %593, %596 : vector<2x32xf32>
    %598 = arith.negf %597 : vector<2x32xf32>
    %599 = math.exp %598 : vector<2x32xf32>
    %cst_145 = arith.constant 1.000000e+00 : f32
    %600 = vector.broadcast %cst_145 : f32 to vector<2x32xf32>
    %601 = arith.addf %600, %599 : vector<2x32xf32>
    %602 = arith.divf %600, %601 : vector<2x32xf32>
    %c1_146 = arith.constant 1 : index
    %c0_147 = arith.constant 0 : index
    %c0_148 = arith.constant 0 : index
    %603 = vector.load %arg7[%c1_146, %c0_147, %c0_148] : memref<4x16x32xf32, #tpu.memory_space<vmem>>, vector<1x16x32xf32>
    %604 = vector.shape_cast %603 : vector<1x16x32xf32> to vector<16x32xf32>
    %cst_149 = arith.constant dense<0.000000e+00> : vector<2x32xf32>
    %605 = tpu.matmul %582, %604, %cst_149 {dimension_numbers = #tpu.dot_dimension_numbers<[1], [0], [0], [1], [0, 0, 1, 1], [], []>} : vector<2x16xf32>, vector<16x32xf32>, vector<2x32xf32> -> vector<2x32xf32>
    %c1_150 = arith.constant 1 : index
    %c0_151 = arith.constant 0 : index
    %c0_152 = arith.constant 0 : index
    %606 = vector.load %arg8[%c1_150, %c0_151, %c0_152] : memref<4x32x32xf32, #tpu.memory_space<vmem>>, vector<1x32x32xf32>
    %607 = vector.shape_cast %606 : vector<1x32x32xf32> to vector<32x32xf32>
    %cst_153 = arith.constant dense<0.000000e+00> : vector<2x32xf32>
    %608 = tpu.matmul %584, %607, %cst_153 {dimension_numbers = #tpu.dot_dimension_numbers<[1], [0], [0], [1], [0, 0, 1, 1], [], []>} : vector<2x32xf32>, vector<32x32xf32>, vector<2x32xf32> -> vector<2x32xf32>
    %609 = arith.addf %605, %608 : vector<2x32xf32>
    %c1_154 = arith.constant 1 : index
    %c0_155 = arith.constant 0 : index
    %c0_156 = arith.constant 0 : index
    %610 = vector.load %arg9[%c1_154, %c0_155, %c0_156] : memref<4x1x32xf32, #tpu.memory_space<vmem>>, vector<1x1x32xf32>
    %611 = vector.shape_cast %610 : vector<1x1x32xf32> to vector<1x32xf32>
    %612 = vector.broadcast %611 : vector<1x32xf32> to vector<2x32xf32>
    %613 = arith.addf %609, %612 : vector<2x32xf32>
    %614 = arith.negf %613 : vector<2x32xf32>
    %615 = math.exp %614 : vector<2x32xf32>
    %cst_157 = arith.constant 1.000000e+00 : f32
    %616 = vector.broadcast %cst_157 : f32 to vector<2x32xf32>
    %617 = arith.addf %616, %615 : vector<2x32xf32>
    %618 = arith.divf %616, %617 : vector<2x32xf32>
    %c2_158 = arith.constant 2 : index
    %c0_159 = arith.constant 0 : index
    %c0_160 = arith.constant 0 : index
    %619 = vector.load %arg7[%c2_158, %c0_159, %c0_160] : memref<4x16x32xf32, #tpu.memory_space<vmem>>, vector<1x16x32xf32>
    %620 = vector.shape_cast %619 : vector<1x16x32xf32> to vector<16x32xf32>
    %cst_161 = arith.constant dense<0.000000e+00> : vector<2x32xf32>
    %621 = tpu.matmul %582, %620, %cst_161 {dimension_numbers = #tpu.dot_dimension_numbers<[1], [0], [0], [1], [0, 0, 1, 1], [], []>} : vector<2x16xf32>, vector<16x32xf32>, vector<2x32xf32> -> vector<2x32xf32>
    %c2_162 = arith.constant 2 : index
    %c0_163 = arith.constant 0 : index
    %c0_164 = arith.constant 0 : index
    %622 = vector.load %arg8[%c2_162, %c0_163, %c0_164] : memref<4x32x32xf32, #tpu.memory_space<vmem>>, vector<1x32x32xf32>
    %623 = vector.shape_cast %622 : vector<1x32x32xf32> to vector<32x32xf32>
    %cst_165 = arith.constant dense<0.000000e+00> : vector<2x32xf32>
    %624 = tpu.matmul %584, %623, %cst_165 {dimension_numbers = #tpu.dot_dimension_numbers<[1], [0], [0], [1], [0, 0, 1, 1], [], []>} : vector<2x32xf32>, vector<32x32xf32>, vector<2x32xf32> -> vector<2x32xf32>
    %625 = arith.addf %621, %624 : vector<2x32xf32>
    %c2_166 = arith.constant 2 : index
    %c0_167 = arith.constant 0 : index
    %c0_168 = arith.constant 0 : index
    %626 = vector.load %arg9[%c2_166, %c0_167, %c0_168] : memref<4x1x32xf32, #tpu.memory_space<vmem>>, vector<1x1x32xf32>
    %627 = vector.shape_cast %626 : vector<1x1x32xf32> to vector<1x32xf32>
    %628 = vector.broadcast %627 : vector<1x32xf32> to vector<2x32xf32>
    %629 = arith.addf %625, %628 : vector<2x32xf32>
    %630 = math.tanh %629 : vector<2x32xf32>
    %c3_169 = arith.constant 3 : index
    %c0_170 = arith.constant 0 : index
    %c0_171 = arith.constant 0 : index
    %631 = vector.load %arg7[%c3_169, %c0_170, %c0_171] : memref<4x16x32xf32, #tpu.memory_space<vmem>>, vector<1x16x32xf32>
    %632 = vector.shape_cast %631 : vector<1x16x32xf32> to vector<16x32xf32>
    %cst_172 = arith.constant dense<0.000000e+00> : vector<2x32xf32>
    %633 = tpu.matmul %582, %632, %cst_172 {dimension_numbers = #tpu.dot_dimension_numbers<[1], [0], [0], [1], [0, 0, 1, 1], [], []>} : vector<2x16xf32>, vector<16x32xf32>, vector<2x32xf32> -> vector<2x32xf32>
    %c3_173 = arith.constant 3 : index
    %c0_174 = arith.constant 0 : index
    %c0_175 = arith.constant 0 : index
    %634 = vector.load %arg8[%c3_173, %c0_174, %c0_175] : memref<4x32x32xf32, #tpu.memory_space<vmem>>, vector<1x32x32xf32>
    %635 = vector.shape_cast %634 : vector<1x32x32xf32> to vector<32x32xf32>
    %cst_176 = arith.constant dense<0.000000e+00> : vector<2x32xf32>
    %636 = tpu.matmul %584, %635, %cst_176 {dimension_numbers = #tpu.dot_dimension_numbers<[1], [0], [0], [1], [0, 0, 1, 1], [], []>} : vector<2x32xf32>, vector<32x32xf32>, vector<2x32xf32> -> vector<2x32xf32>
    %637 = arith.addf %633, %636 : vector<2x32xf32>
    %c3_177 = arith.constant 3 : index
    %c0_178 = arith.constant 0 : index
    %c0_179 = arith.constant 0 : index
    %638 = vector.load %arg9[%c3_177, %c0_178, %c0_179] : memref<4x1x32xf32, #tpu.memory_space<vmem>>, vector<1x1x32xf32>
    %639 = vector.shape_cast %638 : vector<1x1x32xf32> to vector<1x32xf32>
    %640 = vector.broadcast %639 : vector<1x32xf32> to vector<2x32xf32>
    %641 = arith.addf %637, %640 : vector<2x32xf32>
    %642 = arith.negf %641 : vector<2x32xf32>
    %643 = math.exp %642 : vector<2x32xf32>
    %cst_180 = arith.constant 1.000000e+00 : f32
    %644 = vector.broadcast %cst_180 : f32 to vector<2x32xf32>
    %645 = arith.addf %644, %643 : vector<2x32xf32>
    %646 = arith.divf %644, %645 : vector<2x32xf32>
    %647 = arith.mulf %618, %586 : vector<2x32xf32>
    %648 = arith.mulf %602, %630 : vector<2x32xf32>
    %649 = arith.addf %647, %648 : vector<2x32xf32>
    %650 = math.tanh %649 : vector<2x32xf32>
    %651 = arith.mulf %646, %650 : vector<2x32xf32>
    %c0_181 = arith.constant 0 : index
    %c0_182 = arith.constant 0 : index
    %c0_183 = arith.constant 0 : index
    %652 = vector.load %arg13[%c0_181, %c0_182, %c0_183] : memref<1x2x32xf32, #tpu.memory_space<vmem>>, vector<1x2x32xf32>
    %653 = vector.shape_cast %652 : vector<1x2x32xf32> to vector<2x32xf32>
    %654 = vector.shape_cast %651 : vector<2x32xf32> to vector<1x2x32xf32>
    tpu.vector_store %arg13[%c0_181, %c0_182, %c0_183], %654 {strides = array<i32>} : memref<1x2x32xf32, #tpu.memory_space<vmem>>, vector<1x2x32xf32>,
    %c0_184 = arith.constant 0 : index
    %c0_185 = arith.constant 0 : index
    %655 = vector.load %arg10[%c0_184, %c0_185] : memref<16x640xf32, #tpu.memory_space<vmem>>, vector<16x640xf32>
    %cst_186 = arith.constant dense<0.000000e+00> : vector<2x12x640xf32>
    %656 = tpu.matmul %1, %655, %cst_186 {dimension_numbers = #tpu.dot_dimension_numbers<[2], [0], [0, 1], [1], [0, 0, 0, 1, 1, 1], [], []>} : vector<2x12x16xf32>, vector<16x640xf32>, vector<2x12x640xf32> -> vector<2x12x640xf32>
    %657 = vector.extract_strided_slice %656 {offsets = [0, 0, 0], sizes = [2, 8, 128], strides = [1, 1, 1]} : vector<2x12x640xf32> to vector<2x8x128xf32>
    %658 = vector.extract_strided_slice %656 {offsets = [0, 1, 128], sizes = [2, 8, 128], strides = [1, 1, 1]} : vector<2x12x640xf32> to vector<2x8x128xf32>
    %659 = arith.addf %657, %658 : vector<2x8x128xf32>
    %660 = vector.extract_strided_slice %656 {offsets = [0, 2, 256], sizes = [2, 8, 128], strides = [1, 1, 1]} : vector<2x12x640xf32> to vector<2x8x128xf32>
    %661 = arith.addf %659, %660 : vector<2x8x128xf32>
    %662 = vector.extract_strided_slice %656 {offsets = [0, 3, 384], sizes = [2, 8, 128], strides = [1, 1, 1]} : vector<2x12x640xf32> to vector<2x8x128xf32>
    %663 = arith.addf %661, %662 : vector<2x8x128xf32>
    %664 = vector.extract_strided_slice %656 {offsets = [0, 4, 512], sizes = [2, 8, 128], strides = [1, 1, 1]} : vector<2x12x640xf32> to vector<2x8x128xf32>
    %665 = arith.addf %663, %664 : vector<2x8x128xf32>
    %c0_187 = arith.constant 0 : index
    %c0_188 = arith.constant 0 : index
    %666 = vector.load %arg11[%c0_187, %c0_188] : memref<1x128xf32, #tpu.memory_space<vmem>>, vector<1x128xf32>
    %667 = vector.shape_cast %666 : vector<1x128xf32> to vector<1x1x128xf32>
    %668 = vector.broadcast %667 : vector<1x1x128xf32> to vector<2x8x128xf32>
    %669 = arith.addf %665, %668 : vector<2x8x128xf32>
    %cst_189 = arith.constant 0.000000e+00 : f32
    %670 = vector.broadcast %cst_189 : f32 to vector<2x8x128xf32>
    %671 = arith.maximumf %669, %670 : vector<2x8x128xf32>
    %cst_190 = arith.constant dense<0xFF800000> : vector<2x128xf32>
    %672 = vector.multi_reduction <maximumf>, %671, %cst_190 [1] : vector<2x8x128xf32> to vector<2x128xf32>
    %c0_191 = arith.constant 0 : index
    %c0_192 = arith.constant 0 : index
    %c0_193 = arith.constant 0 : index
    %673 = vector.load %arg14[%c0_191, %c0_192, %c0_193] : memref<1x2x128xf32, #tpu.memory_space<vmem>>, vector<1x2x128xf32>
    %674 = vector.shape_cast %673 : vector<1x2x128xf32> to vector<2x128xf32>
    %675 = vector.shape_cast %672 : vector<2x128xf32> to vector<1x2x128xf32>
    tpu.vector_store %arg14[%c0_191, %c0_192, %c0_193], %675 {strides = array<i32>} : memref<1x2x128xf32, #tpu.memory_space<vmem>>, vector<1x2x128xf32>,
    return
  }
  func.func @transform_0(%arg0: i32) -> (i32, i32, i32, i32) {
    %c0_i32 = arith.constant 0 : i32
    %c0_i32_0 = arith.constant 0 : i32
    %c0_i32_1 = arith.constant 0 : i32
    %c0_i32_2 = arith.constant 0 : i32
    return %arg0, %c0_i32, %c0_i32_0, %c0_i32_1 : i32, i32, i32, i32
  }
  func.func @transform_1(%arg0: i32) -> (i32, i32, i32, i32) {
    %c0_i32 = arith.constant 0 : i32
    %c0_i32_0 = arith.constant 0 : i32
    %c0_i32_1 = arith.constant 0 : i32
    %c0_i32_2 = arith.constant 0 : i32
    return %arg0, %c0_i32, %c0_i32_0, %c0_i32_1 : i32, i32, i32, i32
  }
  func.func @transform_2(%arg0: i32) -> (i32, i32, i32, i32) {
    %c0_i32 = arith.constant 0 : i32
    %c0_i32_0 = arith.constant 0 : i32
    %c0_i32_1 = arith.constant 0 : i32
    %c0_i32_2 = arith.constant 0 : i32
    return %arg0, %c0_i32, %c0_i32_0, %c0_i32_1 : i32, i32, i32, i32
  }
  func.func @transform_3(%arg0: i32) -> (i32, i32, i32) {
    %c0_i32 = arith.constant 0 : i32
    %c0_i32_0 = arith.constant 0 : i32
    %c0_i32_1 = arith.constant 0 : i32
    %c0_i32_2 = arith.constant 0 : i32
    return %c0_i32, %c0_i32_0, %c0_i32_1 : i32, i32, i32
  }
  func.func @transform_4(%arg0: i32) -> (i32, i32, i32) {
    %c0_i32 = arith.constant 0 : i32
    %c0_i32_0 = arith.constant 0 : i32
    %c0_i32_1 = arith.constant 0 : i32
    %c0_i32_2 = arith.constant 0 : i32
    return %c0_i32, %c0_i32_0, %c0_i32_1 : i32, i32, i32
  }
  func.func @transform_5(%arg0: i32) -> (i32, i32, i32) {
    %c0_i32 = arith.constant 0 : i32
    %c0_i32_0 = arith.constant 0 : i32
    %c0_i32_1 = arith.constant 0 : i32
    %c0_i32_2 = arith.constant 0 : i32
    return %c0_i32, %c0_i32_0, %c0_i32_1 : i32, i32, i32
  }
  func.func @transform_6(%arg0: i32) -> (i32, i32, i32) {
    %c0_i32 = arith.constant 0 : i32
    %c0_i32_0 = arith.constant 0 : i32
    %c0_i32_1 = arith.constant 0 : i32
    %c0_i32_2 = arith.constant 0 : i32
    return %c0_i32, %c0_i32_0, %c0_i32_1 : i32, i32, i32
  }
  func.func @transform_7(%arg0: i32) -> (i32, i32, i32) {
    %c0_i32 = arith.constant 0 : i32
    %c0_i32_0 = arith.constant 0 : i32
    %c0_i32_1 = arith.constant 0 : i32
    %c0_i32_2 = arith.constant 0 : i32
    return %c0_i32, %c0_i32_0, %c0_i32_1 : i32, i32, i32
  }
  func.func @transform_8(%arg0: i32) -> (i32, i32, i32) {
    %c0_i32 = arith.constant 0 : i32
    %c0_i32_0 = arith.constant 0 : i32
    %c0_i32_1 = arith.constant 0 : i32
    %c0_i32_2 = arith.constant 0 : i32
    return %c0_i32, %c0_i32_0, %c0_i32_1 : i32, i32, i32
  }
  func.func @transform_9(%arg0: i32) -> (i32, i32) {
    %c0_i32 = arith.constant 0 : i32
    %c0_i32_0 = arith.constant 0 : i32
    %c0_i32_1 = arith.constant 0 : i32
    return %c0_i32, %c0_i32_0 : i32, i32
  }
  func.func @transform_10(%arg0: i32) -> (i32, i32) {
    %c0_i32 = arith.constant 0 : i32
    %c0_i32_0 = arith.constant 0 : i32
    %c0_i32_1 = arith.constant 0 : i32
    return %c0_i32, %c0_i32_0 : i32, i32
  }
  func.func @transform_11(%arg0: i32) -> (i32, i32, i32) {
    %c0_i32 = arith.constant 0 : i32
    %c0_i32_0 = arith.constant 0 : i32
    %c0_i32_1 = arith.constant 0 : i32
    return %arg0, %c0_i32, %c0_i32_0 : i32, i32, i32
  }
  func.func @transform_12(%arg0: i32) -> (i32, i32, i32) {
    %c0_i32 = arith.constant 0 : i32
    %c0_i32_0 = arith.constant 0 : i32
    %c0_i32_1 = arith.constant 0 : i32
    return %arg0, %c0_i32, %c0_i32_0 : i32, i32, i32
  }
  func.func @transform_13(%arg0: i32) -> (i32, i32, i32) {
    %c0_i32 = arith.constant 0 : i32
    %c0_i32_0 = arith.constant 0 : i32
    %c0_i32_1 = arith.constant 0 : i32
    return %arg0, %c0_i32, %c0_i32_0 : i32, i32, i32
  }
}

</mosaic_0001>

<bundles_post_ra>
// kernel: siamese_forward.3
= control target key start
LH: loop header
LB: loop body
LE: loop exit
PB: predicated region body
PF: predicated region fallthrough
CT: control target
= control target key end

     0   :  { %vm21_vm0 = vcmask 254976   ;;  %vm31_vm1 = vcmask 1041408   ;;  %vm82_vm6 = vcmask 1024   ;;  %s141_s0 = inlined_call_operand.vmem [shape: f32[2,2,32], index: 0, kind: input, shape index: {}]   ;;  %s142_s1 = inlined_call_operand.vmem [shape: f32[2,2,32], index: 1, kind: input, shape index: {}]   ;;  %s143_s2 = inlined_call_operand.vmem [shape: f32[2,2,128], index: 2, kind: input, shape index: {}]   ;;  %s144_s3 = inlined_call_operand.vmem [shape: f32[2,1], index: 3, kind: output, shape index: {}]  }
   0x1   :  { %v15_v0 = vld [vmem:[%s141_s0 + $0x2] sm:$0x3]  ;;  %v14_v1 = vld [vmem:[%s141_s0] sm:$0x3] }
   0x2   :  { %v17_v2 = vld [vmem:[%s142_s1 + $0x2] sm:$0x3]  ;;  %v57_v3 = vmul.f32 %v15_v0, %v15_v0  ;;  %v36_v4 = vmul.f32 %v14_v1, %v14_v1  ;;  %v16_v6 = vld [vmem:[%s142_s1] sm:$0x3]  ;;  %v20_v18 = vmul.f32 %v15_v0, %v14_v1 }
   0x3   :  { %v61_v5 = vmul.f32 %v17_v2, %v17_v2  ;;  %v40_v7 = vmul.f32 %v16_v6, %v16_v6  ;;  %v19_v8 = vld [vmem:[%s143_s2 + $0x2] sm:$0x3]  ;;  %v18_v9 = vld [vmem:[%s143_s2] sm:$0x3]  ;;  %v25_v19 = vmul.f32 %v17_v2, %v16_v6 }
   0x4   :  { %v58_v10 = vsel %vm21_vm0, %v57_v3, 0.0  ;;  %v37_v11 = vsel %vm21_vm0, %v36_v4, 0.0  ;;  %v66_v14 = vmul.f32 %v19_v8, %v19_v8  ;;  %v45_v15 = vmul.f32 %v18_v9, %v18_v9 }
   0x5   :  { %59 = vadd.xlane.f32.xlu1 %v58_v10  ;;  %38 = vadd.xlane.f32.xlu0 %v37_v11  ;;  %v62_v12 = vsel %vm21_vm0, %v61_v5, 0.0  ;;  %v41_v13 = vsel %vm21_vm0, %v40_v7, 0.0  ;;  %v22_v20 = vsel %vm21_vm0, %v20_v18, 0.0  ;;  %v26_v21 = vsel %vm21_vm0, %v25_v19, 0.0 }
   0x6   :  { %v67_v16 = vsel %vm31_vm1, %v66_v14, 0.0  ;;  %v46_v17 = vsel %vm31_vm1, %v45_v15, 0.0  ;;  %v30_v22 = vmul.f32 %v19_v8, %v18_v9 }
   0x8   :  { %v32_v23 = vsel %vm31_vm1, %v30_v22, 0.0 }
   0x9   :  { %63 = vadd.xlane.f32.xlu1 %v62_v12  ;;  %42 = vadd.xlane.f32.xlu0 %v41_v13 }
   0xd   :  { %68 = vadd.xlane.f32.xlu1 %v67_v16  ;;  %47 = vadd.xlane.f32.xlu0 %v46_v17 }
  0x11   :  { %23 = vadd.xlane.f32.xlu0 %v22_v20  ;;  %27 = vadd.xlane.f32.xlu1 %v26_v21 }
  0x15   :  { %33 = vadd.xlane.f32.xlu0 %v32_v23 }
  0x92   :  { %v60_v24 = vpop.xlane.xlu1 %59  ;;  %v39_v25 = vpop.xlane.xlu0 %38 }
  0x96   :  { %v64_v26 = vpop.xlane.xlu1 %63  ;;  %v43_v27 = vpop.xlane.xlu0 %42 }
  0x97   :  { %v65_v28 = vadd.f32 %v64_v26, %v60_v24  ;;  %v44_v29 = vadd.f32 %v43_v27, %v39_v25 }
  0x9a   :  { %v69_v30 = vpop.xlane.xlu1 %68  ;;  %v48_v31 = vpop.xlane.xlu0 %47 }
  0x9b   :  { %v70_v32 = vadd.f32 %v69_v30, %v65_v28  ;;  %v49_v33 = vadd.f32 %v48_v31, %v44_v29 }
  0x9d   :  { %88 = vrsqrt.f32 %v70_v32  ;;  %vm73_vm2 = vcmp.eq.f32.partialorder %v70_v32, inf  ;;  %v76_v37 = vand.u32 2147483648, %v70_v32  ;;  %vm52_vm3 = vcmp.eq.f32.partialorder %v49_v33, inf }
  0x9e   :  { %90 = vrsqrt.f32 %v49_v33  ;;  %v55_v39 = vand.u32 2147483648, %v49_v33  ;;  %vm75_vm4 = vcmp.eq.f32.partialorder %v70_v32, 0.0  ;;  %vm54_vm5 = vcmp.eq.f32.partialorder %v49_v33, 0.0  ;;  %v24_v46 = vpop.xlane.xlu0 %23  ;;  %v28_v47 = vpop.xlane.xlu1 %27 }
  0x9f   :  { %v29_v48 = vadd.f32 %v28_v47, %v24_v46 }
  0xa2   :  { %v34_v49 = vpop.xlane.xlu0 %33 }
  0xa3   :  { %v35_v50 = vadd.f32 %v34_v49, %v29_v48 }
  0xa7   :  { %v89_v34 = vpop.eup %88 }
  0xa8   :  { %v91_v35 = vpop.eup %90  ;;  %v72_v36 = vmul.f32 %v89_v34, %v70_v32 }
  0xa9   :  { %v51_v38 = vmul.f32 %v91_v35, %v49_v33 }
  0xaa   :  { %v74_v40 = vsel %vm73_vm2, %v70_v32, %v72_v36 }
  0xab   :  { %v53_v41 = vsel %vm52_vm3, %v49_v33, %v51_v38  ;;  %v77_v42 = vsel %vm75_vm4, %v76_v37, %v74_v40 }
  0xac   :  { %v56_v43 = vsel %vm54_vm5, %v55_v39, %v53_v41 }
  0xad   :  { %v78_v44 = vmul.f32 %v77_v42, %v56_v43 }
  0xaf   :  { %v79_v45 = vmax.f32 %v78_v44, 1e-06 }
  0xb1   :  { %92 = vrcp.f32 %v79_v45 }
  0xbb   :  { %v93_v51 = vpop.eup %92 }
  0xbc   :  { %v81_v52 = vmul.f32 %v93_v51, %v35_v50 }
  0xbe   :  { %83 = vst.msk [vmem:[%s144_s3] sm:$0x3] %vm82_vm6, %v81_v52 }

// kernel: siamese_forward.2
= control target key start
LH: loop header
LB: loop body
LE: loop exit
PB: predicated region body
PF: predicated region fallthrough
CT: control target
= control target key end

     0   :  { %s8814_s25 = smov 0   ;;  %s10107_s0 = inlined_call_operand.vmem [shape: f32[2,2,12,16], index: 0, kind: input, shape index: {}]   ;;  %s10108_s1 = inlined_call_operand.vmem [shape: f32[2,2,2,32], index: 1, kind: input, shape index: {}]   ;;  %s10109_s2 = inlined_call_operand.vmem [shape: f32[2,2,2,32], index: 2, kind: input, shape index: {}]   ;;  %s10110_s3 = inlined_call_operand.vmem [shape: f32[4,16,32], index: 3, kind: input, shape index: {}]   ;;  %s10111_s4 = inlined_call_operand.vmem [shape: f32[4,32,32], index: 4, kind: input, shape index: {}]   ;;  %s10112_s5 = inlined_call_operand.vmem [shape: f32[4,1,32], index: 5, kind: input, shape index: {}]   ;;  %s10113_s6 = inlined_call_operand.vmem [shape: f32[4,16,32], index: 6, kind: input, shape index: {}]   ;;  %s10114_s7 = inlined_call_operand.vmem [shape: f32[4,32,32], index: 7, kind: input, shape index: {}]   ;;  %s10115_s8 = inlined_call_operand.vmem [shape: f32[4,1,32], index: 8, kind: input, shape index: {}]   ;;  %s10116_s9 = inlined_call_operand.vmem [shape: f32[16,640], index: 9, kind: input, shape index: {}]   ;;  %s10117_s10 = inlined_call_operand.vmem [shape: f32[1,128], index: 10, kind: input, shape index: {}]   ;;  %s10118_s11 = inlined_call_operand.vmem [shape: f32[2,2,32], index: 11, kind: output, shape index: {0}]   ;;  %s10119_s12 = inlined_call_operand.vmem [shape: f32[2,2,32], index: 12, kind: output, shape index: {1}]   ;;  %s10120_s13 = inlined_call_operand.vmem [shape: f32[2,2,128], index: 13, kind: output, shape index: {2}]  }
   0x1 LB: > { %s6770_s26 = sadd.s32 4294967295, %s8739_s25   ;;  %p6774_p0 = scmp.ge.s32.totalorder %s8739_s25, 1  ;;  %s8739_s25 = sphi %s8814_s25, %s24_s25  }
   0x2   : > { %p412_p1 = scmp.lt.s32.totalorder %s8739_s25, 3 }
   0x4   : > { %p413_p2 = pnand %p6774_p0, %p412_p1 }
   0x6   : > { %416 = sbr.rel (%p413_p2) target bundleno = 3275 (0xccb), region = 64 }
   0xd   : > { %v504_v0 = vld [vmem:[%s10110_s3] sm:$0xff]  ;;  %v505_v1 = vld [vmem:[%s10110_s3 + $0x8] sm:$0xff]  ;;  %p473_p3 = scmp.lt.s32.totalorder %s6770_s26, 1  ;;  %v10123_v2 = vmov 0.0|0.0   ;;  %vm8742_vm0 = vmmov 0   ;;  %v10121_v4 = vmov 0.0  }
   0xe   : > { %8311 = vmatprep.subr.bf16.mxu1 %v10123_v2  ;;  %v7965_v3 = vpack.c.bf16 %v505_v1, %v504_v0  ;;  %7964 = vmatprep.subr.bf16.mxu0 %v10123_v2  ;;  %v6787_v5 = vld [vmem:[%s10110_s3 + $0x10] sm:$0xff]  ;;  %v6788_v6 = vld [vmem:[%s10110_s3 + $0x18] sm:$0xff]  ;;  %v6792_v7 = vld [vmem:[%s10110_s3 + $0x20] sm:$0xff]  ;;  %vm515_vm1 = vcmask 130048   ;;  %vm917_vm2 = vcmask 261120   ;;  %vm1327_vm3 = vcmask 1041409  }
   0xf   : > { %7306 = vmatprep.mubr.msk.f32.mxu1 %vm8742_vm0, %v10121_v4  ;;  %s10158_s26 = smov (!%p473_p3, %s6770_s26), 1  ;;  %7303 = vmatprep.mubr.msk.f32.mxu0 %vm8742_vm0, %v10121_v4  ;;  %v6793_v8 = vld [vmem:[%s10110_s3 + $0x28] sm:$0xff]  ;;  %v7968_v11 = vpack.c.bf16 %v6788_v6, %v6787_v5  ;;  %v887_v20 = vld [vmem:[%s10111_s4] sm:$0xff]  ;;  %v6797_v22 = vld [vmem:[%s10110_s3 + $0x30] sm:$0xff]  ;;  %vm6503_vm4 = vcmask 1042432   ;;  %vm6504_vm5 = vcmask 1046532  }
  0x10   : > { %8312 = vmatpush3.bf16.msra.mxu1 %v7965_v3  ;;  %7966 = vmatpush3.bf16.msra.mxu0 %v7965_v3  ;;  %s6999_s18 = sshll.u32 %s10158_s26, 5  ;;  %v7971_v17 = vpack.c.bf16 %v6793_v8, %v6792_v7  ;;  %v888_v21 = vld [vmem:[%s10111_s4 + $0x8] sm:$0xff]  ;;  %v6798_v23 = vld [vmem:[%s10110_s3 + $0x38] sm:$0xff]  ;;  %v889_v25 = vld [vmem:[%s10111_s4 + $0x10] sm:$0xff]  ;;  %s7000_s24 = sshll.u32 %s10158_s26, 2  ;;  %vm6532_vm6 = vcmask 1041408  }
  0x11   : > { %7967 = vmatprep.subr.bf16.mxu1 %v10123_v2  ;;  %7970 = vmatprep.subr.bf16.mxu0 %v10123_v2  ;;  %s8848_s21 = scalar_lea.vmem %s10107_s0, %s6999_s18  ;;  %v8887_v24 = vpack.c.bf16 %v888_v21, %v887_v20  ;;  %v890_v26 = vld [vmem:[%s10111_s4 + $0x18] sm:$0xff]  ;;  %v7974_v27 = vpack.c.bf16 %v6798_v23, %v6797_v22  ;;  %s8927_s29 = scalar_lea.vmem %s10108_s1, %s7000_s24  ;;  %v6806_v29 = vld [vmem:[%s10111_s4 + $0x40] sm:$0xff]  ;;  %v6807_v30 = vld [vmem:[%s10111_s4 + $0x48] sm:$0xff]  ;;  %vm6533_vm7 = vcmask 1045508   ;;  %vm5549_vm9 = vcmask 1044484  }
  0x12   : > { %v501_v9 = vld [vmem:[%s8848_s21 + $0x8] sm:$0xf]  ;;  %v502_v10 = vld [vmem:[%s8848_s21 + $0x10] sm:$0xff]  ;;  %v500_v12 = vld [vmem:[%s8848_s21] sm:$0xff]  ;;  %v8905_v28 = vpack.c.bf16 %v890_v26, %v889_v25  ;;  %v8948_v34 = vpack.c.bf16 %v6807_v30, %v6806_v29  ;;  %s9125_s27 = scalar_lea.vmem %s10109_s2, %s7000_s24  ;;  %vm6557_vm10 = vcmask 1040384   ;;  %vm5552_vm12 = vcmask 258051  }
  0x13   : > { %v8859_v13 = vcombine.low %v501_v9, %v502_v10  ;;  %v510_v14 = vcombine.high %v500_v12, %v500_v12  ;;  %v503_v15 = vld [vmem:[%s8848_s21 + $0x18] sm:$0xf]  ;;  %v511_v16 = vcombine.high %v502_v10, %v502_v10  ;;  %v6802_v31 = vld [vmem:[%s10111_s4 + $0x20] sm:$0xff]  ;;  %v6803_v32 = vld [vmem:[%s10111_s4 + $0x28] sm:$0xff]  ;;  %s10059_s14 = sshll.u32 %s10158_s26, 1  ;;  %vm6211_vm14 = vcmask 254976  }
  0x14   : > { %v913_v33 = vld [vmem:[%s8927_s29] sm:$0x3]  ;;  %v6808_v35 = vld [vmem:[%s10111_s4 + $0x50] sm:$0xff]  ;;  %v6809_v36 = vld [vmem:[%s10111_s4 + $0x58] sm:$0xff]  ;;  %v8960_v37 = vpack.c.bf16 %v6803_v32, %v6802_v31  ;;  %s491_s15 = scalar_lea.vmem %s10118_s11, %s10059_s14  ;;  %s495_s20 = scalar_lea.vmem %s10119_s12, %s10059_s14 }
  0x15   : > { %10137 = vst [vmem:[#allocation2_spill] sm:$0xff] %v8859_v13  ;;  %7307 = vmatmul.mubr.msk.f32.vlgmr.msra.gmra.mrb[0].mxu1 %vm515_vm1, %v8859_v13  ;;  %v8864_v18 = vcombine.low %v500_v12, %v510_v14  ;;  %v8866_v19 = vcombine.low %v511_v16, %v503_v15  ;;  %v6804_v38 = vld [vmem:[%s10111_s4 + $0x30] sm:$0xff]  ;;  %v6805_v39 = vld [vmem:[%s10111_s4 + $0x38] sm:$0xff]  ;;  %v8970_v40 = vpack.c.bf16 %v6809_v36, %v6808_v35  ;;  %v6810_v42 = vld [vmem:[%s10111_s4 + $0x60] sm:$0xff] }
  0x16   : > { %7969 = vmatpush3.bf16.msra.mxu1 %v7968_v11  ;;  %7309 = vmatprep.mubr.msk.f32.mxu1 %vm8742_vm0, %v10121_v4  ;;  %v8980_v41 = vpack.c.bf16 %v6805_v39, %v6804_v38  ;;  %v6811_v43 = vld [vmem:[%s10111_s4 + $0x68] sm:$0xff]  ;;  %v6812_v45 = vld [vmem:[%s10111_s4 + $0x70] sm:$0xff]  ;;  %v6813_v46 = vld [vmem:[%s10111_s4 + $0x78] sm:$0xff] }
  0x17   : > { %10138 = vst [vmem:[#allocation3_spill] sm:$0xff] %v8864_v18  ;;  %10139 = vst [vmem:[#allocation4_spill] sm:$0xff] %v8866_v19  ;;  %7304 = vmatmul.mubr.msk.f32.vlgmr.msra.gmra.mrb[0].mxu0 %vm515_vm1, %v8864_v18  ;;  %7973 = vmatprep.subr.bf16.mxu1 %v10123_v2  ;;  %v9006_v44 = vpack.c.bf16 %v6811_v43, %v6810_v42  ;;  %v9018_v47 = vpack.c.bf16 %v6813_v46, %v6812_v45  ;;  %v9053_v1 = vld [vmem:[%s10112_s5] ss:$0 sm:$0xff]  ;;  %v9077_v25 = vld [vmem:[%s10112_s5 + $0x2] ss:$0 sm:$0xff] }
  0x18   : > { %7972 = vmatpush3.bf16.msra.mxu0 %v7971_v17  ;;  %7329 = vmatprep.mubr.msk.f32.mxu0 %vm8742_vm0, %v10121_v4  ;;  %v9061_v9 = vrot.slane %v9053_v1, 1  ;;  %v9089_v36 = vld [vmem:[%s10112_s5 + $0x1] ss:$0 sm:$0xff]  ;;  %vm10020_vm8 = vmor %vm6503_vm4, %vm6504_vm5 }
  0x19   : > { %7310 = vmatmul.mubr.msk.f32.gmra.mrb[2].mxu1 %vm515_vm1, %v8866_v19  ;;  %7976 = vmatprep.subr.bf16.mxu0 %v10123_v2  ;;  %v9093_v42 = vrot.slane %v9089_v36, 1  ;;  %vm10028_vm11 = vmor %vm6532_vm6, %vm6533_vm7 }
  0x1a   : > { %7316 = vmatprep.mubr.msk.f32.mxu1 %vm8742_vm0, %v10121_v4  ;;  %vm10047_vm13 = vmor %vm6557_vm10, %vm5549_vm9 }
  0x1b   : > { %7330 = vmatmul.mubr.msk.f32.vlgmr.msra.gmra.mrb[2].mxu0 %vm515_vm1, %v8864_v18 }
  0x1c   : > { %7332 = vmatprep.mubr.msk.f32.mxu0 %vm8742_vm0, %v10121_v4  ;;  %7978 = vmatpush3.bf16.msra.mxu0 %v8887_v24 }
  0x1d   : > { %7317 = vmatmul.mubr.msk.f32.vlgmr.msra.gmra.mrb[4].mxu1 %vm515_vm1, %v8864_v18  ;;  %7979 = vmatprep.subr.bf16.mxu0 %v10123_v2 }
  0x1e   : > { %7975 = vmatpush3.bf16.msra.mxu1 %v7974_v27  ;;  %7319 = vmatprep.mubr.msk.f32.mxu1 %vm8742_vm0, %v10121_v4 }
  0x1f   : > { %7333 = vmatmul.mubr.msk.f32.gmra.mrb[4].mxu0 %vm515_vm1, %v8859_v13  ;;  %7982 = vmatprep.subr.bf16.mxu1 %v10123_v2 }
  0x20   : > { %7335 = vmatprep.mubr.msk.f32.mxu0 %vm8742_vm0, %v10121_v4  ;;  %7981 = vmatpush3.bf16.msra.mxu0 %v8905_v28 }
  0x21   : > { %7320 = vmatmul.mubr.msk.f32.gmra.mrb[6].mxu1 %vm515_vm1, %v8859_v13  ;;  %7988 = vmatprep.subr.bf16.mxu0 %v10123_v2 }
  0x22   : > { %7322 = vmatprep.mubr.msk.f32.mxu1 %vm8742_vm0, %v10121_v4 }
  0x23   : > { %7336 = vmatmul.mubr.msk.f32.gmra.mrb[6].mxu0 %vm515_vm1, %v8866_v19 }
  0x24   : > { %7359 = vmatprep.mubr.msk.f32.mxu0 %vm8742_vm0, %v10121_v4 }
  0x25   : > { %7323 = vmatmul.mubr.msk.f32.gmra.mrb[8].mxu1 %vm515_vm1, %v8866_v19 }
  0x26   : > { %7342 = vmatprep.mubr.msk.f32.mxu1 %vm8742_vm0, %v10121_v4 }
  0x27   : > { %7360 = vmatmul.mubr.msk.f32.vlgmr.msra.gmra.mrb[8].mxu0 %vm917_vm2, %v913_v33 }
  0x28   : > { %7990 = vmatpush3.bf16.msra.mxu0 %v8948_v34  ;;  %7381 = vmatprep.mubr.msk.f32.mxu0 %vm8742_vm0, %v10121_v4 }
  0x29   : > { %7343 = vmatmul.mubr.msk.f32.vlgmr.msra.gmra.mrb[10].mxu1 %vm515_vm1, %v8864_v18  ;;  %7991 = vmatprep.subr.bf16.mxu0 %v10123_v2 }
  0x2a   : > { %7984 = vmatpush3.bf16.msra.mxu1 %v8960_v37  ;;  %7345 = vmatprep.mubr.msk.f32.mxu1 %vm8742_vm0, %v10121_v4 }
  0x2b   : > { %7985 = vmatprep.subr.bf16.mxu1 %v10123_v2 }
  0x2c   : > { %7993 = vmatpush3.bf16.msra.mxu0 %v8970_v40 }
  0x2d   : > { %7346 = vmatmul.mubr.msk.f32.gmra.mrb[12].mxu1 %vm515_vm1, %v8859_v13  ;;  %8000 = vmatprep.subr.bf16.mxu0 %v10123_v2 }
  0x2e   : > { %7348 = vmatprep.mubr.msk.f32.mxu1 %vm8742_vm0, %v10121_v4  ;;  %7987 = vmatpush3.bf16.msra.mxu1 %v8980_v41 }
  0x2f   : > { %7382 = vmatmul.mubr.msk.f32.vlgmr.msra.gmra.mrb[10].mxu0 %vm917_vm2, %v913_v33  ;;  %7994 = vmatprep.subr.bf16.mxu1 %v10123_v2 }
  0x30   : > { %8002 = vmatpush3.bf16.msra.mxu0 %v8887_v24  ;;  %7403 = vmatprep.mubr.msk.f32.mxu0 %vm8742_vm0, %v10121_v4 }
  0x31   : > { %7349 = vmatmul.mubr.msk.f32.gmra.mrb[14].mxu1 %vm515_vm1, %v8866_v19  ;;  %8003 = vmatprep.subr.bf16.mxu0 %v10123_v2 }
  0x32   : > { %7370 = vmatprep.mubr.msk.f32.mxu1 %vm8742_vm0, %v10121_v4 }
  0x34   : > { %8005 = vmatpush3.bf16.msra.mxu0 %v8905_v28 }
  0x35   : > { %7371 = vmatmul.mubr.msk.f32.vlgmr.msra.gmra.mrb[16].mxu1 %vm917_vm2, %v913_v33  ;;  %8012 = vmatprep.subr.bf16.mxu0 %v10123_v2 }
  0x36   : > { %7996 = vmatpush3.bf16.msra.mxu1 %v9006_v44  ;;  %7392 = vmatprep.mubr.msk.f32.mxu1 %vm8742_vm0, %v10121_v4 }
  0x37   : > { %7997 = vmatprep.subr.bf16.mxu1 %v10123_v2 }
  0x3a   : > { %7999 = vmatpush3.bf16.msra.mxu1 %v9018_v47 }
  0x3b   : > { %8006 = vmatprep.subr.bf16.mxu1 %v10123_v2 }
  0x3d   : > { %7393 = vmatmul.mubr.msk.f32.vlgmr.msra.gmra.mrb[18].mxu1 %vm917_vm2, %v913_v33  ;;  %v9084_v33 = vrot.slane %v9077_v25, 1 }
  0x3e   : > { %8008 = vmatpush3.bf16.msra.mxu1 %v8960_v37  ;;  %7414 = vmatprep.mubr.msk.f32.mxu1 %vm8742_vm0, %v10121_v4 }
  0x3f   : > { %8009 = vmatprep.subr.bf16.mxu1 %v10123_v2 }
  0x42   : > { %8011 = vmatpush3.bf16.msra.mxu1 %v8980_v41 }
  0x43   : > { %8018 = vmatprep.subr.bf16.mxu1 %v10123_v2 }
  0xe8   : > { %v9032_v48 = vpop.f32.mrb[0].mxu1 }
  0xe9   : > { %v7308_v49 = vpop.f32.mrb[1].mxu1  ;;  %v9057_v6 = vcombine.high %v9032_v48, %v9032_v48 }
  0xea   : > { %v9034_v50 = vpop.f32.mrb[0].mxu0 }
  0xeb   : > { %v7305_v51 = vpop.f32.mrb[1].mxu0 }
  0xec   : > { %v9036_v52 = vpop.f32.mrb[2].mxu1 }
  0xed   : > { %v7311_v53 = vpop.f32.mrb[3].mxu1 }
  0xee   : > { %v9038_v54 = vpop.f32.mrb[2].mxu0 }
  0xef   : > { %v7331_v55 = vpop.f32.mrb[3].mxu0 }
  0xf0   : > { %v9040_v56 = vpop.f32.mrb[4].mxu1 }
  0xf1   : > { %v7318_v57 = vpop.f32.mrb[5].mxu1 }
  0xf2   : > { %v9042_v58 = vpop.f32.mrb[4].mxu0 }
  0xf3   : > { %10140 = vst [vmem:[#allocation5_spill] sm:$0xff] %v9042_v58  ;;  %v7334_v59 = vpop.f32.mrb[5].mxu0  ;;  %v9072_v21 = vcombine.high %v9042_v58, %v9042_v58 }
  0xf4   : > { %v9044_v60 = vpop.f32.mrb[6].mxu1 }
  0xf5   : > { %10141 = vst [vmem:[#allocation6_spill] sm:$0xff] %v9044_v60  ;;  %v7321_v61 = vpop.f32.mrb[7].mxu1  ;;  %v9097_v43 = vcombine.high %v9044_v60, %v9044_v60 }
  0xf6   : > { %v9046_v62 = vpop.f32.mrb[6].mxu0 }
  0xf7   : > { %v7337_v63 = vpop.f32.mrb[7].mxu0 }
  0xf8   : > { %v9048_v0 = vpop.f32.mrb[8].mxu1 }
  0xf9   : > { %v7324_v3 = vpop.f32.mrb[9].mxu1 }
  0xfa   : > { %v987_v5 = vpop.f32.mrb[8].mxu0 }
  0xfb   : > { %v992_v7 = vrot.slane %v987_v5, 1  ;;  %v995_v8 = vadd.f32 %v987_v5, %v9034_v50  ;;  %v7361_v10 = vpop.f32.mrb[9].mxu0  ;;  %v9107_v5 = vld [vmem:[%s10112_s5 + $0x3] ss:$0 sm:$0xff] }
  0xfc   : > { %v9063_v11 = vpop.f32.mrb[10].mxu1 }
  0xfd   : > { %v996_v12 = vadd.f32 %v992_v7, %v9057_v6  ;;  %v1005_v14 = vadd.f32 %v9053_v1, %v995_v8  ;;  %v7344_v15 = vpop.f32.mrb[11].mxu1 }
  0xff   : > { %v1006_v16 = vadd.f32 %v9061_v9, %v996_v12  ;;  %v6819_v17 = vmul.f32 -1.442695, %v1005_v14  ;;  %v9110_v12 = vrot.slane %v9107_v5, 1 }
 0x100   : > { %v9068_v20 = vpop.f32.mrb[12].mxu1 }
 0x101   : > { %10142 = vst [vmem:[#allocation7_spill] sm:$0xff] %v9068_v20  ;;  %8327 = vpow2.f32 %v6819_v17  ;;  %v6820_v22 = vmul.f32 -1.442695, %v1006_v16  ;;  %v7347_v23 = vpop.f32.mrb[13].mxu1  ;;  %v9114_v14 = vcombine.high %v9068_v20, %v9068_v20 }
 0x102   : > { %v1183_v26 = vpop.f32.mrb[10].mxu0 }
 0x103   : > { %8329 = vpow2.f32 %v6820_v22  ;;  %v1188_v27 = vrot.slane %v1183_v26, 1  ;;  %v1191_v29 = vadd.f32 %v1183_v26, %v9038_v54  ;;  %v7383_v30 = vpop.f32.mrb[11].mxu0 }
 0x104   : > { %v9080_v31 = vpop.f32.mrb[14].mxu1 }
 0x105   : > { %v1192_v32 = vadd.f32 %v1188_v27, %v9072_v21  ;;  %v7350_v35 = vpop.f32.mrb[15].mxu1  ;;  %v1201_v38 = vadd.f32 %v9077_v25, %v1191_v29 }
 0x107   : > { %v1202_v45 = vadd.f32 %v9084_v33, %v1192_v32  ;;  %8331 = vtanh.f32 %v1201_v38 }
 0x108   : > { %v1085_v39 = vpop.f32.mrb[16].mxu1 }
 0x109   : > { %v1090_v46 = vrot.slane %v1085_v39, 1  ;;  %v1093_v49 = vadd.f32 %v1085_v39, %v9040_v56  ;;  %v7372_v51 = vpop.f32.mrb[17].mxu1  ;;  %8333 = vtanh.f32 %v1202_v45 }
 0x10b   : > { %v8328_v53 = vpop.eup %8327  ;;  %v1094_v55 = vadd.f32 %v1090_v46, %v9097_v43  ;;  %v1103_v57 = vadd.f32 %v9089_v36, %v1093_v49 }
 0x10c   : > { %v1013_v59 = vadd.f32 1.0, %v8328_v53 }
 0x10d   : > { %v8330_v61 = vpop.eup %8329  ;;  %v1104_v63 = vadd.f32 %v9093_v42, %v1094_v55  ;;  %v6823_v3 = vmul.f32 -1.442695, %v1103_v57  ;;  %v915_v55 = vld [vmem:[%s9125_s27] sm:$0x3] }
 0x10e   : > { %v1014_v7 = vadd.f32 1.0, %v8330_v61  ;;  %8335 = vrcp.f32 %v1013_v59  ;;  %v1304_v61 = vrot.slane %v915_v55, 1 }
 0x10f   : > { %8337 = vpow2.f32 %v6823_v3  ;;  %v6824_v8 = vmul.f32 -1.442695, %v1104_v63 }
 0x110   : > { %8339 = vrcp.f32 %v1014_v7  ;;  %v1271_v10 = vpop.f32.mrb[18].mxu1 }
 0x111   : > { %8341 = vpow2.f32 %v6824_v8  ;;  %v1276_v15 = vrot.slane %v1271_v10, 1  ;;  %v1279_v16 = vadd.f32 %v1271_v10, %v9063_v11  ;;  %v7394_v17 = vpop.f32.mrb[19].mxu1  ;;  %v8332_v29 = vpop.eup %8331 }
 0x113   : > { %v1280_v22 = vadd.f32 %v1276_v15, %v9114_v14  ;;  %v1289_v23 = vadd.f32 %v9107_v5, %v1279_v16  ;;  %v8334_v30 = vpop.eup %8333 }
 0x115   : > { %v1290_v26 = vadd.f32 %v9110_v12, %v1280_v22  ;;  %v6829_v27 = vmul.f32 -1.442695, %v1289_v23  ;;  %v1319_v22 = vlaneseq }
 0x117   : > { %v6830_v32 = vmul.f32 -1.442695, %v1290_v26  ;;  %8343 = vpow2.f32 %v6829_v27  ;;  %v9134_v23 = vshrl.u32 %v1319_v22, 7 }
 0x118   : > { %v8336_v35 = vpop.eup %8335 }
 0x119   : > { %v8338_v38 = vpop.eup %8337  ;;  %v1309_v39 = vmul.f32 %v8336_v35, %v8332_v29  ;;  %8345 = vpow2.f32 %v6830_v32  ;;  %v9137_v32 = vsub.s32 0, %v9134_v23 }
 0x11a   : > { %v8340_v45 = vpop.eup %8339  ;;  %v1111_v46 = vadd.f32 1.0, %v8338_v38 }
 0x11b   : > { %v8342_v49 = vpop.eup %8341  ;;  %v1310_v51 = vmul.f32 %v8340_v45, %v8334_v30 }
 0x11c   : > { %v1112_v53 = vadd.f32 1.0, %v8342_v49  ;;  %8347 = vrcp.f32 %v1111_v46 }
 0x11e   : > { %8349 = vrcp.f32 %v1112_v53 }
 0x121   : > { %v8344_v57 = vpop.eup %8343 }
 0x122   : > { %v1297_v3 = vadd.f32 1.0, %v8344_v57 }
 0x123   : > { %v8346_v59 = vpop.eup %8345 }
 0x124   : > { %v1298_v10 = vadd.f32 1.0, %v8346_v59  ;;  %8351 = vrcp.f32 %v1297_v3 }
 0x126   : > { %v8348_v63 = vpop.eup %8347 }
 0x127   : > { %v1307_v7 = vmul.f32 %v8348_v63, %v915_v55  ;;  %v9174_v55 = vrot.slane %v9089_v36, 7 }
 0x128   : > { %v8350_v8 = vpop.eup %8349 }
 0x129   : > { %v1308_v15 = vmul.f32 %v8350_v8, %v1304_v61  ;;  %v9128_v16 = vadd.f32 %v1309_v39, %v1307_v7 }
 0x12b   : > { %v9130_v17 = vadd.f32 %v1310_v51, %v1308_v15  ;;  %8353 = vtanh.f32 %v9128_v16  ;;  %v9171_v51 = vrot.slane %v9053_v1, 7 }
 0x12c   : > { %8355 = vrcp.f32 %v1298_v10 }
 0x12d   : > { %8357 = vtanh.f32 %v9130_v17 }
 0x12e   : > { %v8352_v26 = vpop.eup %8351 }
 0x135   : > { %v8354_v27 = vpop.eup %8353 }
 0x136   : > { %v8356_v29 = vpop.eup %8355  ;;  %v1315_v30 = vmul.f32 %v8354_v27, %v8352_v26 }
 0x137   : > { %v8358_v35 = vpop.eup %8357 }
 0x138   : > { %v1316_v38 = vmul.f32 %v8358_v35, %v8356_v29  ;;  %v1322_v39 = vrot.slane %v1315_v30, %v9137_v32 }
 0x13a   : > { %v1326_v45 = vrot.slane %v1316_v38, %v9137_v32 }
 0x13c   : > { %v1328_v46 = vsel %vm1327_vm3, %v1326_v45, %v1322_v39  ;;  %v9185_v45 = vrot.slane %v9077_v25, 7 }
 0x13d   : > { %7404 = vmatmul.mubr.msk.f32.vlgmr.msra.gmra.mrb[12].mxu0 %vm917_vm2, %v1328_v46  ;;  %7415 = vmatmul.mubr.msk.f32.vlgmr.msra.gmra.mrb[20].mxu1 %vm917_vm2, %v1328_v46 }
 0x13e   : > { %8014 = vmatpush3.bf16.msra.mxu0 %v8948_v34  ;;  %8020 = vmatpush3.bf16.msra.mxu1 %v9006_v44 }
 0x13f   : > { %8015 = vmatprep.subr.bf16.mxu0 %v10123_v2  ;;  %8021 = vmatprep.subr.bf16.mxu1 %v10123_v2 }
 0x140   : > { %7425 = vmatprep.mubr.msk.f32.mxu0 %vm8742_vm0, %v10121_v4  ;;  %7436 = vmatprep.mubr.msk.f32.mxu1 %vm8742_vm0, %v10121_v4 }
 0x142   : > { %8017 = vmatpush3.bf16.msra.mxu0 %v8970_v40  ;;  %8023 = vmatpush3.bf16.msra.mxu1 %v9018_v47 }
 0x143   : > { %8024 = vmatprep.subr.bf16.mxu0 %v10123_v2  ;;  %8030 = vmatprep.subr.bf16.mxu1 %v10123_v2 }
 0x145   : > { %7426 = vmatmul.mubr.msk.f32.vlgmr.msra.gmra.mrb[14].mxu0 %vm917_vm2, %v1328_v46  ;;  %7437 = vmatmul.mubr.msk.f32.vlgmr.msra.gmra.mrb[22].mxu1 %vm917_vm2, %v1328_v46 }
 0x146   : > { %8026 = vmatpush3.bf16.msra.mxu0 %v8887_v24  ;;  %8032 = vmatpush3.bf16.msra.mxu1 %v8960_v37 }
 0x147   : > { %8027 = vmatprep.subr.bf16.mxu0 %v10123_v2  ;;  %8033 = vmatprep.subr.bf16.mxu1 %v10123_v2 }
 0x148   : > { %7447 = vmatprep.mubr.msk.f32.mxu0 %vm8742_vm0, %v10121_v4  ;;  %7458 = vmatprep.mubr.msk.f32.mxu1 %vm8742_vm0, %v10121_v4 }
 0x14a   : > { %8029 = vmatpush3.bf16.msra.mxu0 %v8905_v28  ;;  %8035 = vmatpush3.bf16.msra.mxu1 %v8980_v41 }
 0x14b   : > { %8036 = vmatprep.subr.bf16.mxu0 %v10123_v2  ;;  %8042 = vmatprep.subr.bf16.mxu1 %v10123_v2 }
 0x210   : > { %v1397_v49 = vpop.f32.mrb[12].mxu0  ;;  %v1489_v53 = vpop.f32.mrb[20].mxu1 }
 0x211   : > { %v1402_v57 = vrot.slane %v1397_v49, 7  ;;  %v1406_v59 = vadd.f32 %v1397_v49, %v9057_v6  ;;  %v1494_v61 = vrot.slane %v1489_v53, 7  ;;  %v1498_v63 = vadd.f32 %v1489_v53, %v9097_v43  ;;  %v7405_v3 = vpop.f32.mrb[13].mxu0  ;;  %v7416_v7 = vpop.f32.mrb[21].mxu1 }
 0x212   : > { %v9188_v49 = vrot.slane %v9107_v5, 7 }
 0x213   : > { %v1405_v8 = vadd.f32 %v1402_v57, %v9034_v50  ;;  %v1410_v10 = vadd.f32 %v9053_v1, %v1406_v59  ;;  %v1497_v15 = vadd.f32 %v1494_v61, %v9040_v56  ;;  %v1502_v22 = vadd.f32 %v9089_v36, %v1498_v63 }
 0x215   : > { %v1409_v26 = vadd.f32 %v9171_v51, %v1405_v8  ;;  %v6833_v27 = vmul.f32 -1.442695, %v1410_v10  ;;  %v1501_v29 = vadd.f32 %v9174_v55, %v1497_v15  ;;  %v6836_v30 = vmul.f32 -1.442695, %v1502_v22 }
 0x217   : > { %v6832_v35 = vmul.f32 -1.442695, %v1409_v26  ;;  %8359 = vpow2.f32 %v6833_v27  ;;  %v6835_v38 = vmul.f32 -1.442695, %v1501_v29 }
 0x218   : > { %8361 = vpow2.f32 %v6836_v30  ;;  %v1581_v39 = vpop.f32.mrb[14].mxu0  ;;  %v1663_v46 = vpop.f32.mrb[22].mxu1 }
 0x219   : > { %8363 = vpow2.f32 %v6832_v35  ;;  %v1586_v53 = vrot.slane %v1581_v39, 7  ;;  %v1590_v57 = vadd.f32 %v1581_v39, %v9072_v21  ;;  %v1668_v59 = vrot.slane %v1663_v46, 7  ;;  %v7427_v61 = vpop.f32.mrb[15].mxu0  ;;  %v7438_v63 = vpop.f32.mrb[23].mxu1 }
 0x21a   : > { %8365 = vpow2.f32 %v6835_v38  ;;  %v1672_v3 = vadd.f32 %v1663_v46, %v9114_v14 }
 0x21b   : > { %v1589_v7 = vadd.f32 %v1586_v53, %v9038_v54  ;;  %v1671_v8 = vadd.f32 %v1668_v59, %v9063_v11  ;;  %v1594_v10 = vadd.f32 %v9077_v25, %v1590_v57 }
 0x21c   : > { %v1676_v15 = vadd.f32 %v9107_v5, %v1672_v3 }
 0x21d   : > { %v1593_v22 = vadd.f32 %v9185_v45, %v1589_v7  ;;  %v1675_v26 = vadd.f32 %v9188_v49, %v1671_v8  ;;  %8367 = vtanh.f32 %v1594_v10  ;;  %v1692_v10 = vrot.slane %v9130_v17, 7 }
 0x21e   : > { %v6840_v27 = vmul.f32 -1.442695, %v1676_v15 }
 0x21f   : > { %v6839_v29 = vmul.f32 -1.442695, %v1675_v26  ;;  %8369 = vtanh.f32 %v1593_v22 }
 0x220   : > { %8371 = vpow2.f32 %v6840_v27 }
 0x221   : > { %v8360_v30 = vpop.eup %8359  ;;  %8373 = vpow2.f32 %v6839_v29  ;;  %v1691_v29 = vrot.slane %v9128_v16, 7  ;;  %v9207_v16 = vsub.s32 1, %v9134_v23 }
 0x222   : > { %v8362_v35 = vpop.eup %8361  ;;  %v1418_v38 = vadd.f32 1.0, %v8360_v30 }
 0x223   : > { %v8364_v39 = vpop.eup %8363  ;;  %v1510_v46 = vadd.f32 1.0, %v8362_v35 }
 0x224   : > { %v8366_v53 = vpop.eup %8365  ;;  %v1417_v59 = vadd.f32 1.0, %v8364_v39  ;;  %8375 = vrcp.f32 %v1418_v38 }
 0x225   : > { %v1509_v57 = vadd.f32 1.0, %v8366_v53  ;;  %8377 = vrcp.f32 %v1510_v46 }
 0x226   : > { %8379 = vrcp.f32 %v1417_v59 }
 0x227   : > { %8381 = vrcp.f32 %v1509_v57  ;;  %v8368_v61 = vpop.eup %8367 }
 0x229   : > { %v8370_v63 = vpop.eup %8369 }
 0x22a   : > { %v8372_v3 = vpop.eup %8371 }
 0x22b   : > { %v8374_v7 = vpop.eup %8373  ;;  %v1684_v26 = vadd.f32 1.0, %v8372_v3 }
 0x22c   : > { %v1683_v39 = vadd.f32 1.0, %v8374_v7 }
 0x22d   : > { %8383 = vrcp.f32 %v1684_v26  ;;  %v9241_v26 = vrot.slane %v9053_v1, 6 }
 0x22e   : > { %v8376_v8 = vpop.eup %8375 }
 0x22f   : > { %v8378_v15 = vpop.eup %8377  ;;  %v1698_v22 = vmul.f32 %v8376_v8, %v8368_v61 }
 0x230   : > { %v8380_v27 = vpop.eup %8379  ;;  %v1696_v30 = vmul.f32 %v8378_v15, %v1692_v10 }
 0x231   : > { %v8382_v35 = vpop.eup %8381  ;;  %v1697_v38 = vmul.f32 %v8380_v27, %v8370_v63 }
 0x232   : > { %v1695_v46 = vmul.f32 %v8382_v35, %v1691_v29  ;;  %v9200_v53 = vadd.f32 %v1698_v22, %v1696_v30  ;;  %v9244_v29 = vrot.slane %v9089_v36, 6 }
 0x234   : > { %v9202_v59 = vadd.f32 %v1697_v38, %v1695_v46  ;;  %8385 = vtanh.f32 %v9200_v53 }
 0x235   : > { %8387 = vrcp.f32 %v1683_v39 }
 0x236   : > { %8389 = vtanh.f32 %v9202_v59 }
 0x237   : > { %v8384_v17 = vpop.eup %8383 }
 0x23e   : > { %v8386_v57 = vpop.eup %8385 }
 0x23f   : > { %v8388_v61 = vpop.eup %8387  ;;  %v1704_v3 = vmul.f32 %v8386_v57, %v8384_v17 }
 0x240   : > { %v8390_v63 = vpop.eup %8389 }
 0x241   : > { %v1703_v7 = vmul.f32 %v8390_v63, %v8388_v61  ;;  %v1714_v10 = vrot.slane %v1704_v3, %v9207_v16 }
 0x243   : > { %v1710_v8 = vrot.slane %v1703_v7, %v9207_v16 }
 0x245   : > { %v1715_v15 = vsel %vm1327_vm3, %v1714_v10, %v1710_v8 }
 0x246   : > { %7448 = vmatmul.mubr.msk.f32.vlgmr.msra.gmra.mrb[16].mxu0 %vm917_vm2, %v1715_v15  ;;  %7459 = vmatmul.mubr.msk.f32.vlgmr.msra.gmra.mrb[24].mxu1 %vm917_vm2, %v1715_v15 }
 0x247   : > { %8038 = vmatpush3.bf16.msra.mxu0 %v8948_v34  ;;  %8044 = vmatpush3.bf16.msra.mxu1 %v9006_v44 }
 0x248   : > { %8039 = vmatprep.subr.bf16.mxu0 %v10123_v2  ;;  %8045 = vmatprep.subr.bf16.mxu1 %v10123_v2 }
 0x249   : > { %7469 = vmatprep.mubr.msk.f32.mxu0 %vm8742_vm0, %v10121_v4  ;;  %7480 = vmatprep.mubr.msk.f32.mxu1 %vm8742_vm0, %v10121_v4 }
 0x24b   : > { %8041 = vmatpush3.bf16.msra.mxu0 %v8970_v40  ;;  %8047 = vmatpush3.bf16.msra.mxu1 %v9018_v47 }
 0x24c   : > { %8048 = vmatprep.subr.bf16.mxu0 %v10123_v2  ;;  %8054 = vmatprep.subr.bf16.mxu1 %v10123_v2 }
 0x24e   : > { %7470 = vmatmul.mubr.msk.f32.vlgmr.msra.gmra.mrb[18].mxu0 %vm917_vm2, %v1715_v15  ;;  %7481 = vmatmul.mubr.msk.f32.vlgmr.msra.gmra.mrb[26].mxu1 %vm917_vm2, %v1715_v15 }
 0x24f   : > { %8050 = vmatpush3.bf16.msra.mxu0 %v8887_v24  ;;  %8056 = vmatpush3.bf16.msra.mxu1 %v8960_v37 }
 0x250   : > { %8051 = vmatprep.subr.bf16.mxu0 %v10123_v2  ;;  %8057 = vmatprep.subr.bf16.mxu1 %v10123_v2 }
 0x251   : > { %7491 = vmatprep.mubr.msk.f32.mxu0 %vm8742_vm0, %v10121_v4  ;;  %7502 = vmatprep.mubr.msk.f32.mxu1 %vm8742_vm0, %v10121_v4 }
 0x253   : > { %8053 = vmatpush3.bf16.msra.mxu0 %v8905_v28  ;;  %8059 = vmatpush3.bf16.msra.mxu1 %v8980_v41 }
 0x254   : > { %8060 = vmatprep.subr.bf16.mxu0 %v10123_v2  ;;  %8066 = vmatprep.subr.bf16.mxu1 %v10123_v2 }
 0x319   : > { %v1784_v22 = vpop.f32.mrb[16].mxu0  ;;  %v1877_v27 = vpop.f32.mrb[24].mxu1 }
 0x31a   : > { %v1789_v30 = vrot.slane %v1784_v22, 6  ;;  %v1790_v35 = vrot.slane %v1784_v22, 7  ;;  %v1882_v38 = vrot.slane %v1877_v27, 6  ;;  %v1883_v39 = vrot.slane %v1877_v27, 7  ;;  %v7449_v46 = vpop.f32.mrb[17].mxu0  ;;  %v7460_v17 = vpop.f32.mrb[25].mxu1 }
 0x31c   : > { %v1793_v57 = vadd.f32 %v1789_v30, %v9034_v50  ;;  %v1794_v61 = vadd.f32 %v1790_v35, %v9057_v6  ;;  %v1886_v3 = vadd.f32 %v1882_v38, %v9040_v56  ;;  %v1887_v63 = vadd.f32 %v1883_v39, %v9097_v43 }
 0x31d   : > { %v9255_v35 = vrot.slane %v9107_v5, 6 }
 0x31e   : > { %v1797_v7 = vadd.f32 %v9241_v26, %v1793_v57  ;;  %v1798_v8 = vadd.f32 %v1794_v61, %v9171_v51  ;;  %v1890_v10 = vadd.f32 %v9244_v29, %v1886_v3  ;;  %v1891_v15 = vadd.f32 %v1887_v63, %v9174_v55 }
 0x31f   : > { %v9258_v61 = vrot.slane %v9077_v25, 6 }
 0x320   : > { %v6842_v22 = vmul.f32 -1.442695, %v1797_v7  ;;  %v6843_v27 = vmul.f32 -1.442695, %v1798_v8  ;;  %v6845_v46 = vmul.f32 -1.442695, %v1890_v10 }
 0x321   : > { %v6846_v17 = vmul.f32 -1.442695, %v1891_v15  ;;  %v1970_v4 = vpop.f32.mrb[18].mxu0  ;;  %v2053_v30 = vpop.f32.mrb[26].mxu1 }
 0x322   : > { %8391 = vpow2.f32 %v6842_v22  ;;  %v1975_v38 = vrot.slane %v1970_v4, 6  ;;  %v1976_v39 = vrot.slane %v1970_v4, 7  ;;  %v2058_v2 = vrot.slane %v2053_v30, 6  ;;  %v7471_v57 = vpop.f32.mrb[19].mxu0  ;;  %v7482_v19 = vpop.f32.mrb[27].mxu1 }
 0x323   : > { %8393 = vpow2.f32 %v6843_v27  ;;  %v2059_v3 = vrot.slane %v2053_v30, 7 }
 0x324   : > { %8395 = vpow2.f32 %v6845_v46  ;;  %v1979_v63 = vadd.f32 %v1975_v38, %v9038_v54  ;;  %v1980_v7 = vadd.f32 %v1976_v39, %v9072_v21  ;;  %v2062_v8 = vadd.f32 %v2058_v2, %v9063_v11 }
 0x325   : > { %8397 = vpow2.f32 %v6846_v17  ;;  %v2063_v10 = vadd.f32 %v2059_v3, %v9114_v14 }
 0x326   : > { %v2066_v4 = vadd.f32 %v9255_v35, %v2062_v8  ;;  %v1983_v15 = vadd.f32 %v9258_v61, %v1979_v63  ;;  %v1984_v22 = vadd.f32 %v1980_v7, %v9185_v45 }
 0x327   : > { %v2067_v19 = vadd.f32 %v2063_v10, %v9188_v49 }
 0x328   : > { %v6849_v27 = vmul.f32 -1.442695, %v2066_v4  ;;  %8399 = vtanh.f32 %v1983_v15 }
 0x329   : > { %v6850_v30 = vmul.f32 -1.442695, %v2067_v19  ;;  %8401 = vtanh.f32 %v1984_v22  ;;  %v2082_v22 = vrot.slane %v9202_v59, 7 }
 0x32a   : > { %8403 = vpow2.f32 %v6849_v27 }
 0x32b   : > { %8405 = vpow2.f32 %v6850_v30  ;;  %v2083_v30 = vrot.slane %v9200_v53, 7 }
 0x32c   : > { %v8392_v46 = vpop.eup %8391 }
 0x32d   : > { %v8394_v38 = vpop.eup %8393  ;;  %v1805_v39 = vadd.f32 1.0, %v8392_v46 }
 0x32e   : > { %v8396_v2 = vpop.eup %8395  ;;  %v1806_v17 = vadd.f32 1.0, %v8394_v38 }
 0x32f   : > { %v8398_v57 = vpop.eup %8397  ;;  %8407 = vrcp.f32 %v1805_v39  ;;  %v1898_v3 = vadd.f32 1.0, %v8396_v2 }
 0x330   : > { %8409 = vrcp.f32 %v1806_v17  ;;  %v1899_v63 = vadd.f32 1.0, %v8398_v57 }
 0x331   : > { %8411 = vrcp.f32 %v1898_v3 }
 0x332   : > { %8413 = vrcp.f32 %v1899_v63  ;;  %v8400_v8 = vpop.eup %8399 }
 0x333   : > { %v8402_v7 = vpop.eup %8401 }
 0x334   : > { %v8404_v10 = vpop.eup %8403 }
 0x335   : > { %v8406_v4 = vpop.eup %8405  ;;  %v2074_v27 = vadd.f32 1.0, %v8404_v10  ;;  %v9277_v10 = vsub.s32 2, %v9134_v23 }
 0x336   : > { %v2075_v39 = vadd.f32 1.0, %v8406_v4 }
 0x337   : > { %8415 = vrcp.f32 %v2074_v27  ;;  %v10144_v27 = vmov 0.0  }
 0x338   : > { %8417 = vrcp.f32 %v2075_v39 }
 0x339   : > { %v8408_v15 = vpop.eup %8407 }
 0x33a   : > { %v8410_v19 = vpop.eup %8409  ;;  %v2088_v46 = vmul.f32 %v8408_v15, %v8400_v8 }
 0x33b   : > { %v8412_v13 = vpop.eup %8411  ;;  %v2089_v38 = vmul.f32 %v8410_v19, %v8402_v7 }
 0x33c   : > { %v8414_v2 = vpop.eup %8413  ;;  %v2086_v17 = vmul.f32 %v8412_v13, %v2082_v22 }
 0x33d   : > { %v2087_v57 = vmul.f32 %v8414_v2, %v2083_v30  ;;  %v9314_v2 = vrot.slane %v9089_v36, 5 }
 0x33e   : > { %v9270_v3 = vadd.f32 %v2088_v46, %v2086_v17  ;;  %v10143_v46 = vmov 0.0|0.0  }
 0x33f   : > { %v9272_v63 = vadd.f32 %v2089_v38, %v2087_v57  ;;  %v9311_v38 = vrot.slane %v9053_v1, 5 }
 0x340   : > { %8419 = vtanh.f32 %v9270_v3 }
 0x341   : > { %8421 = vtanh.f32 %v9272_v63  ;;  %v8416_v59 = vpop.eup %8415 }
 0x342   : > { %v8418_v8 = vpop.eup %8417 }
 0x34a   : > { %v8420_v53 = vpop.eup %8419 }
 0x34b   : > { %v8422_v7 = vpop.eup %8421  ;;  %v2094_v4 = vmul.f32 %v8420_v53, %v8416_v59 }
 0x34c   : > { %v2095_v13 = vmul.f32 %v8422_v7, %v8418_v8 }
 0x34d   : > { %v2101_v15 = vrot.slane %v2094_v4, %v9277_v10 }
 0x34e   : > { %v2105_v19 = vrot.slane %v2095_v13, %v9277_v10 }
 0x350   : > { %v2106_v22 = vsel %vm1327_vm3, %v2105_v19, %v2101_v15 }
 0x351   : > { %7492 = vmatmul.mubr.msk.f32.vlgmr.msra.gmra.mrb[20].mxu0 %vm917_vm2, %v2106_v22  ;;  %7503 = vmatmul.mubr.msk.f32.vlgmr.msra.gmra.mrb[28].mxu1 %vm917_vm2, %v2106_v22 }
 0x352   : > { %8062 = vmatpush3.bf16.msra.mxu0 %v8948_v34  ;;  %8068 = vmatpush3.bf16.msra.mxu1 %v9006_v44 }
 0x353   : > { %8063 = vmatprep.subr.bf16.mxu0 %v10143_v46  ;;  %8069 = vmatprep.subr.bf16.mxu1 %v10143_v46 }
 0x354   : > { %7513 = vmatprep.mubr.msk.f32.mxu0 %vm8742_vm0, %v10144_v27  ;;  %7524 = vmatprep.mubr.msk.f32.mxu1 %vm8742_vm0, %v10144_v27 }
 0x356   : > { %8065 = vmatpush3.bf16.msra.mxu0 %v8970_v40  ;;  %8071 = vmatpush3.bf16.msra.mxu1 %v9018_v47 }
 0x357   : > { %8072 = vmatprep.subr.bf16.mxu0 %v10143_v46  ;;  %8078 = vmatprep.subr.bf16.mxu1 %v10143_v46 }
 0x359   : > { %7514 = vmatmul.mubr.msk.f32.vlgmr.msra.gmra.mrb[22].mxu0 %vm917_vm2, %v2106_v22  ;;  %7525 = vmatmul.mubr.msk.f32.vlgmr.msra.gmra.mrb[30].mxu1 %vm917_vm2, %v2106_v22 }
 0x35a   : > { %8074 = vmatpush3.bf16.msra.mxu0 %v8887_v24  ;;  %8080 = vmatpush3.bf16.msra.mxu1 %v8960_v37 }
 0x35b   : > { %8075 = vmatprep.subr.bf16.mxu0 %v10143_v46  ;;  %8081 = vmatprep.subr.bf16.mxu1 %v10143_v46 }
 0x35c   : > { %7535 = vmatprep.mubr.msk.f32.mxu0 %vm8742_vm0, %v10144_v27  ;;  %7546 = vmatprep.mubr.msk.f32.mxu1 %vm8742_vm0, %v10144_v27 }
 0x35e   : > { %8077 = vmatpush3.bf16.msra.mxu0 %v8905_v28  ;;  %8083 = vmatpush3.bf16.msra.mxu1 %v8980_v41 }
 0x35f   : > { %8084 = vmatprep.subr.bf16.mxu0 %v10143_v46  ;;  %8090 = vmatprep.subr.bf16.mxu1 %v10143_v46 }
 0x424   : > { %v2175_v30 = vpop.f32.mrb[20].mxu0  ;;  %v2268_v39 = vpop.f32.mrb[28].mxu1 }
 0x425   : > { %v2180_v17 = vrot.slane %v2175_v30, 5  ;;  %v2181_v57 = vrot.slane %v2175_v30, 6  ;;  %v2273_v59 = vrot.slane %v2268_v39, 5  ;;  %v2274_v8 = vrot.slane %v2268_v39, 6  ;;  %v7493_v53 = vpop.f32.mrb[21].mxu0  ;;  %v7504_v7 = vpop.f32.mrb[29].mxu1 }
 0x427   : > { %v2184_v4 = vadd.f32 %v2180_v17, %v9034_v50  ;;  %v2185_v13 = vadd.f32 %v2181_v57, %v9057_v6  ;;  %v2277_v15 = vadd.f32 %v2273_v59, %v9040_v56  ;;  %v2278_v19 = vadd.f32 %v2274_v8, %v9097_v43 }
 0x428   : > { %v9325_v6 = vrot.slane %v9107_v5, 5 }
 0x429   : > { %v2188_v22 = vadd.f32 %v9311_v38, %v2184_v4  ;;  %v2189_v18 = vadd.f32 %v2185_v13, %v9241_v26  ;;  %v2281_v20 = vadd.f32 %v9314_v2, %v2277_v15  ;;  %v2282_v30 = vadd.f32 %v2278_v19, %v9244_v29 }
 0x42a   : > { %v9328_v13 = vrot.slane %v9077_v25, 5 }
 0x42b   : > { %v6852_v58 = vmul.f32 -1.442695, %v2188_v22  ;;  %v6853_v39 = vmul.f32 -1.442695, %v2189_v18  ;;  %v6855_v53 = vmul.f32 -1.442695, %v2281_v20 }
 0x42c   : > { %v6856_v7 = vmul.f32 -1.442695, %v2282_v30  ;;  %v2361_v60 = vpop.f32.mrb[22].mxu0  ;;  %v2444_v17 = vpop.f32.mrb[30].mxu1 }
 0x42d   : > { %8423 = vpow2.f32 %v6852_v58  ;;  %v2366_v57 = vrot.slane %v2361_v60, 5  ;;  %v2367_v43 = vrot.slane %v2361_v60, 6  ;;  %v2449_v59 = vrot.slane %v2444_v17, 5  ;;  %v7515_v8 = vpop.f32.mrb[23].mxu0  ;;  %v7526_v4 = vpop.f32.mrb[31].mxu1 }
 0x42e   : > { %8425 = vpow2.f32 %v6853_v39  ;;  %v2450_v15 = vrot.slane %v2444_v17, 6 }
 0x42f   : > { %8427 = vpow2.f32 %v6855_v53  ;;  %v2370_v18 = vadd.f32 %v2366_v57, %v9038_v54  ;;  %v2371_v20 = vadd.f32 %v2367_v43, %v9072_v21  ;;  %v2453_v19 = vadd.f32 %v2449_v59, %v9063_v11 }
 0x430   : > { %8429 = vpow2.f32 %v6856_v7  ;;  %v2454_v58 = vadd.f32 %v2450_v15, %v9114_v14 }
 0x431   : > { %v2457_v60 = vadd.f32 %v9325_v6, %v2453_v19  ;;  %v2374_v22 = vadd.f32 %v9328_v13, %v2370_v18  ;;  %v2375_v39 = vadd.f32 %v2371_v20, %v9258_v61 }
 0x432   : > { %v2458_v30 = vadd.f32 %v2454_v58, %v9255_v35 }
 0x433   : > { %v6859_v8 = vmul.f32 -1.442695, %v2457_v60  ;;  %8431 = vtanh.f32 %v2374_v22  ;;  %v2473_v22 = vrot.slane %v9270_v3, 7 }
 0x434   : > { %v6860_v17 = vmul.f32 -1.442695, %v2458_v30  ;;  %8433 = vtanh.f32 %v2375_v39 }
 0x435   : > { %8435 = vpow2.f32 %v6859_v8 }
 0x436   : > { %8437 = vpow2.f32 %v6860_v17  ;;  %v2474_v17 = vrot.slane %v9272_v63, 7 }
 0x437   : > { %v8424_v53 = vpop.eup %8423 }
 0x438   : > { %v8426_v57 = vpop.eup %8425  ;;  %v2196_v21 = vadd.f32 1.0, %v8424_v53 }
 0x439   : > { %v8428_v43 = vpop.eup %8427  ;;  %v2197_v7 = vadd.f32 1.0, %v8426_v57 }
 0x43a   : > { %v8430_v14 = vpop.eup %8429  ;;  %8439 = vrcp.f32 %v2196_v21  ;;  %v2289_v59 = vadd.f32 1.0, %v8428_v43 }
 0x43b   : > { %8441 = vrcp.f32 %v2197_v7  ;;  %v2290_v4 = vadd.f32 1.0, %v8430_v14 }
 0x43c   : > { %8443 = vrcp.f32 %v2289_v59 }
 0x43d   : > { %8445 = vrcp.f32 %v2290_v4  ;;  %v8432_v15 = vpop.eup %8431 }
 0x43e   : > { %v8434_v18 = vpop.eup %8433 }
 0x43f   : > { %v8436_v20 = vpop.eup %8435 }
 0x440   : > { %v8438_v19 = vpop.eup %8437  ;;  %v2465_v39 = vadd.f32 1.0, %v8436_v20 }
 0x441   : > { %v2466_v57 = vadd.f32 1.0, %v8438_v19 }
 0x442   : > { %8447 = vrcp.f32 %v2465_v39 }
 0x443   : > { %8449 = vrcp.f32 %v2466_v57 }
 0x444   : > { %v8440_v58 = vpop.eup %8439 }
 0x445   : > { %v8442_v60 = vpop.eup %8441  ;;  %v2479_v30 = vmul.f32 %v8440_v58, %v8432_v15  ;;  %v9347_v15 = vsub.s32 3, %v9134_v23  ;;  %v9382_v23 = vcombine.high %v9040_v56, %v9040_v56 }
 0x446   : > { %v8444_v8 = vpop.eup %8443  ;;  %v2480_v53 = vmul.f32 %v8442_v60, %v8434_v18 }
 0x447   : > { %v8446_v21 = vpop.eup %8445  ;;  %v2477_v43 = vmul.f32 %v8444_v8, %v2473_v22 }
 0x448   : > { %v2478_v7 = vmul.f32 %v8446_v21, %v2474_v17 }
 0x449   : > { %v9340_v14 = vadd.f32 %v2479_v30, %v2477_v43  ;;  %v9386_v30 = vcombine.high %v9034_v50, %v9034_v50 }
 0x44a   : > { %v9342_v59 = vadd.f32 %v2480_v53, %v2478_v7 }
 0x44b   : > { %8451 = vtanh.f32 %v9340_v14 }
 0x44c   : > { %8453 = vtanh.f32 %v9342_v59  ;;  %v8448_v3 = vpop.eup %8447 }
 0x44d   : > { %v8450_v4 = vpop.eup %8449 }
 0x455   : > { %v8452_v63 = vpop.eup %8451 }
 0x456   : > { %v8454_v18 = vpop.eup %8453  ;;  %v2485_v20 = vmul.f32 %v8452_v63, %v8448_v3 }
 0x457   : > { %v2486_v19 = vmul.f32 %v8454_v18, %v8450_v4 }
 0x458   : > { %v2492_v58 = vrot.slane %v2485_v20, %v9347_v15 }
 0x459   : > { %v2496_v60 = vrot.slane %v2486_v19, %v9347_v15 }
 0x45b   : > { %v2497_v22 = vsel %vm1327_vm3, %v2496_v60, %v2492_v58  ;;  %v9398_v58 = vcombine.high %v9038_v54, %v9038_v54 }
 0x45c   : > { %7536 = vmatmul.mubr.msk.f32.vlgmr.msra.gmra.mrb[24].mxu0 %vm917_vm2, %v2497_v22  ;;  %7547 = vmatmul.mubr.msk.f32.vlgmr.msra.gmra.mrb[32].mxu1 %vm917_vm2, %v2497_v22 }
 0x45d   : > { %8086 = vmatpush3.bf16.msra.mxu0 %v8948_v34  ;;  %8092 = vmatpush3.bf16.msra.mxu1 %v9006_v44 }
 0x45e   : > { %8087 = vmatprep.subr.bf16.mxu0 %v10143_v46  ;;  %8093 = vmatprep.subr.bf16.mxu1 %v10143_v46 }
 0x45f   : > { %7557 = vmatprep.mubr.msk.f32.mxu0 %vm8742_vm0, %v10144_v27  ;;  %7568 = vmatprep.mubr.msk.f32.mxu1 %vm8742_vm0, %v10144_v27 }
 0x461   : > { %8089 = vmatpush3.bf16.msra.mxu0 %v8970_v40  ;;  %8095 = vmatpush3.bf16.msra.mxu1 %v9018_v47 }
 0x462   : > { %8096 = vmatprep.subr.bf16.mxu0 %v10143_v46  ;;  %8102 = vmatprep.subr.bf16.mxu1 %v10143_v46 }
 0x464   : > { %7558 = vmatmul.mubr.msk.f32.vlgmr.msra.gmra.mrb[26].mxu0 %vm917_vm2, %v2497_v22  ;;  %7569 = vmatmul.mubr.msk.f32.vlgmr.msra.gmra.mrb[34].mxu1 %vm917_vm2, %v2497_v22 }
 0x465   : > { %8098 = vmatpush3.bf16.msra.mxu0 %v8887_v24  ;;  %8104 = vmatpush3.bf16.msra.mxu1 %v8960_v37 }
 0x466   : > { %8099 = vmatprep.subr.bf16.mxu0 %v10143_v46  ;;  %8105 = vmatprep.subr.bf16.mxu1 %v10143_v46 }
 0x467   : > { %7579 = vmatprep.mubr.msk.f32.mxu0 %vm8742_vm0, %v10144_v27  ;;  %7590 = vmatprep.mubr.msk.f32.mxu1 %vm8742_vm0, %v10144_v27 }
 0x469   : > { %8101 = vmatpush3.bf16.msra.mxu0 %v8905_v28  ;;  %8107 = vmatpush3.bf16.msra.mxu1 %v8980_v41 }
 0x46a   : > { %8108 = vmatprep.subr.bf16.mxu0 %v10143_v46  ;;  %8114 = vmatprep.subr.bf16.mxu1 %v10143_v46 }
 0x52f   : > { %v2566_v39 = vpop.f32.mrb[24].mxu0  ;;  %v2656_v8 = vpop.f32.mrb[32].mxu1 }
 0x530   : > { %v2571_v17 = vrot.slane %v2566_v39, 1  ;;  %v2574_v53 = vadd.f32 %v2566_v39, %v9386_v30  ;;  %v2661_v57 = vrot.slane %v2656_v8, 1  ;;  %v2664_v21 = vadd.f32 %v2656_v8, %v9382_v23  ;;  %v7537_v43 = vpop.f32.mrb[25].mxu0  ;;  %v7548_v7 = vpop.f32.mrb[33].mxu1 }
 0x532   : > { %v2575_v3 = vadd.f32 %v2571_v17, %v9036_v52  ;;  %v2576_v4 = vadd.f32 %v9053_v1, %v2574_v53  ;;  %v2665_v56 = vadd.f32 %v2661_v57, %v9048_v0  ;;  %v2666_v63 = vadd.f32 %v9089_v36, %v2664_v21 }
 0x533   : > { %v9402_v1 = vcombine.high %v9063_v11, %v9063_v11 }
 0x534   : > { %v2577_v50 = vadd.f32 %v2575_v3, %v9061_v9  ;;  %v6862_v18 = vmul.f32 -1.442695, %v2576_v4  ;;  %v2667_v20 = vadd.f32 %v2665_v56, %v9093_v42  ;;  %v6865_v19 = vmul.f32 -1.442695, %v2666_v63 }
 0x536   : > { %8455 = vpow2.f32 %v6862_v18  ;;  %v6863_v60 = vmul.f32 -1.442695, %v2577_v50  ;;  %v6866_v22 = vmul.f32 -1.442695, %v2667_v20 }
 0x537   : > { %8457 = vpow2.f32 %v6865_v19  ;;  %v2746_v39 = vpop.f32.mrb[26].mxu0  ;;  %v2826_v36 = vpop.f32.mrb[34].mxu1 }
 0x538   : > { %8459 = vpow2.f32 %v6863_v60  ;;  %v2751_v8 = vrot.slane %v2746_v39, 1  ;;  %v2754_v17 = vadd.f32 %v2746_v39, %v9398_v58  ;;  %v2831_v53 = vrot.slane %v2826_v36, 1  ;;  %v7559_v57 = vpop.f32.mrb[27].mxu0  ;;  %v7570_v21 = vpop.f32.mrb[35].mxu1 }
 0x539   : > { %8461 = vpow2.f32 %v6866_v22  ;;  %v2834_v54 = vadd.f32 %v2826_v36, %v9402_v1  ;;  %v6871_v21 = vrot.slane %v9340_v14, 11 }
 0x53a   : > { %v2755_v43 = vadd.f32 %v2751_v8, %v9046_v62  ;;  %v2835_v7 = vadd.f32 %v2831_v53, %v9080_v31  ;;  %v2756_v11 = vadd.f32 %v9077_v25, %v2754_v17 }
 0x53b   : > { %v2836_v3 = vadd.f32 %v9107_v5, %v2834_v54 }
 0x53c   : > { %v2757_v4 = vadd.f32 %v2755_v43, %v9084_v33  ;;  %v2837_v56 = vadd.f32 %v2835_v7, %v9110_v12  ;;  %8463 = vtanh.f32 %v2756_v11 }
 0x53d   : > { %v6869_v63 = vmul.f32 -1.442695, %v2836_v3  ;;  %v6872_v3 = vrot.slane %v9342_v59, 11 }
 0x53e   : > { %v6870_v50 = vmul.f32 -1.442695, %v2837_v56  ;;  %8465 = vtanh.f32 %v2757_v4 }
 0x53f   : > { %8467 = vpow2.f32 %v6869_v63 }
 0x540   : > { %v8456_v18 = vpop.eup %8455  ;;  %8469 = vpow2.f32 %v6870_v50 }
 0x541   : > { %v8458_v20 = vpop.eup %8457  ;;  %v2584_v19 = vadd.f32 1.0, %v8456_v18 }
 0x542   : > { %v8460_v60 = vpop.eup %8459  ;;  %v2674_v22 = vadd.f32 1.0, %v8458_v20 }
 0x543   : > { %v8462_v39 = vpop.eup %8461  ;;  %v2585_v36 = vadd.f32 1.0, %v8460_v60  ;;  %8471 = vrcp.f32 %v2584_v19 }
 0x544   : > { %v2675_v25 = vadd.f32 1.0, %v8462_v39  ;;  %8473 = vrcp.f32 %v2674_v22 }
 0x545   : > { %8475 = vrcp.f32 %v2585_v36 }
 0x546   : > { %8477 = vrcp.f32 %v2675_v25  ;;  %v8464_v5 = vpop.eup %8463 }
 0x548   : > { %v8466_v8 = vpop.eup %8465 }
 0x549   : > { %v8468_v17 = vpop.eup %8467 }
 0x54a   : > { %v8470_v53 = vpop.eup %8469  ;;  %v2844_v7 = vadd.f32 1.0, %v8468_v17 }
 0x54b   : > { %v2845_v50 = vadd.f32 1.0, %v8470_v53 }
 0x54c   : > { %8479 = vrcp.f32 %v2844_v7 }
 0x54d   : > { %v8472_v57 = vpop.eup %8471 }
 0x54e   : > { %v8474_v54 = vpop.eup %8473  ;;  %v2860_v43 = vmul.f32 %v8472_v57, %v8464_v5 }
 0x54f   : > { %v8476_v11 = vpop.eup %8475  ;;  %v2858_v4 = vmul.f32 %v8474_v54, %v6871_v21 }
 0x550   : > { %v8478_v56 = vpop.eup %8477  ;;  %v2861_v63 = vmul.f32 %v8476_v11, %v8466_v8 }
 0x551   : > { %v2859_v18 = vmul.f32 %v8478_v56, %v6872_v3  ;;  %v9414_v20 = vadd.f32 %v2860_v43, %v2858_v4  ;;  %v9457_v4 = vld [vmem:[%s10112_s5] ss:$0 sm:$0xff] }
 0x553   : > { %v9416_v19 = vadd.f32 %v2861_v63, %v2859_v18  ;;  %8481 = vtanh.f32 %v9414_v20 }
 0x554   : > { %8483 = vrcp.f32 %v2845_v50  ;;  %v9464_v50 = vld [vmem:[%s10112_s5 + $0x1] ss:$0 sm:$0xff] }
 0x555   : > { %8485 = vtanh.f32 %v9416_v19 }
 0x556   : > { %v8480_v14 = vpop.eup %8479 }
 0x55d   : > { %v8482_v60 = vpop.eup %8481 }
 0x55e   : > { %v8484_v22 = vpop.eup %8483  ;;  %v2866_v39 = vmul.f32 %v8482_v60, %v8480_v14 }
 0x55f   : > { %v8486_v59 = vpop.eup %8485 }
 0x560   : > { %v2867_v36 = vmul.f32 %v8486_v59, %v8484_v22  ;;  %v2873_v25 = vrot.slane %v2866_v39, %v9137_v32 }
 0x562   : > { %v2877_v5 = vrot.slane %v2867_v36, %v9137_v32 }
 0x564   : > { %v2878_v8 = vsel %vm1327_vm3, %v2877_v5, %v2873_v25 }
 0x565   : > { %7580 = vmatmul.mubr.msk.f32.vlgmr.msra.gmra.mrb[28].mxu0 %vm917_vm2, %v2878_v8  ;;  %7591 = vmatmul.mubr.msk.f32.vlgmr.msra.gmra.mrb[36].mxu1 %vm917_vm2, %v2878_v8 }
 0x566   : > { %8110 = vmatpush3.bf16.msra.mxu0 %v8948_v34  ;;  %8116 = vmatpush3.bf16.msra.mxu1 %v9006_v44 }
 0x567   : > { %8111 = vmatprep.subr.bf16.mxu0 %v10143_v46  ;;  %8117 = vmatprep.subr.bf16.mxu1 %v10143_v46 }
 0x568   : > { %7601 = vmatprep.mubr.msk.f32.mxu0 %vm8742_vm0, %v10144_v27  ;;  %7612 = vmatprep.mubr.msk.f32.mxu1 %vm8742_vm0, %v10144_v27 }
 0x56a   : > { %8113 = vmatpush3.bf16.msra.mxu0 %v8970_v40  ;;  %8119 = vmatpush3.bf16.msra.mxu1 %v9018_v47 }
 0x56b   : > { %8120 = vmatprep.subr.bf16.mxu0 %v10143_v46  ;;  %8126 = vmatprep.subr.bf16.mxu1 %v10143_v46 }
 0x56d   : > { %7602 = vmatmul.mubr.msk.f32.vlgmr.msra.gmra.mrb[30].mxu0 %vm917_vm2, %v2878_v8  ;;  %7613 = vmatmul.mubr.msk.f32.vlgmr.msra.gmra.mrb[38].mxu1 %vm917_vm2, %v2878_v8 }
 0x56e   : > { %8122 = vmatpush3.bf16.msra.mxu0 %v8887_v24  ;;  %8128 = vmatpush3.bf16.msra.mxu1 %v8960_v37 }
 0x56f   : > { %8123 = vmatprep.subr.bf16.mxu0 %v10143_v46  ;;  %8129 = vmatprep.subr.bf16.mxu1 %v10143_v46 }
 0x570   : > { %7623 = vmatprep.mubr.msk.f32.mxu0 %vm8742_vm0, %v10144_v27  ;;  %7634 = vmatprep.mubr.msk.f32.mxu1 %vm8742_vm0, %v10144_v27 }
 0x572   : > { %8125 = vmatpush3.bf16.msra.mxu0 %v8905_v28  ;;  %8131 = vmatpush3.bf16.msra.mxu1 %v8980_v41 }
 0x573   : > { %8132 = vmatprep.subr.bf16.mxu0 %v10143_v46  ;;  %8138 = vmatprep.subr.bf16.mxu1 %v10143_v46 }
 0x638   : > { %v2947_v17 = vpop.f32.mrb[28].mxu0  ;;  %v3037_v53 = vpop.f32.mrb[36].mxu1 }
 0x639   : > { %v2952_v57 = vrot.slane %v2947_v17, 7  ;;  %v2956_v21 = vadd.f32 %v2947_v17, %v9036_v52  ;;  %v3042_v54 = vrot.slane %v3037_v53, 7  ;;  %v3046_v43 = vadd.f32 %v3037_v53, %v9048_v0  ;;  %v7581_v7 = vpop.f32.mrb[29].mxu0  ;;  %v7592_v11 = vpop.f32.mrb[37].mxu1 }
 0x63a   : > { %v9476_v11 = vld [vmem:[%s10112_s5 + $0x2] ss:$0 sm:$0xff] }
 0x63b   : > { %v2955_v3 = vadd.f32 %v2952_v57, %v9386_v30  ;;  %v2958_v56 = vadd.f32 %v9457_v4, %v2956_v21  ;;  %v3045_v63 = vadd.f32 %v3042_v54, %v9382_v23  ;;  %v3048_v18 = vadd.f32 %v9464_v50, %v3046_v43 }
 0x63d   : > { %v2957_v14 = vadd.f32 %v2955_v3, %v9171_v51  ;;  %v6875_v60 = vmul.f32 -1.442695, %v2958_v56  ;;  %v3047_v22 = vadd.f32 %v3045_v63, %v9174_v55  ;;  %v6878_v39 = vmul.f32 -1.442695, %v3048_v18  ;;  %v9482_v56 = vld [vmem:[%s10112_s5 + $0x3] ss:$0 sm:$0xff] }
 0x63f   : > { %v6874_v59 = vmul.f32 -1.442695, %v2957_v14  ;;  %8487 = vpow2.f32 %v6875_v60  ;;  %v6877_v36 = vmul.f32 -1.442695, %v3047_v22 }
 0x640   : > { %8489 = vpow2.f32 %v6878_v39  ;;  %v3127_v25 = vpop.f32.mrb[30].mxu0  ;;  %v3207_v5 = vpop.f32.mrb[38].mxu1 }
 0x641   : > { %8491 = vpow2.f32 %v6874_v59  ;;  %v3132_v8 = vrot.slane %v3127_v25, 7  ;;  %v3136_v17 = vadd.f32 %v3127_v25, %v9046_v62  ;;  %v3212_v53 = vrot.slane %v3207_v5, 7  ;;  %v7603_v57 = vpop.f32.mrb[31].mxu0  ;;  %v7614_v21 = vpop.f32.mrb[39].mxu1 }
 0x642   : > { %8493 = vpow2.f32 %v6877_v36  ;;  %v3216_v54 = vadd.f32 %v3207_v5, %v9080_v31 }
 0x643   : > { %v3135_v43 = vadd.f32 %v3132_v8, %v9398_v58  ;;  %v3215_v7 = vadd.f32 %v3212_v53, %v9402_v1  ;;  %v3138_v3 = vadd.f32 %v9476_v11, %v3136_v17 }
 0x644   : > { %v3218_v63 = vadd.f32 %v9482_v56, %v3216_v54 }
 0x645   : > { %v3137_v18 = vadd.f32 %v3135_v43, %v9185_v45  ;;  %v3217_v14 = vadd.f32 %v3215_v7, %v9188_v49  ;;  %8495 = vtanh.f32 %v3138_v3  ;;  %v3234_v3 = vrot.slane %v9416_v19, 7 }
 0x646   : > { %v6882_v60 = vmul.f32 -1.442695, %v3218_v63 }
 0x647   : > { %v6881_v22 = vmul.f32 -1.442695, %v3217_v14  ;;  %8497 = vtanh.f32 %v3137_v18 }
 0x648   : > { %8499 = vpow2.f32 %v6882_v60 }
 0x649   : > { %v8488_v39 = vpop.eup %8487  ;;  %8501 = vpow2.f32 %v6881_v22  ;;  %v3233_v22 = vrot.slane %v9414_v20, 7 }
 0x64a   : > { %v8490_v59 = vpop.eup %8489  ;;  %v2966_v36 = vadd.f32 1.0, %v8488_v39 }
 0x64b   : > { %v8492_v25 = vpop.eup %8491  ;;  %v3056_v5 = vadd.f32 1.0, %v8490_v59 }
 0x64c   : > { %v8494_v8 = vpop.eup %8493  ;;  %v2965_v17 = vadd.f32 1.0, %v8492_v25  ;;  %8503 = vrcp.f32 %v2966_v36 }
 0x64d   : > { %v3055_v53 = vadd.f32 1.0, %v8494_v8  ;;  %8505 = vrcp.f32 %v3056_v5 }
 0x64e   : > { %8507 = vrcp.f32 %v2965_v17 }
 0x64f   : > { %8509 = vrcp.f32 %v3055_v53  ;;  %v8496_v57 = vpop.eup %8495 }
 0x651   : > { %v8498_v21 = vpop.eup %8497 }
 0x652   : > { %v8500_v54 = vpop.eup %8499 }
 0x653   : > { %v8502_v43 = vpop.eup %8501  ;;  %v3226_v14 = vadd.f32 1.0, %v8500_v54 }
 0x654   : > { %v3225_v25 = vadd.f32 1.0, %v8502_v43 }
 0x655   : > { %8511 = vrcp.f32 %v3226_v14 }
 0x656   : > { %v8504_v7 = vpop.eup %8503 }
 0x657   : > { %v8506_v63 = vpop.eup %8505  ;;  %v3240_v18 = vmul.f32 %v8504_v7, %v8496_v57 }
 0x658   : > { %v8508_v60 = vpop.eup %8507  ;;  %v3238_v39 = vmul.f32 %v8506_v63, %v3234_v3 }
 0x659   : > { %v8510_v59 = vpop.eup %8509  ;;  %v3239_v36 = vmul.f32 %v8508_v60, %v8498_v21 }
 0x65a   : > { %v3237_v5 = vmul.f32 %v8510_v59, %v3233_v22  ;;  %v9489_v8 = vadd.f32 %v3240_v18, %v3238_v39 }
 0x65c   : > { %v9491_v17 = vadd.f32 %v3239_v36, %v3237_v5  ;;  %8513 = vtanh.f32 %v9489_v8 }
 0x65d   : > { %8515 = vrcp.f32 %v3225_v25 }
 0x65e   : > { %8517 = vtanh.f32 %v9491_v17 }
 0x65f   : > { %v8512_v19 = vpop.eup %8511 }
 0x666   : > { %v8514_v53 = vpop.eup %8513 }
 0x667   : > { %v8516_v57 = vpop.eup %8515  ;;  %v3246_v54 = vmul.f32 %v8514_v53, %v8512_v19 }
 0x668   : > { %v8518_v20 = vpop.eup %8517 }
 0x669   : > { %v3245_v7 = vmul.f32 %v8518_v20, %v8516_v57  ;;  %v3256_v43 = vrot.slane %v3246_v54, %v9207_v16 }
 0x66b   : > { %v3252_v21 = vrot.slane %v3245_v7, %v9207_v16 }
 0x66d   : > { %v3257_v3 = vsel %vm1327_vm3, %v3256_v43, %v3252_v21 }
 0x66e   : > { %7624 = vmatmul.mubr.msk.f32.vlgmr.msra.gmra.mrb[32].mxu0 %vm917_vm2, %v3257_v3  ;;  %7635 = vmatmul.mubr.msk.f32.vlgmr.msra.gmra.mrb[40].mxu1 %vm917_vm2, %v3257_v3 }
 0x66f   : > { %8134 = vmatpush3.bf16.msra.mxu0 %v8948_v34  ;;  %8140 = vmatpush3.bf16.msra.mxu1 %v9006_v44 }
 0x670   : > { %8135 = vmatprep.subr.bf16.mxu0 %v10143_v46  ;;  %8141 = vmatprep.subr.bf16.mxu1 %v10143_v46 }
 0x671   : > { %7645 = vmatprep.mubr.msk.f32.mxu0 %vm8742_vm0, %v10144_v27  ;;  %7656 = vmatprep.mubr.msk.f32.mxu1 %vm8742_vm0, %v10144_v27 }
 0x673   : > { %8137 = vmatpush3.bf16.msra.mxu0 %v8970_v40  ;;  %8143 = vmatpush3.bf16.msra.mxu1 %v9018_v47 }
 0x674   : > { %8144 = vmatprep.subr.bf16.mxu0 %v10143_v46  ;;  %8150 = vmatprep.subr.bf16.mxu1 %v10143_v46 }
 0x676   : > { %7646 = vmatmul.mubr.msk.f32.vlgmr.msra.gmra.mrb[34].mxu0 %vm917_vm2, %v3257_v3  ;;  %7657 = vmatmul.mubr.msk.f32.vlgmr.msra.gmra.mrb[42].mxu1 %vm917_vm2, %v3257_v3 }
 0x677   : > { %8146 = vmatpush3.bf16.msra.mxu0 %v8887_v24  ;;  %8152 = vmatpush3.bf16.msra.mxu1 %v8960_v37 }
 0x678   : > { %8147 = vmatprep.subr.bf16.mxu0 %v10143_v46  ;;  %8153 = vmatprep.subr.bf16.mxu1 %v10143_v46 }
 0x679   : > { %7667 = vmatprep.mubr.msk.f32.mxu0 %vm8742_vm0, %v10144_v27  ;;  %7678 = vmatprep.mubr.msk.f32.mxu1 %vm8742_vm0, %v10144_v27 }
 0x67b   : > { %8149 = vmatpush3.bf16.msra.mxu0 %v8905_v28  ;;  %8155 = vmatpush3.bf16.msra.mxu1 %v8980_v41 }
 0x67c   : > { %8156 = vmatprep.subr.bf16.mxu0 %v10143_v46  ;;  %8162 = vmatprep.subr.bf16.mxu1 %v10143_v46 }
 0x741   : > { %v3326_v63 = vpop.f32.mrb[32].mxu0  ;;  %v3417_v18 = vpop.f32.mrb[40].mxu1 }
 0x742   : > { %v3331_v14 = vrot.slane %v3326_v63, 6  ;;  %v3332_v60 = vrot.slane %v3326_v63, 7  ;;  %v3422_v22 = vrot.slane %v3417_v18, 6  ;;  %v3423_v39 = vrot.slane %v3417_v18, 7  ;;  %v7625_v59 = vpop.f32.mrb[33].mxu0  ;;  %v7636_v36 = vpop.f32.mrb[41].mxu1 }
 0x744   : > { %v3335_v25 = vadd.f32 %v3331_v14, %v9386_v30  ;;  %v3336_v5 = vadd.f32 %v3332_v60, %v9036_v52  ;;  %v3426_v19 = vadd.f32 %v3422_v22, %v9382_v23  ;;  %v3427_v53 = vadd.f32 %v3423_v39, %v9048_v0 }
 0x746   : > { %v3337_v57 = vadd.f32 %v3335_v25, %v9241_v26  ;;  %v3338_v54 = vadd.f32 %v3336_v5, %v9171_v51  ;;  %v3428_v20 = vadd.f32 %v3426_v19, %v9244_v29  ;;  %v3429_v7 = vadd.f32 %v3427_v53, %v9174_v55 }
 0x748   : > { %v6884_v21 = vmul.f32 -1.442695, %v3337_v57  ;;  %v6885_v43 = vmul.f32 -1.442695, %v3338_v54  ;;  %v6887_v3 = vmul.f32 -1.442695, %v3428_v20 }
 0x749   : > { %v6888_v63 = vmul.f32 -1.442695, %v3429_v7  ;;  %v3508_v18 = vpop.f32.mrb[34].mxu0  ;;  %v3589_v14 = vpop.f32.mrb[42].mxu1 }
 0x74a   : > { %8519 = vpow2.f32 %v6884_v21  ;;  %v3513_v60 = vrot.slane %v3508_v18, 6  ;;  %v3514_v59 = vrot.slane %v3508_v18, 7  ;;  %v3594_v22 = vrot.slane %v3589_v14, 6  ;;  %v7647_v36 = vpop.f32.mrb[35].mxu0  ;;  %v7658_v39 = vpop.f32.mrb[43].mxu1 }
 0x74b   : > { %8521 = vpow2.f32 %v6885_v43  ;;  %v3595_v25 = vrot.slane %v3589_v14, 7 }
 0x74c   : > { %8523 = vpow2.f32 %v6887_v3  ;;  %v3517_v5 = vadd.f32 %v3513_v60, %v9398_v58  ;;  %v3518_v19 = vadd.f32 %v3514_v59, %v9046_v62  ;;  %v3598_v53 = vadd.f32 %v3594_v22, %v9402_v1 }
 0x74d   : > { %8525 = vpow2.f32 %v6888_v63  ;;  %v3599_v57 = vadd.f32 %v3595_v25, %v9080_v31 }
 0x74e   : > { %v3600_v54 = vadd.f32 %v3598_v53, %v9255_v35  ;;  %v3519_v20 = vadd.f32 %v3517_v5, %v9258_v61  ;;  %v3520_v21 = vadd.f32 %v3518_v19, %v9185_v45 }
 0x74f   : > { %v3601_v7 = vadd.f32 %v3599_v57, %v9188_v49 }
 0x750   : > { %v6891_v43 = vmul.f32 -1.442695, %v3600_v54  ;;  %8527 = vtanh.f32 %v3519_v20  ;;  %v3616_v20 = vrot.slane %v9491_v17, 7 }
 0x751   : > { %v6892_v18 = vmul.f32 -1.442695, %v3601_v7  ;;  %8529 = vtanh.f32 %v3520_v21 }
 0x752   : > { %8531 = vpow2.f32 %v6891_v43 }
 0x753   : > { %8533 = vpow2.f32 %v6892_v18  ;;  %v3617_v18 = vrot.slane %v9489_v8, 7 }
 0x754   : > { %v8520_v3 = vpop.eup %8519 }
 0x755   : > { %v8522_v14 = vpop.eup %8521  ;;  %v3345_v60 = vadd.f32 1.0, %v8520_v3 }
 0x756   : > { %v8524_v59 = vpop.eup %8523  ;;  %v3346_v63 = vadd.f32 1.0, %v8522_v14 }
 0x757   : > { %v8526_v22 = vpop.eup %8525  ;;  %8535 = vrcp.f32 %v3345_v60  ;;  %v3436_v36 = vadd.f32 1.0, %v8524_v59 }
 0x758   : > { %8537 = vrcp.f32 %v3346_v63  ;;  %v3437_v39 = vadd.f32 1.0, %v8526_v22 }
 0x759   : > { %8539 = vrcp.f32 %v3436_v36 }
 0x75a   : > { %8541 = vrcp.f32 %v3437_v39  ;;  %v8528_v25 = vpop.eup %8527 }
 0x75b   : > { %v8530_v5 = vpop.eup %8529 }
 0x75c   : > { %v8532_v19 = vpop.eup %8531 }
 0x75d   : > { %v8534_v53 = vpop.eup %8533  ;;  %v3608_v21 = vadd.f32 1.0, %v8532_v19 }
 0x75e   : > { %v3609_v14 = vadd.f32 1.0, %v8534_v53 }
 0x75f   : > { %8543 = vrcp.f32 %v3608_v21 }
 0x760   : > { %8545 = vrcp.f32 %v3609_v14 }
 0x761   : > { %v8536_v57 = vpop.eup %8535 }
 0x762   : > { %v8538_v54 = vpop.eup %8537  ;;  %v3622_v7 = vmul.f32 %v8536_v57, %v8528_v25 }
 0x763   : > { %v8540_v43 = vpop.eup %8539  ;;  %v3623_v3 = vmul.f32 %v8538_v54, %v8530_v5 }
 0x764   : > { %v8542_v60 = vpop.eup %8541  ;;  %v3620_v59 = vmul.f32 %v8540_v43, %v3616_v20 }
 0x765   : > { %v3621_v63 = vmul.f32 %v8542_v60, %v3617_v18 }
 0x766   : > { %v9544_v22 = vadd.f32 %v3622_v7, %v3620_v59 }
 0x767   : > { %v9546_v36 = vadd.f32 %v3623_v3, %v3621_v63 }
 0x768   : > { %8547 = vtanh.f32 %v9544_v22 }
 0x769   : > { %8549 = vtanh.f32 %v9546_v36  ;;  %v8544_v17 = vpop.eup %8543 }
 0x76a   : > { %v8546_v39 = vpop.eup %8545 }
 0x772   : > { %v8548_v25 = vpop.eup %8547 }
 0x773   : > { %v8550_v19 = vpop.eup %8549  ;;  %v3628_v8 = vmul.f32 %v8548_v25, %v8544_v17 }
 0x774   : > { %v3629_v5 = vmul.f32 %v8550_v19, %v8546_v39 }
 0x775   : > { %v3635_v53 = vrot.slane %v3628_v8, %v9277_v10 }
 0x776   : > { %v3639_v57 = vrot.slane %v3629_v5, %v9277_v10 }
 0x778   : > { %v3640_v54 = vsel %vm1327_vm3, %v3639_v57, %v3635_v53 }
 0x779   : > { %7668 = vmatmul.mubr.msk.f32.vlgmr.msra.gmra.mrb[36].mxu0 %vm917_vm2, %v3640_v54  ;;  %7679 = vmatmul.mubr.msk.f32.vlgmr.msra.gmra.mrb[44].mxu1 %vm917_vm2, %v3640_v54 }
 0x77a   : > { %8158 = vmatpush3.bf16.msra.mxu0 %v8948_v34  ;;  %8164 = vmatpush3.bf16.msra.mxu1 %v9006_v44 }
 0x77b   : > { %8159 = vmatprep.subr.bf16.mxu0 %v10143_v46  ;;  %8165 = vmatprep.subr.bf16.mxu1 %v10143_v46 }
 0x77c   : > { %7689 = vmatprep.mubr.msk.f32.mxu0 %vm8742_vm0, %v10144_v27  ;;  %7700 = vmatprep.mubr.msk.f32.mxu1 %vm8742_vm0, %v10144_v27 }
 0x77e   : > { %8161 = vmatpush3.bf16.msra.mxu0 %v8970_v40  ;;  %8167 = vmatpush3.bf16.msra.mxu1 %v9018_v47 }
 0x77f   : > { %8168 = vmatprep.subr.bf16.mxu0 %v10143_v46  ;;  %8174 = vmatprep.subr.bf16.mxu1 %v10143_v46 }
 0x781   : > { %7690 = vmatmul.mubr.msk.f32.vlgmr.msra.gmra.mrb[38].mxu0 %vm917_vm2, %v3640_v54  ;;  %7701 = vmatmul.mubr.msk.f32.vlgmr.msra.gmra.mrb[46].mxu1 %vm917_vm2, %v3640_v54 }
 0x782   : > { %8170 = vmatpush3.bf16.msra.mxu0 %v8887_v24  ;;  %8176 = vmatpush3.bf16.msra.mxu1 %v8960_v37 }
 0x783   : > { %8171 = vmatprep.subr.bf16.mxu0 %v10143_v46  ;;  %8177 = vmatprep.subr.bf16.mxu1 %v10143_v46 }
 0x784   : > { %7711 = vmatprep.mubr.msk.f32.mxu0 %vm8742_vm0, %v10144_v27  ;;  %7722 = vmatprep.mubr.msk.f32.mxu1 %vm8742_vm0, %v10144_v27 }
 0x786   : > { %8173 = vmatpush3.bf16.msra.mxu0 %v8905_v28  ;;  %8179 = vmatpush3.bf16.msra.mxu1 %v8980_v41 }
 0x787   : > { %8180 = vmatprep.subr.bf16.mxu0 %v10143_v46  ;;  %8186 = vmatprep.subr.bf16.mxu1 %v10143_v46 }
 0x84c   : > { %v3709_v20 = vpop.f32.mrb[36].mxu0  ;;  %v3800_v7 = vpop.f32.mrb[44].mxu1 }
 0x84d   : > { %v3714_v21 = vrot.slane %v3709_v20, 5  ;;  %v3715_v43 = vrot.slane %v3709_v20, 6  ;;  %v3805_v18 = vrot.slane %v3800_v7, 5  ;;  %v3806_v3 = vrot.slane %v3800_v7, 6  ;;  %v7669_v14 = vpop.f32.mrb[37].mxu0  ;;  %v7680_v60 = vpop.f32.mrb[45].mxu1 }
 0x84f   : > { %v3718_v59 = vadd.f32 %v3714_v21, %v9386_v30  ;;  %v3719_v63 = vadd.f32 %v3715_v43, %v9036_v52  ;;  %v3809_v17 = vadd.f32 %v3805_v18, %v9382_v23  ;;  %v3810_v39 = vadd.f32 %v3806_v3, %v9048_v0 }
 0x851   : > { %v3720_v25 = vadd.f32 %v3718_v59, %v9311_v38  ;;  %v3721_v19 = vadd.f32 %v3719_v63, %v9241_v26  ;;  %v3811_v8 = vadd.f32 %v3809_v17, %v9314_v2  ;;  %v3812_v5 = vadd.f32 %v3810_v39, %v9244_v29 }
 0x853   : > { %v6894_v53 = vmul.f32 -1.442695, %v3720_v25  ;;  %v6895_v57 = vmul.f32 -1.442695, %v3721_v19  ;;  %v6897_v54 = vmul.f32 -1.442695, %v3811_v8 }
 0x854   : > { %v6898_v20 = vmul.f32 -1.442695, %v3812_v5  ;;  %v3891_v7 = vpop.f32.mrb[38].mxu0  ;;  %v3972_v30 = vpop.f32.mrb[46].mxu1 }
 0x855   : > { %8551 = vpow2.f32 %v6894_v53  ;;  %v3896_v21 = vrot.slane %v3891_v7, 5  ;;  %v3897_v43 = vrot.slane %v3891_v7, 6  ;;  %v3977_v23 = vrot.slane %v3972_v30, 5  ;;  %v7691_v18 = vpop.f32.mrb[39].mxu0  ;;  %v7702_v3 = vpop.f32.mrb[47].mxu1 }
 0x856   : > { %8553 = vpow2.f32 %v6895_v57  ;;  %v3978_v14 = vrot.slane %v3972_v30, 6 }
 0x857   : > { %8555 = vpow2.f32 %v6897_v54  ;;  %v3900_v60 = vadd.f32 %v3896_v21, %v9398_v58  ;;  %v3901_v59 = vadd.f32 %v3897_v43, %v9046_v62  ;;  %v3981_v63 = vadd.f32 %v3977_v23, %v9402_v1 }
 0x858   : > { %8557 = vpow2.f32 %v6898_v20  ;;  %v3982_v17 = vadd.f32 %v3978_v14, %v9080_v31 }
 0x859   : > { %v3983_v39 = vadd.f32 %v3981_v63, %v9325_v6  ;;  %v3902_v25 = vadd.f32 %v3900_v60, %v9328_v13  ;;  %v3903_v8 = vadd.f32 %v3901_v59, %v9258_v61  ;;  %v3999_v59 = vrot.slane %v9544_v22, 7 }
 0x85a   : > { %v3984_v19 = vadd.f32 %v3982_v17, %v9255_v35 }
 0x85b   : > { %v6901_v5 = vmul.f32 -1.442695, %v3983_v39  ;;  %8559 = vtanh.f32 %v3902_v25  ;;  %v4000_v25 = vrot.slane %v9546_v36, 7 }
 0x85c   : > { %v6902_v53 = vmul.f32 -1.442695, %v3984_v19  ;;  %8561 = vtanh.f32 %v3903_v8 }
 0x85d   : > { %8563 = vpow2.f32 %v6901_v5 }
 0x85e   : > { %8565 = vpow2.f32 %v6902_v53 }
 0x85f   : > { %v8552_v57 = vpop.eup %8551 }
 0x860   : > { %v8554_v58 = vpop.eup %8553  ;;  %v3728_v54 = vadd.f32 1.0, %v8552_v57 }
 0x861   : > { %v8556_v1 = vpop.eup %8555  ;;  %v3729_v20 = vadd.f32 1.0, %v8554_v58 }
 0x862   : > { %v8558_v7 = vpop.eup %8557  ;;  %8567 = vrcp.f32 %v3728_v54  ;;  %v3819_v30 = vadd.f32 1.0, %v8556_v1 }
 0x863   : > { %8569 = vrcp.f32 %v3729_v20  ;;  %v3820_v21 = vadd.f32 1.0, %v8558_v7 }
 0x864   : > { %8571 = vrcp.f32 %v3819_v30 }
 0x865   : > { %8573 = vrcp.f32 %v3820_v21  ;;  %v8560_v43 = vpop.eup %8559 }
 0x866   : > { %v8562_v23 = vpop.eup %8561 }
 0x867   : > { %v8564_v18 = vpop.eup %8563 }
 0x868   : > { %v8566_v3 = vpop.eup %8565  ;;  %v3991_v17 = vadd.f32 1.0, %v8564_v18  ;;  %v9638_v18 = vcombine.high %v9036_v52, %v9036_v52 }
 0x869   : > { %v3992_v8 = vadd.f32 1.0, %v8566_v3  ;;  %v9642_v3 = vcombine.high %v9048_v0, %v9048_v0 }
 0x86a   : > { %8575 = vrcp.f32 %v3991_v17 }
 0x86b   : > { %8577 = vrcp.f32 %v3992_v8 }
 0x86c   : > { %v8568_v14 = vpop.eup %8567 }
 0x86d   : > { %v8570_v60 = vpop.eup %8569  ;;  %v4005_v63 = vmul.f32 %v8568_v14, %v8560_v43 }
 0x86e   : > { %v8572_v39 = vpop.eup %8571  ;;  %v4006_v19 = vmul.f32 %v8570_v60, %v8562_v23 }
 0x86f   : > { %v8574_v5 = vpop.eup %8573  ;;  %v4003_v53 = vmul.f32 %v8572_v39, %v3999_v59  ;;  %v10145_v39 = vld [vmem:[#allocation6_spill] sm:$0xff] }
 0x870   : > { %v4004_v57 = vmul.f32 %v8574_v5, %v4000_v25 }
 0x871   : > { %v9599_v58 = vadd.f32 %v4005_v63, %v4003_v53 }
 0x872   : > { %v9601_v54 = vadd.f32 %v4006_v19, %v4004_v57 }
 0x873   : > { %8579 = vtanh.f32 %v9599_v58 }
 0x874   : > { %8581 = vtanh.f32 %v9601_v54  ;;  %v8576_v22 = vpop.eup %8575 }
 0x875   : > { %v8578_v1 = vpop.eup %8577 }
 0x87d   : > { %v8580_v20 = vpop.eup %8579 }
 0x87e   : > { %v8582_v7 = vpop.eup %8581  ;;  %v4011_v36 = vmul.f32 %v8580_v20, %v8576_v22 }
 0x87f   : > { %v4012_v30 = vmul.f32 %v8582_v7, %v8578_v1 }
 0x880   : > { %v4018_v21 = vrot.slane %v4011_v36, %v9347_v15 }
 0x881   : > { %v4022_v43 = vrot.slane %v4012_v30, %v9347_v15  ;;  %v9654_v30 = vcombine.high %v9046_v62, %v9046_v62 }
 0x883   : > { %v4023_v23 = vsel %vm1327_vm3, %v4022_v43, %v4018_v21  ;;  %v9658_v21 = vcombine.high %v9080_v31, %v9080_v31 }
 0x884   : > { %7712 = vmatmul.mubr.msk.f32.vlgmr.msra.gmra.mrb[40].mxu0 %vm917_vm2, %v4023_v23  ;;  %7723 = vmatmul.mubr.msk.f32.vlgmr.msra.gmra.mrb[48].mxu1 %vm917_vm2, %v4023_v23 }
 0x885   : > { %8182 = vmatpush3.bf16.msra.mxu0 %v8948_v34  ;;  %8188 = vmatpush3.bf16.msra.mxu1 %v9006_v44 }
 0x886   : > { %8183 = vmatprep.subr.bf16.mxu0 %v10143_v46  ;;  %8189 = vmatprep.subr.bf16.mxu1 %v10143_v46 }
 0x887   : > { %7733 = vmatprep.mubr.msk.f32.mxu0 %vm8742_vm0, %v10144_v27  ;;  %7744 = vmatprep.mubr.msk.f32.mxu1 %vm8742_vm0, %v10144_v27 }
 0x889   : > { %8185 = vmatpush3.bf16.msra.mxu0 %v8970_v40  ;;  %8191 = vmatpush3.bf16.msra.mxu1 %v9018_v47 }
 0x88a   : > { %8192 = vmatprep.subr.bf16.mxu0 %v10143_v46  ;;  %8198 = vmatprep.subr.bf16.mxu1 %v10143_v46 }
 0x88c   : > { %7734 = vmatmul.mubr.msk.f32.vlgmr.msra.gmra.mrb[42].mxu0 %vm917_vm2, %v4023_v23  ;;  %7745 = vmatmul.mubr.msk.f32.vlgmr.msra.gmra.mrb[50].mxu1 %vm917_vm2, %v4023_v23 }
 0x88d   : > { %8194 = vmatpush3.bf16.msra.mxu0 %v8887_v24  ;;  %8200 = vmatpush3.bf16.msra.mxu1 %v8960_v37 }
 0x88e   : > { %8195 = vmatprep.subr.bf16.mxu0 %v10143_v46  ;;  %8201 = vmatprep.subr.bf16.mxu1 %v10143_v46 }
 0x88f   : > { %7755 = vmatprep.mubr.msk.f32.mxu0 %vm8742_vm0, %v10144_v27  ;;  %7766 = vmatprep.mubr.msk.f32.mxu1 %vm8742_vm0, %v10144_v27 }
 0x891   : > { %8197 = vmatpush3.bf16.msra.mxu0 %v8905_v28  ;;  %8203 = vmatpush3.bf16.msra.mxu1 %v8980_v41 }
 0x892   : > { %8204 = vmatprep.subr.bf16.mxu0 %v10143_v46  ;;  %8210 = vmatprep.subr.bf16.mxu1 %v10143_v46 }
 0x957   : > { %v4092_v14 = vpop.f32.mrb[40].mxu0  ;;  %v4182_v60 = vpop.f32.mrb[48].mxu1 }
 0x958   : > { %v4097_v59 = vrot.slane %v4092_v14, 1  ;;  %v4100_v63 = vadd.f32 %v4092_v14, %v9032_v48  ;;  %v4187_v17 = vrot.slane %v4182_v60, 1  ;;  %v4190_v25 = vadd.f32 %v4182_v60, %v10145_v39  ;;  %v7713_v19 = vpop.f32.mrb[41].mxu0  ;;  %v7724_v8 = vpop.f32.mrb[49].mxu1  ;;  %v10146_v14 = vld [vmem:[#allocation5_spill] sm:$0xff] }
 0x95a   : > { %v4101_v5 = vadd.f32 %v4097_v59, %v9638_v18  ;;  %v4102_v53 = vadd.f32 %v9457_v4, %v4100_v63  ;;  %v4191_v52 = vadd.f32 %v4187_v17, %v9642_v3  ;;  %v4192_v57 = vadd.f32 %v9464_v50, %v4190_v25  ;;  %v10147_v17 = vld [vmem:[#allocation7_spill] sm:$0xff] }
 0x95c   : > { %v4103_v0 = vadd.f32 %v4101_v5, %v9061_v9  ;;  %v6904_v22 = vmul.f32 -1.442695, %v4102_v53  ;;  %v4193_v1 = vadd.f32 %v4191_v52, %v9093_v42  ;;  %v6907_v20 = vmul.f32 -1.442695, %v4192_v57 }
 0x95e   : > { %8583 = vpow2.f32 %v6904_v22  ;;  %v6905_v7 = vmul.f32 -1.442695, %v4103_v0  ;;  %v6908_v36 = vmul.f32 -1.442695, %v4193_v1 }
 0x95f   : > { %8585 = vpow2.f32 %v6907_v20  ;;  %v4272_v43 = vpop.f32.mrb[42].mxu0  ;;  %v4352_v23 = vpop.f32.mrb[50].mxu1 }
 0x960   : > { %8587 = vpow2.f32 %v6905_v7  ;;  %v4277_v9 = vrot.slane %v4272_v43, 1  ;;  %v4280_v60 = vadd.f32 %v4272_v43, %v10146_v14  ;;  %v4357_v42 = vrot.slane %v4352_v23, 1  ;;  %v7735_v59 = vpop.f32.mrb[43].mxu0  ;;  %v7746_v63 = vpop.f32.mrb[51].mxu1 }
 0x961   : > { %8589 = vpow2.f32 %v6908_v36  ;;  %v4360_v25 = vadd.f32 %v4352_v23, %v10147_v17  ;;  %v6913_v59 = vrot.slane %v9599_v58, 11 }
 0x962   : > { %v4281_v62 = vadd.f32 %v4277_v9, %v9654_v30  ;;  %v4361_v19 = vadd.f32 %v4357_v42, %v9658_v21  ;;  %v4282_v31 = vadd.f32 %v9476_v11, %v4280_v60 }
 0x963   : > { %v4362_v8 = vadd.f32 %v9482_v56, %v4360_v25 }
 0x964   : > { %v4283_v5 = vadd.f32 %v4281_v62, %v9084_v33  ;;  %v4363_v53 = vadd.f32 %v4361_v19, %v9110_v12  ;;  %8591 = vtanh.f32 %v4282_v31  ;;  %v6914_v31 = vrot.slane %v9601_v54, 11 }
 0x965   : > { %v6911_v52 = vmul.f32 -1.442695, %v4362_v8 }
 0x966   : > { %v6912_v57 = vmul.f32 -1.442695, %v4363_v53  ;;  %8593 = vtanh.f32 %v4283_v5 }
 0x967   : > { %8595 = vpow2.f32 %v6911_v52 }
 0x968   : > { %v8584_v0 = vpop.eup %8583  ;;  %8597 = vpow2.f32 %v6912_v57 }
 0x969   : > { %v8586_v22 = vpop.eup %8585  ;;  %v4110_v1 = vadd.f32 1.0, %v8584_v0 }
 0x96a   : > { %v8588_v20 = vpop.eup %8587  ;;  %v4200_v7 = vadd.f32 1.0, %v8586_v22 }
 0x96b   : > { %v8590_v36 = vpop.eup %8589  ;;  %v4111_v43 = vadd.f32 1.0, %v8588_v20  ;;  %8599 = vrcp.f32 %v4110_v1 }
 0x96c   : > { %v4201_v23 = vadd.f32 1.0, %v8590_v36  ;;  %8601 = vrcp.f32 %v4200_v7 }
 0x96d   : > { %8603 = vrcp.f32 %v4111_v43 }
 0x96e   : > { %8605 = vrcp.f32 %v4201_v23  ;;  %v8592_v33 = vpop.eup %8591 }
 0x970   : > { %v8594_v12 = vpop.eup %8593 }
 0x971   : > { %v8596_v9 = vpop.eup %8595 }
 0x972   : > { %v8598_v60 = vpop.eup %8597  ;;  %v4370_v62 = vadd.f32 1.0, %v8596_v9 }
 0x973   : > { %v4371_v52 = vadd.f32 1.0, %v8598_v60 }
 0x974   : > { %8607 = vrcp.f32 %v4370_v62 }
 0x975   : > { %v8600_v42 = vpop.eup %8599 }
 0x976   : > { %v8602_v63 = vpop.eup %8601  ;;  %v4386_v25 = vmul.f32 %v8600_v42, %v8592_v33 }
 0x977   : > { %v8604_v19 = vpop.eup %8603  ;;  %v4384_v8 = vmul.f32 %v8602_v63, %v6913_v59 }
 0x978   : > { %v8606_v5 = vpop.eup %8605  ;;  %v4387_v53 = vmul.f32 %v8604_v19, %v8594_v12 }
 0x979   : > { %v4385_v57 = vmul.f32 %v8606_v5, %v6914_v31  ;;  %v9670_v0 = vadd.f32 %v4386_v25, %v4384_v8 }
 0x97b   : > { %v9672_v22 = vadd.f32 %v4387_v53, %v4385_v57  ;;  %8609 = vtanh.f32 %v9670_v0 }
 0x97c   : > { %8611 = vrcp.f32 %v4371_v52 }
 0x97d   : > { %8613 = vtanh.f32 %v9672_v22 }
 0x97e   : > { %v8608_v58 = vpop.eup %8607 }
 0x985   : > { %v8610_v1 = vpop.eup %8609 }
 0x986   : > { %v8612_v20 = vpop.eup %8611  ;;  %v4392_v7 = vmul.f32 %v8610_v1, %v8608_v58 }
 0x987   : > { %v8614_v54 = vpop.eup %8613 }
 0x988   : > { %v4393_v36 = vmul.f32 %v8614_v54, %v8612_v20  ;;  %v4399_v43 = vrot.slane %v4392_v7, %v9137_v32 }
 0x98a   : > { %v4403_v23 = vrot.slane %v4393_v36, %v9137_v32 }
 0x98c   : > { %v4404_v33 = vsel %vm1327_vm3, %v4403_v23, %v4399_v43 }
 0x98d   : > { %7756 = vmatmul.mubr.msk.f32.vlgmr.msra.gmra.mrb[44].mxu0 %vm917_vm2, %v4404_v33  ;;  %7767 = vmatmul.mubr.msk.f32.vlgmr.msra.gmra.mrb[52].mxu1 %vm917_vm2, %v4404_v33 }
 0x98e   : > { %8206 = vmatpush3.bf16.msra.mxu0 %v8948_v34  ;;  %8212 = vmatpush3.bf16.msra.mxu1 %v9006_v44 }
 0x98f   : > { %8207 = vmatprep.subr.bf16.mxu0 %v10143_v46  ;;  %8213 = vmatprep.subr.bf16.mxu1 %v10143_v46 }
 0x990   : > { %7777 = vmatprep.mubr.msk.f32.mxu0 %vm8742_vm0, %v10144_v27  ;;  %7788 = vmatprep.mubr.msk.f32.mxu1 %vm8742_vm0, %v10144_v27 }
 0x992   : > { %8209 = vmatpush3.bf16.msra.mxu0 %v8970_v40  ;;  %8215 = vmatpush3.bf16.msra.mxu1 %v9018_v47 }
 0x993   : > { %8216 = vmatprep.subr.bf16.mxu0 %v10143_v46  ;;  %8222 = vmatprep.subr.bf16.mxu1 %v10143_v46 }
 0x995   : > { %7778 = vmatmul.mubr.msk.f32.vlgmr.msra.gmra.mrb[46].mxu0 %vm917_vm2, %v4404_v33  ;;  %7789 = vmatmul.mubr.msk.f32.vlgmr.msra.gmra.mrb[54].mxu1 %vm917_vm2, %v4404_v33 }
 0x996   : > { %8218 = vmatpush3.bf16.msra.mxu0 %v8887_v24  ;;  %8224 = vmatpush3.bf16.msra.mxu1 %v8960_v37 }
 0x997   : > { %8219 = vmatprep.subr.bf16.mxu0 %v10143_v46  ;;  %8225 = vmatprep.subr.bf16.mxu1 %v10143_v46 }
 0x998   : > { %7799 = vmatprep.mubr.msk.f32.mxu0 %vm8742_vm0, %v10144_v27  ;;  %7810 = vmatprep.mubr.msk.f32.mxu1 %vm8742_vm0, %v10144_v27 }
 0x99a   : > { %8221 = vmatpush3.bf16.msra.mxu0 %v8905_v28  ;;  %8227 = vmatpush3.bf16.msra.mxu1 %v8980_v41 }
 0x99b   : > { %8228 = vmatprep.subr.bf16.mxu0 %v10143_v46  ;;  %8234 = vmatprep.subr.bf16.mxu1 %v10143_v46 }
 0xa60   : > { %v4473_v32 = vpop.f32.mrb[44].mxu0  ;;  %v4563_v12 = vpop.f32.mrb[52].mxu1 }
 0xa61   : > { %v4478_v9 = vrot.slane %v4473_v32, 7  ;;  %v4482_v60 = vadd.f32 %v4473_v32, %v9638_v18  ;;  %v4568_v42 = vrot.slane %v4563_v12, 7  ;;  %v4572_v59 = vadd.f32 %v4563_v12, %v9642_v3  ;;  %v7757_v63 = vpop.f32.mrb[45].mxu0  ;;  %v7768_v25 = vpop.f32.mrb[53].mxu1 }
 0xa63   : > { %v4481_v62 = vadd.f32 %v4478_v9, %v9032_v48  ;;  %v4484_v19 = vadd.f32 %v9457_v4, %v4482_v60  ;;  %v4571_v31 = vadd.f32 %v4568_v42, %v10145_v39  ;;  %v4574_v8 = vadd.f32 %v9464_v50, %v4572_v59 }
 0xa65   : > { %v4483_v5 = vadd.f32 %v4481_v62, %v9171_v51  ;;  %v6917_v53 = vmul.f32 -1.442695, %v4484_v19  ;;  %v4573_v52 = vadd.f32 %v4571_v31, %v9174_v55  ;;  %v6920_v57 = vmul.f32 -1.442695, %v4574_v8 }
 0xa67   : > { %v6916_v58 = vmul.f32 -1.442695, %v4483_v5  ;;  %8615 = vpow2.f32 %v6917_v53  ;;  %v6919_v1 = vmul.f32 -1.442695, %v4573_v52 }
 0xa68   : > { %8617 = vpow2.f32 %v6920_v57  ;;  %v4653_v20 = vpop.f32.mrb[46].mxu0  ;;  %v4733_v7 = vpop.f32.mrb[54].mxu1 }
 0xa69   : > { %8619 = vpow2.f32 %v6916_v58  ;;  %v4658_v54 = vrot.slane %v4653_v20, 7  ;;  %v4662_v4 = vadd.f32 %v4653_v20, %v9654_v30  ;;  %v4738_v36 = vrot.slane %v4733_v7, 7  ;;  %v7779_v43 = vpop.f32.mrb[47].mxu0  ;;  %v7790_v23 = vpop.f32.mrb[55].mxu1 }
 0xa6a   : > { %8621 = vpow2.f32 %v6919_v1  ;;  %v4742_v50 = vadd.f32 %v4733_v7, %v9658_v21  ;;  %v4760_v20 = vrot.slane %v9672_v22, 7  ;;  %v4759_v43 = vrot.slane %v9670_v0, 7 }
 0xa6b   : > { %v4661_v33 = vadd.f32 %v4658_v54, %v10146_v14  ;;  %v4741_v32 = vadd.f32 %v4738_v36, %v10147_v17  ;;  %v4664_v12 = vadd.f32 %v9476_v11, %v4662_v4 }
 0xa6c   : > { %v4744_v9 = vadd.f32 %v9482_v56, %v4742_v50 }
 0xa6d   : > { %v4663_v60 = vadd.f32 %v4661_v33, %v9185_v45  ;;  %v4743_v42 = vadd.f32 %v4741_v32, %v9188_v49  ;;  %8623 = vtanh.f32 %v4664_v12 }
 0xa6e   : > { %v6924_v59 = vmul.f32 -1.442695, %v4744_v9 }
 0xa6f   : > { %v6923_v63 = vmul.f32 -1.442695, %v4743_v42  ;;  %8625 = vtanh.f32 %v4663_v60 }
 0xa70   : > { %8627 = vpow2.f32 %v6924_v59 }
 0xa71   : > { %v8616_v25 = vpop.eup %8615  ;;  %8629 = vpow2.f32 %v6923_v63 }
 0xa72   : > { %v8618_v62 = vpop.eup %8617  ;;  %v4492_v19 = vadd.f32 1.0, %v8616_v25 }
 0xa73   : > { %v8620_v31 = vpop.eup %8619  ;;  %v4582_v8 = vadd.f32 1.0, %v8618_v62 }
 0xa74   : > { %v8622_v5 = vpop.eup %8621  ;;  %v4491_v53 = vadd.f32 1.0, %v8620_v31  ;;  %8631 = vrcp.f32 %v4492_v19 }
 0xa75   : > { %v4581_v11 = vadd.f32 1.0, %v8622_v5  ;;  %8633 = vrcp.f32 %v4582_v8 }
 0xa76   : > { %8635 = vrcp.f32 %v4491_v53 }
 0xa77   : > { %8637 = vrcp.f32 %v4581_v11  ;;  %v8624_v56 = vpop.eup %8623 }
 0xa79   : > { %v8626_v52 = vpop.eup %8625 }
 0xa7a   : > { %v8628_v57 = vpop.eup %8627 }
 0xa7b   : > { %v8630_v58 = vpop.eup %8629  ;;  %v4752_v4 = vadd.f32 1.0, %v8628_v57 }
 0xa7c   : > { %v4751_v32 = vadd.f32 1.0, %v8630_v58 }
 0xa7d   : > { %8639 = vrcp.f32 %v4752_v4 }
 0xa7e   : > { %v8632_v1 = vpop.eup %8631 }
 0xa7f   : > { %v8634_v7 = vpop.eup %8633  ;;  %v4766_v54 = vmul.f32 %v8632_v1, %v8624_v56 }
 0xa80   : > { %v8636_v36 = vpop.eup %8635  ;;  %v4764_v23 = vmul.f32 %v8634_v7, %v4760_v20 }
 0xa81   : > { %v8638_v50 = vpop.eup %8637  ;;  %v4765_v33 = vmul.f32 %v8636_v36, %v8626_v52 }
 0xa82   : > { %v4763_v12 = vmul.f32 %v8638_v50, %v4759_v43  ;;  %v9725_v9 = vadd.f32 %v4766_v54, %v4764_v23 }
 0xa84   : > { %v9727_v60 = vadd.f32 %v4765_v33, %v4763_v12  ;;  %8641 = vtanh.f32 %v9725_v9 }
 0xa85   : > { %8643 = vrcp.f32 %v4751_v32 }
 0xa86   : > { %8645 = vtanh.f32 %v9727_v60 }
 0xa87   : > { %v8640_v22 = vpop.eup %8639 }
 0xa8e   : > { %v8642_v42 = vpop.eup %8641 }
 0xa8f   : > { %v8644_v59 = vpop.eup %8643  ;;  %v4772_v63 = vmul.f32 %v8642_v42, %v8640_v22 }
 0xa90   : > { %v8646_v0 = vpop.eup %8645 }
 0xa91   : > { %v4771_v25 = vmul.f32 %v8646_v0, %v8644_v59  ;;  %v4782_v19 = vrot.slane %v4772_v63, %v9207_v16 }
 0xa93   : > { %v4778_v62 = vrot.slane %v4771_v25, %v9207_v16 }
 0xa95   : > { %v4783_v31 = vsel %vm1327_vm3, %v4782_v19, %v4778_v62 }
 0xa96   : > { %7800 = vmatmul.mubr.msk.f32.vlgmr.msra.gmra.mrb[48].mxu0 %vm917_vm2, %v4783_v31  ;;  %7811 = vmatmul.mubr.msk.f32.vlgmr.msra.gmra.mrb[56].mxu1 %vm917_vm2, %v4783_v31 }
 0xa97   : > { %8230 = vmatpush3.bf16.msra.mxu0 %v8948_v34  ;;  %8236 = vmatpush3.bf16.msra.mxu1 %v9006_v44 }
 0xa98   : > { %8231 = vmatprep.subr.bf16.mxu0 %v10143_v46  ;;  %8237 = vmatprep.subr.bf16.mxu1 %v10143_v46 }
 0xa99   : > { %7821 = vmatprep.mubr.msk.f32.mxu0 %vm8742_vm0, %v10144_v27  ;;  %7832 = vmatprep.mubr.msk.f32.mxu1 %vm8742_vm0, %v10144_v27 }
 0xa9b   : > { %8233 = vmatpush3.bf16.msra.mxu0 %v8970_v40  ;;  %8239 = vmatpush3.bf16.msra.mxu1 %v9018_v47 }
 0xa9c   : > { %8240 = vmatprep.subr.bf16.mxu0 %v10143_v46  ;;  %8246 = vmatprep.subr.bf16.mxu1 %v10143_v46 }
 0xa9e   : > { %7822 = vmatmul.mubr.msk.f32.vlgmr.msra.gmra.mrb[50].mxu0 %vm917_vm2, %v4783_v31  ;;  %7833 = vmatmul.mubr.msk.f32.vlgmr.msra.gmra.mrb[58].mxu1 %vm917_vm2, %v4783_v31 }
 0xa9f   : > { %8242 = vmatpush3.bf16.msra.mxu0 %v8887_v24  ;;  %8248 = vmatpush3.bf16.msra.mxu1 %v8960_v37 }
 0xaa0   : > { %8243 = vmatprep.subr.bf16.mxu0 %v10143_v46  ;;  %8249 = vmatprep.subr.bf16.mxu1 %v10143_v46 }
 0xaa1   : > { %7843 = vmatprep.mubr.msk.f32.mxu0 %vm8742_vm0, %v10144_v27  ;;  %7854 = vmatprep.mubr.msk.f32.mxu1 %vm8742_vm0, %v10144_v27 }
 0xaa3   : > { %8245 = vmatpush3.bf16.msra.mxu0 %v8905_v28  ;;  %8251 = vmatpush3.bf16.msra.mxu1 %v8980_v41 }
 0xaa4   : > { %8252 = vmatprep.subr.bf16.mxu0 %v10143_v46  ;;  %8258 = vmatprep.subr.bf16.mxu1 %v10143_v46 }
 0xb69   : > { %v4852_v24 = vpop.f32.mrb[48].mxu0  ;;  %v4943_v37 = vpop.f32.mrb[56].mxu1 }
 0xb6a   : > { %v4857_v16 = vrot.slane %v4852_v24, 6  ;;  %v4858_v8 = vrot.slane %v4852_v24, 7  ;;  %v4948_v5 = vrot.slane %v4943_v37, 6  ;;  %v4949_v53 = vrot.slane %v4943_v37, 7  ;;  %v7801_v11 = vpop.f32.mrb[49].mxu0  ;;  %v7812_v56 = vpop.f32.mrb[57].mxu1 }
 0xb6c   : > { %v4861_v52 = vadd.f32 %v4857_v16, %v9032_v48  ;;  %v4862_v57 = vadd.f32 %v4858_v8, %v9638_v18  ;;  %v4952_v28 = vadd.f32 %v4948_v5, %v10145_v39  ;;  %v4953_v41 = vadd.f32 %v4949_v53, %v9642_v3 }
 0xb6e   : > { %v4863_v58 = vadd.f32 %v4861_v52, %v9241_v26  ;;  %v4864_v1 = vadd.f32 %v4862_v57, %v9171_v51  ;;  %v4954_v20 = vadd.f32 %v4952_v28, %v9244_v29  ;;  %v4955_v7 = vadd.f32 %v4953_v41, %v9174_v55 }
 0xb70   : > { %v6926_v54 = vmul.f32 -1.442695, %v4863_v58  ;;  %v6927_v4 = vmul.f32 -1.442695, %v4864_v1  ;;  %v6929_v36 = vmul.f32 -1.442695, %v4954_v20 }
 0xb71   : > { %v6930_v43 = vmul.f32 -1.442695, %v4955_v7  ;;  %v5034_v23 = vpop.f32.mrb[50].mxu0  ;;  %v5115_v50 = vpop.f32.mrb[58].mxu1  ;;  %v5142_v20 = vrot.slane %v9727_v60, 7 }
 0xb72   : > { %8647 = vpow2.f32 %v6926_v54  ;;  %v5039_v33 = vrot.slane %v5034_v23, 6  ;;  %v5040_v32 = vrot.slane %v5034_v23, 7  ;;  %v5120_v12 = vrot.slane %v5115_v50, 6  ;;  %v7823_v22 = vpop.f32.mrb[51].mxu0  ;;  %v7834_v42 = vpop.f32.mrb[59].mxu1 }
 0xb73   : > { %8649 = vpow2.f32 %v6927_v4  ;;  %v5121_v59 = vrot.slane %v5115_v50, 7 }
 0xb74   : > { %8651 = vpow2.f32 %v6929_v36  ;;  %v5043_v51 = vadd.f32 %v5039_v33, %v10146_v14  ;;  %v5044_v63 = vadd.f32 %v5040_v32, %v9654_v30  ;;  %v5124_v55 = vadd.f32 %v5120_v12, %v10147_v17 }
 0xb75   : > { %8653 = vpow2.f32 %v6930_v43  ;;  %v5125_v0 = vadd.f32 %v5121_v59, %v9658_v21  ;;  %v5143_v36 = vrot.slane %v9725_v9, 7 }
 0xb76   : > { %v5126_v25 = vadd.f32 %v5124_v55, %v9255_v35  ;;  %v5045_v62 = vadd.f32 %v5043_v51, %v9258_v61  ;;  %v5046_v31 = vadd.f32 %v5044_v63, %v9185_v45 }
 0xb77   : > { %v5127_v19 = vadd.f32 %v5125_v0, %v9188_v49 }
 0xb78   : > { %v6933_v24 = vmul.f32 -1.442695, %v5126_v25  ;;  %8655 = vtanh.f32 %v5045_v62  ;;  %v5556_v62 = vld [vmem:[%s10114_s7] sm:$0xff] }
 0xb79   : > { %v6934_v37 = vmul.f32 -1.442695, %v5127_v19  ;;  %8657 = vtanh.f32 %v5046_v31  ;;  %v5554_v19 = vld [vmem:[%s10113_s6] sm:$0xff] }
 0xb7a   : > { %8659 = vpow2.f32 %v6933_v24  ;;  %v5558_v24 = vld [vmem:[%s10114_s7 + $0x10] sm:$0xff] }
 0xb7b   : > { %8661 = vpow2.f32 %v6934_v37  ;;  %v8731_v37 = vld [vmem:[%s8848_s21 + $0x8] sm:$0xf] }
 0xb7c   : > { %v8648_v16 = vpop.eup %8647 }
 0xb7d   : > { %v8650_v8 = vpop.eup %8649  ;;  %v4871_v5 = vadd.f32 1.0, %v8648_v16  ;;  %v5633_v16 = vrot.slane %v8731_v37, 3  ;;  %v6220_v37 = vld [vmem:[%s10116_s9 + $0x38] sm:$0xff] }
 0xb7e   : > { %v8652_v53 = vpop.eup %8651  ;;  %v4872_v11 = vadd.f32 1.0, %v8650_v8  ;;  %v8732_v8 = vld [vmem:[%s8848_s21 + $0x18] sm:$0xf]  ;;  %s499_s21 = scalar_lea.vmem %s10120_s13, %s10059_s14 }
 0xb7f   : > { %v8654_v56 = vpop.eup %8653  ;;  %8663 = vrcp.f32 %v4871_v5  ;;  %v4962_v52 = vadd.f32 1.0, %v8652_v53  ;;  %v5634_v5 = vrot.slane %v8732_v8, 2  ;;  %v6952_v53 = vld [vmem:[%s10114_s7 + $0x28] sm:$0xff] }
 0xb80   : > { %8665 = vrcp.f32 %v4872_v11  ;;  %v4963_v57 = vadd.f32 1.0, %v8654_v56 }
 0xb81   : > { %8667 = vrcp.f32 %v4962_v52  ;;  %v9832_v56 = vsel %vm1327_vm3, %v5634_v5, %v5633_v16 }
 0xb82   : > { %8669 = vrcp.f32 %v4963_v57  ;;  %v8656_v49 = vpop.eup %8655  ;;  %v6953_v57 = vld [vmem:[%s10114_s7 + $0x30] sm:$0xff] }
 0xb83   : > { %v8658_v45 = vpop.eup %8657 }
 0xb84   : > { %v8660_v28 = vpop.eup %8659 }
 0xb85   : > { %v8662_v41 = vpop.eup %8661  ;;  %v5134_v54 = vadd.f32 1.0, %v8660_v28  ;;  %v6950_v28 = vld [vmem:[%s10113_s6 + $0x18] sm:$0xff] }
 0xb86   : > { %v5135_v23 = vadd.f32 1.0, %v8662_v41  ;;  %v9855_v41 = vld [vmem:[%s8927_s29 + $0x2] sm:$0x3] }
 0xb87   : > { %8671 = vrcp.f32 %v5134_v54  ;;  %v6960_v54 = vld [vmem:[%s10113_s6 + $0x20] sm:$0xff] }
 0xb88   : > { %8673 = vrcp.f32 %v5135_v23  ;;  %v6964_v23 = vld [vmem:[%s10114_s7 + $0x50] sm:$0xff] }
 0xb89   : > { %v8664_v58 = vpop.eup %8663 }
 0xb8a   : > { %v8666_v1 = vpop.eup %8665  ;;  %v5148_v7 = vmul.f32 %v8664_v58, %v8656_v49  ;;  %v6954_v49 = vld [vmem:[%s10114_s7 + $0x38] sm:$0xff] }
 0xb8b   : > { %v8668_v4 = vpop.eup %8667  ;;  %v5149_v43 = vmul.f32 %v8666_v1, %v8658_v45  ;;  %v6949_v45 = vld [vmem:[%s10113_s6 + $0x10] sm:$0xff]  ;;  %v8277_v58 = vpack.c.bf16 %v6954_v49, %v6953_v57 }
 0xb8c   : > { %v8670_v50 = vpop.eup %8669  ;;  %v5146_v33 = vmul.f32 %v8668_v4, %v5142_v20  ;;  %v8280_v1 = vpack.c.bf16 %v6950_v28, %v6949_v45  ;;  %v6962_v20 = vld [vmem:[%s10114_s7 + $0x40] sm:$0xff]  ;;  %v6961_v4 = vld [vmem:[%s10113_s6 + $0x28] sm:$0xff] }
 0xb8d   : > { %v5147_v32 = vmul.f32 %v8670_v50, %v5143_v36  ;;  %v6965_v50 = vld [vmem:[%s10114_s7 + $0x58] sm:$0xff] }
 0xb8e   : > { %v9780_v12 = vadd.f32 %v5148_v7, %v5146_v33  ;;  %v6963_v7 = vld [vmem:[%s10114_s7 + $0x48] sm:$0xff]  ;;  %v6972_v33 = vld [vmem:[%s10114_s7 + $0x60] sm:$0xff] }
 0xb8f   : > { %v9782_v22 = vadd.f32 %v5149_v43, %v5147_v32  ;;  %v8283_v36 = vpack.c.bf16 %v6963_v7, %v6962_v20  ;;  %v8289_v43 = vpack.c.bf16 %v6961_v4, %v6960_v54  ;;  %v6973_v32 = vld [vmem:[%s10114_s7 + $0x68] sm:$0xff] }
 0xb90   : > { %8675 = vtanh.f32 %v9780_v12 }
 0xb91   : > { %8677 = vtanh.f32 %v9782_v22  ;;  %v8672_v60 = vpop.eup %8671 }
 0xb92   : > { %v8674_v42 = vpop.eup %8673 }
 0xb9a   : > { %v8676_v59 = vpop.eup %8675 }
 0xb9b   : > { %v8678_v51 = vpop.eup %8677  ;;  %v5154_v9 = vmul.f32 %v8676_v59, %v8672_v60  ;;  %v8286_v60 = vpack.c.bf16 %v6965_v50, %v6964_v23  ;;  %v6974_v59 = vld [vmem:[%s10114_s7 + $0x70] sm:$0xff] }
 0xb9c   : > { %v5155_v63 = vmul.f32 %v8678_v51, %v8674_v42  ;;  %v8292_v42 = vpack.c.bf16 %v6973_v32, %v6972_v33  ;;  %v6975_v51 = vld [vmem:[%s10114_s7 + $0x78] sm:$0xff] }
 0xb9d   : > { %v5161_v55 = vrot.slane %v5154_v9, %v9277_v10  ;;  %v6970_v9 = vld [vmem:[%s10113_s6 + $0x30] sm:$0xff] }
 0xb9e   : > { %v5165_v0 = vrot.slane %v5155_v63, %v9277_v10  ;;  %v5557_v10 = vld [vmem:[%s10114_s7 + $0x8] sm:$0xff]  ;;  %v6971_v63 = vld [vmem:[%s10113_s6 + $0x38] sm:$0xff] }
 0xba0   : > { %v5166_v25 = vsel %vm1327_vm3, %v5165_v0, %v5161_v55  ;;  %v6214_v55 = vld [vmem:[%s10116_s9 + $0x8] sm:$0xff]  ;;  %v6219_v0 = vld [vmem:[%s10116_s9 + $0x30] sm:$0xff] }
 0xba1   : > { %7844 = vmatmul.mubr.msk.f32.vlgmr.msra.gmra.mrb[52].mxu0 %vm917_vm2, %v5166_v25  ;;  %7855 = vmatmul.mubr.msk.f32.vlgmr.msra.gmra.mrb[60].mxu1 %vm917_vm2, %v5166_v25 }
 0xba2   : > { %8254 = vmatpush3.bf16.msra.mxu0 %v8948_v34  ;;  %8260 = vmatpush3.bf16.msra.mxu1 %v9006_v44  ;;  %v5555_v34 = vld [vmem:[%s10113_s6 + $0x8] sm:$0xff]  ;;  %v8265_v44 = vpack.c.bf16 %v5557_v10, %v5556_v62  ;;  %v6221_v62 = vld [vmem:[%s10116_s9 + $0x40] sm:$0xff]  ;;  %v8295_v10 = vpack.c.bf16 %v6975_v51, %v6974_v59 }
 0xba3   : > { %8255 = vmatprep.subr.bf16.mxu0 %v10143_v46  ;;  %8261 = vmatprep.subr.bf16.mxu1 %v10143_v46  ;;  %v8271_v31 = vpack.c.bf16 %v5555_v34, %v5554_v19  ;;  %v8298_v19 = vpack.c.bf16 %v6971_v63, %v6970_v9  ;;  %v6213_v34 = vld [vmem:[%s10116_s9] sm:$0xff] }
 0xba4   : > { %7865 = vmatprep.mubr.msk.f32.mxu0 %vm8742_vm0, %v10144_v27  ;;  %7876 = vmatprep.mubr.msk.f32.mxu1 %vm8742_vm0, %v10144_v27 }
 0xba6   : > { %8257 = vmatpush3.bf16.msra.mxu0 %v8970_v40  ;;  %8263 = vmatpush3.bf16.msra.mxu1 %v9018_v47  ;;  %v5559_v40 = vld [vmem:[%s10114_s7 + $0x18] sm:$0xff]  ;;  %v6951_v47 = vld [vmem:[%s10114_s7 + $0x20] sm:$0xff] }
 0xba7   : > { %8264 = vmatprep.subr.bf16.mxu0 %v10143_v46  ;;  %8270 = vmatprep.subr.bf16.mxu1 %v10143_v46  ;;  %v8268_v11 = vpack.c.bf16 %v5559_v40, %v5558_v24  ;;  %v8274_v52 = vpack.c.bf16 %v6952_v53, %v6951_v47  ;;  %v6215_v24 = vld [vmem:[%s10116_s9 + $0x10] sm:$0xff]  ;;  %v6217_v40 = vld [vmem:[%s10116_s9 + $0x20] sm:$0xff]  ;;  %v6222_v47 = vld [vmem:[%s10116_s9 + $0x48] sm:$0xff] }
 0xba8   : > { %v8306_v5 = vpack.c.bf16 %v6220_v37, %v6215_v24  ;;  %v8309_v53 = vpack.c.bf16 %v6222_v47, %v6217_v40 }
 0xba9   : > { %7866 = vmatmul.mubr.msk.f32.vlgmr.msra.gmra.mrb[54].mxu0 %vm917_vm2, %v5166_v25  ;;  %7877 = vmatmul.mubr.msk.f32.vlgmr.msra.gmra.mrb[62].mxu1 %vm917_vm2, %v5166_v25  ;;  %v6216_v25 = vld [vmem:[%s10116_s9 + $0x18] sm:$0xff] }
 0xbaa   : > { %8266 = vmatpush3.bf16.msra.mxu0 %v8265_v44  ;;  %8272 = vmatpush3.bf16.msra.mxu1 %v8271_v31  ;;  %v8300_v44 = vpack.c.bf16 %v6219_v0, %v6214_v55  ;;  %v6218_v31 = vld [vmem:[%s10116_s9 + $0x28] sm:$0xff]  ;;  %v8304_v16 = vpack.c.bf16 %v6221_v62, %v6216_v25 }
 0xbab   : > { %8267 = vmatprep.subr.bf16.mxu0 %v10143_v46  ;;  %7894 = vmatprep.mubr.msk.f32.mxu1 %vm8742_vm0, %v10144_v27  ;;  %v8302_v8 = vpack.c.bf16 %v6218_v31, %v6213_v34 }
 0xbac   : > { %8273 = vmatprep.subr.bf16.mxu1 %v10143_v46  ;;  %7887 = vmatprep.mubr.msk.f32.mxu0 %vm8742_vm0, %v10144_v27 }
 0xbad   : > { %7895 = vmatmul.mubr.msk.f32.vlgmr.msra.gmra.mrb[64].mxu1 %vm515_vm1, %v9832_v56 }
 0xbae   : > { %8269 = vmatpush3.bf16.msra.mxu0 %v8268_v11  ;;  %8275 = vmatpush3.bf16.msra.mxu1 %v8274_v52  ;;  %v10148_v11 = vld [vmem:[#allocation3_spill] sm:$0xff] }
 0xbaf   : > { %8276 = vmatprep.subr.bf16.mxu1 %v10143_v46  ;;  %8279 = vmatprep.subr.bf16.mxu0 %v10143_v46 }
 0xbb0   : > { %7905 = vmatprep.mubr.msk.f32.mxu1 %vm8742_vm0, %v10144_v27 }
 0xbb1   : > { %7888 = vmatmul.mubr.msk.f32.vlgmr.msra.gmra.mrb[56].mxu0 %vm917_vm2, %v9855_v41 }
 0xbb2   : > { %8278 = vmatpush3.bf16.msra.mxu1 %v8277_v58  ;;  %8281 = vmatpush3.bf16.msra.mxu0 %v8280_v1 }
 0xbb3   : > { %7912 = vmatprep.mubr.msk.f32.mxu0 %vm8742_vm0, %v10144_v27  ;;  %8282 = vmatprep.subr.bf16.mxu0 %v10143_v46 }
 0xbb4   : > { %8288 = vmatprep.subr.bf16.mxu1 %v10143_v46 }
 0xbb5   : > { %7906 = vmatmul.mubr.msk.f32.vlgmr.msra.gmra.mrb[66].mxu1 %vm917_vm2, %v9855_v41  ;;  %7913 = vmatmul.mubr.msk.f32.vlgmr.msra.gmra.mrb[58].mxu0 %vm515_vm1, %v9832_v56 }
 0xbb6   : > { %8284 = vmatpush3.bf16.msra.mxu0 %v8283_v36  ;;  %8290 = vmatpush3.bf16.msra.mxu1 %v8289_v43 }
 0xbb7   : > { %8285 = vmatprep.subr.bf16.mxu0 %v10143_v46  ;;  %7930 = vmatprep.mubr.msk.f32.mxu1 %vm8742_vm0, %v10144_v27 }
 0xbb8   : > { %8291 = vmatprep.subr.bf16.mxu1 %v10143_v46  ;;  %7923 = vmatprep.mubr.msk.f32.mxu0 %vm8742_vm0, %v10144_v27 }
 0xbb9   : > { %7931 = vmatmul.mubr.msk.f32.vlgmr.msra.gmra.mrb[68].mxu1 %vm515_vm1, %v9832_v56 }
 0xbba   : > { %8287 = vmatpush3.bf16.msra.mxu0 %v8286_v60  ;;  %8293 = vmatpush3.bf16.msra.mxu1 %v8292_v42 }
 0xbbb   : > { %8294 = vmatprep.subr.bf16.mxu1 %v10143_v46  ;;  %8297 = vmatprep.subr.bf16.mxu0 %v10143_v46 }
 0xbbc   : > { %7941 = vmatprep.mubr.msk.f32.mxu1 %vm8742_vm0, %v10144_v27 }
 0xbbd   : > { %7924 = vmatmul.mubr.msk.f32.vlgmr.msra.gmra.mrb[60].mxu0 %vm917_vm2, %v9855_v41 }
 0xbbe   : > { %8296 = vmatpush3.bf16.msra.mxu1 %v8295_v10  ;;  %8299 = vmatpush3.bf16.msra.mxu0 %v8298_v19 }
 0xbbf   : > { %7948 = vmatprep.mubr.msk.f32.mxu0 %vm8742_vm0, %v10144_v27  ;;  %8301 = vmatprep.subr.bf16.mxu0 %v8300_v44 }
 0xbc0   : > { %8305 = vmatprep.subr.bf16.mxu1 %v8304_v16 }
 0xbc1   : > { %7942 = vmatmul.mubr.msk.f32.vlgmr.msra.gmra.mrb[70].mxu1 %vm917_vm2, %v9855_v41  ;;  %7949 = vmatmul.mubr.msk.f32.vlgmr.msra.gmra.mrb[62].mxu0 %vm515_vm1, %v9832_v56  ;;  %v10149_v56 = vld [vmem:[#allocation2_spill] sm:$0xff] }
 0xbc2   : > { %8303 = vmatpush1.bf16.msra.mxu0 %v8302_v8  ;;  %8307 = vmatpush1.bf16.msra.mxu1 %v8306_v5 }
 0xbc3   : > { %6287 = vmatprep.mubr.f32.mxu0 %v10144_v27  ;;  %6370 = vmatprep.mubr.f32.mxu1 %v10144_v27 }
 0xbc4   : > { %8308 = vmatprep.subr.bf16.mxu0 %v10143_v46  ;;  %v10150_v46 = vld [vmem:[#allocation4_spill] sm:$0xff] }
 0xbc5   : > { %6981 = vmatmul.mubr.msk.f32.vlgmr.msra.gmra.mrb[64].mxu0 %vm515_vm1, %v10148_v11  ;;  %6984 = vmatmul.mubr.msk.f32.vlgmr.msra.gmra.mrb[72].mxu1 %vm515_vm1, %v10148_v11 }
 0xbc6   : > { %6293 = vmatprep.mubr.f32.mxu0 %v10144_v27  ;;  %6376 = vmatprep.mubr.f32.mxu1 %v10144_v27 }
 0xbc7   : > { %8310 = vmatpush3.bf16.msra.mxu0 %v8309_v53 }
 0xbc9   : > { %6982 = vmatmul.mubr.msk.f32.gmra.mrb[66].mxu0 %vm515_vm1, %v10149_v56  ;;  %6985 = vmatmul.mubr.msk.f32.gmra.mrb[74].mxu1 %vm515_vm1, %v10149_v56 }
 0xbca   : > { %6299 = vmatprep.mubr.f32.mxu0 %v10144_v27  ;;  %6382 = vmatprep.mubr.f32.mxu1 %v10144_v27 }
 0xbcd   : > { %6983 = vmatmul.mubr.msk.f32.gmra.mrb[68].mxu0 %vm515_vm1, %v10150_v46  ;;  %6986 = vmatmul.mubr.msk.f32.gmra.mrb[76].mxu1 %vm515_vm1, %v10150_v46 }
 0xbce   : > { %7955 = vmatprep.mubr.msk.f32.mxu0 %vm8742_vm0, %v10144_v27 }
 0xbd1   : > { %7956 = vmatmul.mubr.msk.f32.vlgmr.msra.gmra.mrb[70].mxu0 %vm515_vm1, %v10148_v11 }
 0xbd2   : > { %7958 = vmatprep.mubr.msk.f32.mxu0 %vm8742_vm0, %v10144_v27 }
 0xbd5   : > { %7959 = vmatmul.mubr.msk.f32.gmra.mrb[72].mxu0 %vm515_vm1, %v10149_v56 }
 0xbd6   : > { %7961 = vmatprep.mubr.msk.f32.mxu0 %vm8742_vm0, %v10144_v27 }
 0xbd9   : > { %7962 = vmatmul.mubr.msk.f32.gmra.mrb[74].mxu0 %vm515_vm1, %v10150_v46 }
 0xc74   : > { %v5235_v52 = vpop.f32.mrb[52].mxu0  ;;  %v5326_v57 = vpop.f32.mrb[60].mxu1 }
 0xc75   : > { %v5240_v49 = vrot.slane %v5235_v52, 5  ;;  %v5241_v45 = vrot.slane %v5235_v52, 6  ;;  %v5331_v28 = vrot.slane %v5326_v57, 5  ;;  %v5332_v41 = vrot.slane %v5326_v57, 6  ;;  %v7845_v58 = vpop.f32.mrb[53].mxu0  ;;  %v7856_v1 = vpop.f32.mrb[61].mxu1 }
 0xc77   : > { %v5244_v20 = vadd.f32 %v5240_v49, %v9032_v48  ;;  %v5245_v7 = vadd.f32 %v5241_v45, %v9638_v18  ;;  %v5335_v54 = vadd.f32 %v5331_v28, %v10145_v39  ;;  %v5336_v4 = vadd.f32 %v5332_v41, %v9642_v3 }
 0xc79   : > { %v5246_v27 = vadd.f32 %v5244_v20, %v9311_v38  ;;  %v5247_v36 = vadd.f32 %v5245_v7, %v9241_v26  ;;  %v5337_v43 = vadd.f32 %v5335_v54, %v9314_v2  ;;  %v5338_v23 = vadd.f32 %v5336_v4, %v9244_v29  ;;  %v6969_v7 = vld [vmem:[%s10115_s8 + $0x2] ss:$0 sm:$0xff] }
 0xc7b   : > { %v6936_v50 = vmul.f32 -1.442695, %v5246_v27  ;;  %v6937_v33 = vmul.f32 -1.442695, %v5247_v36  ;;  %v6939_v32 = vmul.f32 -1.442695, %v5337_v43 }
 0xc7c   : > { %v6940_v60 = vmul.f32 -1.442695, %v5338_v23  ;;  %v5417_v42 = vpop.f32.mrb[54].mxu0  ;;  %v5498_v48 = vpop.f32.mrb[62].mxu1 }
 0xc7d   : > { %8679 = vpow2.f32 %v6936_v50  ;;  %v5422_v18 = vrot.slane %v5417_v42, 5  ;;  %v5423_v59 = vrot.slane %v5417_v42, 6  ;;  %v5503_v39 = vrot.slane %v5498_v48, 5  ;;  %v7867_v51 = vpop.f32.mrb[55].mxu0  ;;  %v7878_v3 = vpop.f32.mrb[63].mxu1 }
 0xc7e   : > { %8681 = vpow2.f32 %v6937_v33  ;;  %v5504_v38 = vrot.slane %v5498_v48, 6  ;;  %v6979_v50 = vld [vmem:[%s10115_s8 + $0x3] ss:$0 sm:$0xff]  ;;  %v5526_v51 = vrot.slane %v9782_v22, 7 }
 0xc7f   : > { %8683 = vpow2.f32 %v6939_v32  ;;  %v5426_v26 = vadd.f32 %v5422_v18, %v10146_v14  ;;  %v5507_v2 = vadd.f32 %v5503_v39, %v10147_v17  ;;  %v5427_v63 = vadd.f32 %v5423_v59, %v9654_v30  ;;  %v6947_v14 = vld [vmem:[%s10115_s8] ss:$0 sm:$0xff] }
 0xc80   : > { %8685 = vpow2.f32 %v6940_v60  ;;  %v5508_v29 = vadd.f32 %v5504_v38, %v9658_v21  ;;  %v5704_v9 = vpop.f32.mrb[64].mxu1  ;;  %v5525_v32 = vrot.slane %v9780_v12, 7 }
 0xc81   : > { %v5509_v55 = vadd.f32 %v5507_v2, %v9325_v6  ;;  %v7896_v0 = vpop.f32.mrb[65].mxu1  ;;  %v5428_v10 = vadd.f32 %v5426_v26, %v9328_v13  ;;  %v5429_v17 = vadd.f32 %v5427_v63, %v9258_v61  ;;  %v6958_v13 = vld [vmem:[%s10115_s8 + $0x1] ss:$0 sm:$0xff] }
 0xc82   : > { %v5510_v25 = vadd.f32 %v5508_v29, %v9255_v35 }
 0xc83   : > { %v6943_v62 = vmul.f32 -1.442695, %v5509_v55 }
 0xc84   : > { %v6944_v19 = vmul.f32 -1.442695, %v5510_v25  ;;  %v5629_v34 = vpop.f32.mrb[56].mxu0 }
 0xc85   : > { %v5705_v21 = vadd.f32 %v5704_v9, %v5629_v34  ;;  %v7889_v44 = vpop.f32.mrb[57].mxu0  ;;  %8687 = vpow2.f32 %v6943_v62 }
 0xc86   : > { %8689 = vpow2.f32 %v6944_v19 }
 0xc87   : > { %v8680_v30 = vpop.eup %8679  ;;  %v5715_v6 = vadd.f32 %v6947_v14, %v5705_v21  ;;  %8691 = vtanh.f32 %v5428_v10 }
 0xc88   : > { %v8682_v31 = vpop.eup %8681  ;;  %v5254_v24 = vadd.f32 1.0, %v8680_v30  ;;  %v5796_v35 = vpop.f32.mrb[66].mxu1  ;;  %8693 = vtanh.f32 %v5429_v17 }
 0xc89   : > { %v5866_v37 = vpop.f32.mrb[58].mxu0  ;;  %v8684_v16 = vpop.eup %8683  ;;  %v5255_v8 = vadd.f32 1.0, %v8682_v31  ;;  %v6948_v11 = vmul.f32 -1.442695, %v5715_v6 }
 0xc8a   : > { %v5867_v5 = vadd.f32 %v5866_v37, %v5796_v35  ;;  %v7914_v61 = vpop.f32.mrb[59].mxu0  ;;  %v7907_v40 = vpop.f32.mrb[67].mxu1  ;;  %8695 = vrcp.f32 %v5254_v24  ;;  %v5345_v53 = vadd.f32 1.0, %v8684_v16 }
 0xc8b   : > { %v8686_v47 = vpop.eup %8685  ;;  %8697 = vrcp.f32 %v5255_v8 }
 0xc8c   : > { %v5346_v56 = vadd.f32 1.0, %v8686_v47  ;;  %v5878_v46 = vadd.f32 %v6958_v13, %v5867_v5  ;;  %8699 = vrcp.f32 %v5345_v53  ;;  %v6029_v52 = vpop.f32.mrb[68].mxu1 }
 0xc8d   : > { %v7932_v49 = vpop.f32.mrb[69].mxu1 }
 0xc8e   : > { %8701 = vrcp.f32 %v5346_v56  ;;  %v6959_v57 = vmul.f32 -1.442695, %v5878_v46 }
 0xc8f   : > { %8703 = vpow2.f32 %v6948_v11  ;;  %v8688_v45 = vpop.eup %8687 }
 0xc90   : > { %8705 = vpow2.f32 %v6959_v57  ;;  %v5959_v28 = vpop.f32.mrb[60].mxu0  ;;  %v8690_v41 = vpop.eup %8689  ;;  %v5517_v4 = vadd.f32 1.0, %v8688_v45 }
 0xc91   : > { %v6030_v58 = vadd.f32 %v6029_v52, %v5959_v28  ;;  %v7925_v1 = vpop.f32.mrb[61].mxu0  ;;  %v8692_v20 = vpop.eup %8691  ;;  %v5518_v36 = vadd.f32 1.0, %v8690_v41 }
 0xc92   : > { %v8694_v54 = vpop.eup %8693  ;;  %8707 = vrcp.f32 %v5517_v4 }
 0xc93   : > { %v6041_v42 = vadd.f32 %v6969_v7, %v6030_v58  ;;  %8709 = vrcp.f32 %v5518_v36 }
 0xc94   : > { %v8696_v27 = vpop.eup %8695  ;;  %v6187_v43 = vpop.f32.mrb[62].mxu0 }
 0xc95   : > { %v6117_v23 = vpop.f32.mrb[70].mxu1  ;;  %v8698_v33 = vpop.eup %8697  ;;  %v5531_v60 = vmul.f32 %v8696_v27, %v8692_v20  ;;  %8711 = vtanh.f32 %v6041_v42 }
 0xc96   : > { %v6188_v48 = vadd.f32 %v6187_v43, %v6117_v23  ;;  %v7950_v18 = vpop.f32.mrb[63].mxu0  ;;  %v7943_v59 = vpop.f32.mrb[71].mxu1  ;;  %v5532_v3 = vmul.f32 %v8698_v33, %v8694_v54 }
 0xc97   : > { %v8700_v39 = vpop.eup %8699 }
 0xc98   : > { %v8702_v38 = vpop.eup %8701  ;;  %v5529_v26 = vmul.f32 %v8700_v39, %v5525_v32  ;;  %v6199_v2 = vadd.f32 %v6979_v50, %v6188_v48  ;;  %v6289_v63 = vpop.f32.mrb[64].mxu0 }
 0xc99   : > { %v8704_v29 = vpop.eup %8703  ;;  %v5530_v9 = vmul.f32 %v8702_v38, %v5526_v51  ;;  %v6372_v12 = vpop.f32.mrb[72].mxu1 }
 0xc9a   : > { %v8706_v55 = vpop.eup %8705  ;;  %v5533_v0 = vadd.f32 %v5531_v60, %v5529_v26  ;;  %v5719_v25 = vadd.f32 1.0, %v8704_v29  ;;  %v6291_v62 = vpop.f32.mrb[65].mxu0  ;;  %v6980_v17 = vmul.f32 -1.442695, %v6199_v2 }
 0xc9b   : > { %v6374_v10 = vpop.f32.mrb[73].mxu1  ;;  %v5534_v22 = vadd.f32 %v5532_v3, %v5530_v9  ;;  %v5882_v19 = vadd.f32 1.0, %v8706_v55  ;;  %v6483_v34 = vcombine.low %v6289_v63, %v6291_v62  ;;  %v6484_v14 = vcombine.high %v6289_v63, %v6291_v62 }
 0xc9c   : > { %8713 = vtanh.f32 %v5533_v0  ;;  %v6485_v44 = vcombine.low %v6372_v12, %v6374_v10  ;;  %v6486_v30 = vcombine.high %v6372_v12, %v6374_v10  ;;  %v6295_v24 = vpop.f32.mrb[66].mxu0  ;;  %v6378_v35 = vpop.f32.mrb[74].mxu1  ;;  %v916_v0 = vld [vmem:[%s9125_s27 + $0x2] sm:$0x3] }
 0xc9d   : > { %8715 = vtanh.f32 %v5534_v22  ;;  %v6990_v6 = vrot.slane %v6483_v34, 9  ;;  %v6508_v31 = vrot.slane %v6484_v14, 5  ;;  %v6297_v37 = vpop.f32.mrb[67].mxu0  ;;  %v6380_v8 = vpop.f32.mrb[75].mxu1 }
 0xc9e   : > { %8717 = vrcp.f32 %v5719_v25  ;;  %v6992_v13 = vrot.slane %v6485_v44, 10  ;;  %v6537_v16 = vrot.slane %v6486_v30, 6  ;;  %v6488_v61 = vcombine.low %v6295_v24, %v6297_v37  ;;  %v8708_v41 = vpop.eup %8707 }
 0xc9f   : > { %8719 = vrcp.f32 %v5882_v19  ;;  %v6509_v5 = vsel %vm10020_vm8, %v6990_v6, %v6508_v31  ;;  %v6994_v40 = vrot.slane %v6485_v44, 11  ;;  %v6510_v53 = vrot.slane %v6508_v31, 4  ;;  %v8710_v27 = vpop.eup %8709 }
 0xca0   : > { %8721 = vpow2.f32 %v6980_v17  ;;  %v6520_v11 = vrot.slane %v6509_v5, 4  ;;  %v10032_v56 = vcombine.high %v6295_v24, %v6297_v37  ;;  %v6511_v46 = vrot.slane %v6488_v61, 5  ;;  %v6301_v45 = vpop.f32.mrb[68].mxu0  ;;  %v6384_v28 = vpop.f32.mrb[76].mxu1 }
 0xca1   : > { %v6561_v52 = vrot.slane %v6486_v30, 7  ;;  %v10034_v57 = vcombine.low %v6378_v35, %v6380_v8  ;;  %v10036_v49 = vcombine.high %v6378_v35, %v6380_v8  ;;  %v6539_v20 = vrot.slane %v6537_v16, 4  ;;  %v6303_v7 = vpop.f32.mrb[69].mxu0  ;;  %v6386_v54 = vpop.f32.mrb[77].mxu1 }
 0xca2   : > { %v6528_v58 = vadd.f32 %v6520_v11, %v6483_v34  ;;  %v6991_v1 = vrot.slane %v10032_v56, 9  ;;  %v6538_v4 = vsel %vm10028_vm11, %v6992_v13, %v6537_v16  ;;  %v6512_v36 = vsel %vm10020_vm8, %v6510_v53, %v6511_v46  ;;  %v8712_v32 = vpop.eup %8711 }
 0xca3   : > { %v6563_v43 = vrot.slane %v6561_v52, 4  ;;  %v6540_v23 = vrot.slane %v10034_v57, 6  ;;  %v6993_v50 = vrot.slane %v10036_v49, 10  ;;  %v6521_v60 = vrot.slane %v6512_v36, 4 }
 0xca4   : > { %v6564_v42 = vrot.slane %v10034_v57, 7  ;;  %v6995_v48 = vrot.slane %v10036_v49, 11  ;;  %v6492_v18 = vcombine.low %v6301_v45, %v6303_v7  ;;  %v6493_v59 = vcombine.high %v6301_v45, %v6303_v7  ;;  %v6455_v3 = vpop.f32.mrb[70].mxu0 }
 0xca5   : > { %v10053_v39 = vcombine.low %v6384_v28, %v6386_v54  ;;  %v6495_v51 = vcombine.high %v6384_v28, %v6386_v54  ;;  %v6553_v38 = vadd.f32 %v6538_v4, %v6528_v58  ;;  %v6487_v29 = vcombine.high %v6455_v3, %v6455_v3  ;;  %v7957_v63 = vpop.f32.mrb[71].mxu0 }
 0xca6   : > { %v8714_v26 = vpop.eup %8713  ;;  %v6515_v2 = vrot.slane %v6492_v18, 5  ;;  %v6562_v9 = vsel %vm10047_vm13, %v6994_v40, %v6561_v52  ;;  %v6529_v12 = vadd.f32 %v6521_v60, %v6484_v14  ;;  %v6518_v25 = vrot.slane %v6493_v59, 5  ;;  %v6996_v60 = vld [vmem:[%s10117_s10] ss:$0 sm:$0xff] }
 0xca7   : > { %v8716_v55 = vpop.eup %8715  ;;  %v5537_v62 = vmul.f32 %v8714_v26, %v8708_v41  ;;  %v6544_v10 = vrot.slane %v10053_v39, 6  ;;  %v6547_v22 = vrot.slane %v6495_v51, 6  ;;  %v6568_v30 = vrot.slane %v10053_v39, 7 }
 0xca8   : > { %v8718_v19 = vpop.eup %8717  ;;  %v6516_v34 = vsel %vm10020_vm8, %v6991_v1, %v6515_v2  ;;  %v6517_v17 = vrot.slane %v6515_v2, 4  ;;  %v5538_v44 = vmul.f32 %v8716_v55, %v8710_v27  ;;  %v6460_v37 = vpop.f32.mrb[72].mxu0  ;;  %v6571_v52 = vrot.slane %v6495_v51, 7 }
 0xca9   : > { %v8720_v6 = vpop.eup %8719  ;;  %v6207_v14 = vmul.f32 %v8718_v19, %v8712_v32  ;;  %v6522_v31 = vrot.slane %v6516_v34, 4  ;;  %v5544_v24 = vrot.slane %v5537_v62, %v9347_v15  ;;  %v6546_v35 = vrot.slane %v6544_v10, 4  ;;  %v7960_v40 = vpop.f32.mrb[73].mxu0 }
 0xcaa   : > { %v8722_v13 = vpop.eup %8721  ;;  %v6206_v16 = vmul.f32 %v8720_v6, %v916_v0  ;;  %v6519_v8 = vsel %vm10020_vm8, %v6517_v17, %v6518_v25  ;;  %v5548_v5 = vrot.slane %v5538_v44, %v9347_v15  ;;  %v6570_v61 = vrot.slane %v6568_v30, 4 }
 0xcab   : > { %v6203_v53 = vadd.f32 1.0, %v8722_v13  ;;  %v6523_v11 = vrot.slane %v6519_v8, 4  ;;  %v6548_v46 = vsel %vm10028_vm11, %v6546_v35, %v6547_v22  ;;  %v6573_v28 = vrot.slane %v6562_v9, 4 }
 0xcac   : > { %v6208_v57 = vadd.f32 %v6207_v14, %v6206_v16  ;;  %v5550_v45 = vsel %vm5549_vm9, %v5548_v5, %v5544_v24  ;;  %v6541_v21 = vsel %vm10028_vm11, %v6539_v20, %v6540_v23  ;;  %v6572_v15 = vsel %vm10047_vm13, %v6570_v61, %v6571_v52  ;;  %v6465_v1 = vpop.f32.mrb[74].mxu0 }
 0xcad   : > { %8723 = vrcp.f32 %v6203_v53  ;;  %v6531_v41 = vadd.f32 %v6523_v11, %v6492_v18  ;;  %5553 = vst.msk [vmem:[%s491_s15 - $0x3] sm:$0x18] %vm5552_vm12, %v5550_v45  ;;  %v6554_v58 = vadd.f32 %v6541_v21, %v6529_v12  ;;  %v6581_v7 = vadd.f32 %v6573_v28, %v6553_v38  ;;  %v7963_v4 = vpop.f32.mrb[75].mxu0 }
 0xcae   : > { %8725 = vtanh.f32 %v6208_v57  ;;  %v6565_v54 = vsel %vm10047_vm13, %v6563_v43, %v6564_v42  ;;  %v6576_v27 = vrot.slane %v6572_v15, 4  ;;  %v6530_v32 = vadd.f32 %v6522_v31, %v10032_v56 }
 0xcaf   : > { %v6574_v36 = vrot.slane %v6565_v54, 4  ;;  %v6545_v20 = vsel %vm10028_vm11, %v6993_v50, %v6544_v10  ;;  %v6585_v23 = vadd.f32 %v6581_v7, %v6487_v29  ;;  %v6496_v18 = vcombine.high %v6465_v1, %v6465_v1 }
 0xcb0   : > { %v6556_v59 = vadd.f32 %v6548_v46, %v6531_v41  ;;  %v6569_v43 = vsel %vm10047_vm13, %v6995_v48, %v6568_v30  ;;  %v6596_v39 = vcombine.high %v6996_v60, %v6996_v60  ;;  %v6555_v56 = vadd.f32 %v6545_v20, %v6530_v32 }
 0xcb1   : > { %v6582_v42 = vadd.f32 %v6574_v36, %v6554_v58  ;;  %v6575_v51 = vrot.slane %v6569_v43, 4  ;;  %v6598_v47 = vadd.f32 %v6996_v60, %v6585_v23 }
 0xcb2   : > { %v6584_v3 = vadd.f32 %v6576_v27, %v6556_v59 }
 0xcb3   : > { %v6586_v50 = vadd.f32 %v6582_v42, %v6460_v37  ;;  %v6583_v38 = vadd.f32 %v6575_v51, %v6555_v56  ;;  %v6602_v12 = vmax.f32 %v6598_v47, 0.0 }
 0xcb4   : > { %v6588_v26 = vadd.f32 %v6584_v3, %v6496_v18 }
 0xcb5   : > { %v6599_v2 = vadd.f32 %v6596_v39, %v6586_v50  ;;  %v6587_v29 = vadd.f32 %v6583_v38, %v6465_v1 }
 0xcb6   : > { %v6601_v9 = vadd.f32 %v6596_v39, %v6588_v26 }
 0xcb7   : > { %v8724_v63 = vpop.eup %8723  ;;  %v6603_v55 = vmax.f32 %v6599_v2, 0.0  ;;  %v6600_v49 = vadd.f32 %v6996_v60, %v6587_v29 }
 0xcb8   : > { %v8726_v0 = vpop.eup %8725  ;;  %v6605_v33 = vmax.f32 %v6601_v9, 0.0 }
 0xcb9   : > { %v6210_v48 = vmul.f32 %v8726_v0, %v8724_v63  ;;  %v6610_v25 = vcombine.low %v6602_v12, %v6603_v55  ;;  %v6604_v62 = vmax.f32 %v6600_v49, 0.0 }
 0xcbb   : > { %6212 = vst.msk [vmem:[%s495_s20] sm:$0x3] %vm6211_vm14, %v6210_v48  ;;  %v6614_v10 = vrot.slane %v6610_v25, 4  ;;  %v6611_v22 = vcombine.low %v6604_v62, %v6605_v33 }
 0xcbd   : > { %v6615_v19 = vmax.f32 %v6610_v25, %v6614_v10  ;;  %v6620_v34 = vrot.slane %v6611_v22, 4 }
 0xcbf   : > { %v6616_v17 = vrot.slane %v6615_v19, 2  ;;  %v6621_v44 = vmax.f32 %v6611_v22, %v6620_v34 }
 0xcc1   : > { %v6617_v30 = vmax.f32 %v6615_v19, %v6616_v17  ;;  %v6622_v6 = vrot.slane %v6621_v44, 2 }
 0xcc3   : > { %v6618_v14 = vrot.slane %v6617_v30, 1  ;;  %v6623_v31 = vmax.f32 %v6621_v44, %v6622_v6 }
 0xcc5   : > { %v6624_v24 = vrot.slane %v6623_v31, 1  ;;  %v6619_v35 = vmax.f32 %v6617_v30, %v6618_v14 }
 0xcc7   : > { %v6625_v37 = vmax.f32 %v6623_v31, %v6624_v24 }
 0xcc9   : > { %v6628_v13 = vsel %vm1327_vm3, %v6625_v37, %v6619_v35 }
 0xcca   : > { %6630 = vst [vmem:[%s499_s21] sm:$0x3] %v6628_v13 }
 0xccb PF: > { %s24_s25 = sadd.s32 1, %s8739_s25  }
 0xccc   : > { %p21_p4 = scmp.ge.s32.totalorder %s24_s25, 4  }
 0xcce   :  { %23 = sbr.rel (!%p21_p4) target bundleno = 1 (0x1), region = 142 }

</bundles_post_ra>
